<compile_context>
chip_gen: v5e
topology: v5e:2x2
jax: 0.10.0
libtpu: 0.0.40
codegen_flags: <defaults>
</compile_context>

<pallas_src>
import functools

import jax
import jax.numpy as jnp
from jax.experimental import pallas as pl
from jax.experimental.pallas import tpu as pltpu

_PREC = jax.lax.Precision.HIGHEST   # pin the pure-JAX reference to true f32


# ----------------------------------------------------------------------------
# Host-side constant operators (tiny, built once per trace).
# ----------------------------------------------------------------------------
def _interp_matrix(in_size, out_size):
    """1-D linear interpolation matrix, align_corners=True (PyTorch semantics)."""
    scale = 0.0 if out_size == 1 else (in_size - 1) / (out_size - 1)
    src = jnp.arange(out_size, dtype=jnp.float32) * jnp.float32(scale)
    i0 = jnp.clip(jnp.floor(src), 0, in_size - 1).astype(jnp.int32)
    i1 = jnp.clip(i0 + 1, 0, in_size - 1)
    frac = src - i0.astype(jnp.float32)
    rows = jnp.arange(out_size)
    A = jnp.zeros((out_size, in_size), jnp.float32)
    A = A.at[rows, i0].add(1.0 - frac)
    A = A.at[rows, i1].add(frac)
    return A


def _upsample_rhs(Hh, Wh, H, W, B):
    """(B*Hh*Wh, B*H*W):  up(C, B*H*W) = a4(C, B*Hh*Wh) @ rhs  (per-image blocks)."""
    up = jnp.kron(_interp_matrix(Hh, H), _interp_matrix(Wh, W))   # (H*W, Hh*Wh)
    return jnp.kron(jnp.eye(B, dtype=jnp.float32), up.T)


def _pool_compact_rhs(H, W, B):
    """(B*H*W, B*Hh*Wh) exact 0/1 matrix: picks lane 2i*W+2j of each image
    (where the 2x2 running max lives) into output lane i*Wh+j."""
    Hh, Wh = H // 2, W // 2
    ii, jj = jnp.meshgrid(jnp.arange(Hh), jnp.arange(Wh), indexing="ij")
    src = (2 * ii * W + 2 * jj).reshape(-1)
    dst = (ii * Wh + jj).reshape(-1)
    S = jnp.zeros((H * W, Hh * Wh), jnp.float32).at[src, dst].set(1.0)
    return jnp.kron(jnp.eye(B, dtype=jnp.float32), S)


def _tap_masks(H, W, B):
    """(9, 1, B*H*W) f32 0/1: mask[t, 0, b*HW + h*W + w] == 1 iff tap t=(ky,kx)
    reads an in-bounds source pixel (h+ky-1, w+kx-1).  Exactly reproduces SAME
    zero-padding and also kills cross-image leakage of the flat lane rolls."""
    hh = jnp.arange(H)[:, None]
    ww = jnp.arange(W)[None, :]
    rows = []
    for t in range(9):
        ky, kx = divmod(t, 3)
        ok = ((hh + ky - 1 >= 0) & (hh + ky - 1 < H) &
              (ww + kx - 1 >= 0) & (ww + kx - 1 < W))
        rows.append(ok.reshape(-1))
    m = jnp.stack(rows).astype(jnp.float32)            # (9, H*W)
    return jnp.tile(m, (1, B))[:, None, :]             # (9, 1, B*H*W)


# ----------------------------------------------------------------------------
# In-kernel 3x3 SAME conv, channels-on-sublanes / flat-spatial-on-lanes.
# ----------------------------------------------------------------------------
def _conv3x3(act, w_ref, b_ref, mask_ref, W, cdt):
    """act: (Cin, L) f32, L = B*H*W (row-major h*W+w per image).
    w_ref: (9, Cout, Cin) compute-dtype, b_ref: (Cout, 1) f32,
    mask_ref: (9, 1, L) f32 0/1.   Returns (Cout, L) f32 (no ReLU)."""
    Cin, L = act.shape
    Cout = w_ref.shape[1]
    acc = jnp.zeros((Cout, L), jnp.float32)
    for t in range(9):
        ky, kx = divmod(t, 3)
        off = (ky - 1) * W + (kx - 1)          # flat source shift of this tap
        patch = act
        if off != 0:
            # patch[l] = act[l + off]  (lane rotate, XLU) then zero OOB sources.
            patch = pltpu.roll(patch, (-off) % L, 1)
            patch = patch * mask_ref[t]
        w_t = w_ref[t]
        if Cin == 1:
            # (Cout,1)*(1,L) broadcast multiply instead of a degenerate K=1 dot.
            acc = acc + w_t.astype(jnp.float32) * patch
        else:
            acc = acc + jnp.dot(w_t, patch.astype(cdt),
                                preferred_element_type=jnp.float32)
    return acc + b_ref[...]


# ----------------------------------------------------------------------------
# Fused whole-network kernel: one grid step = B images.
# ----------------------------------------------------------------------------
def _simplenet_kernel(x_ref, w1, b1, w2, b2, w3, b3, w4, b4, wf, bf,
                      mfull, mhalf, pool_rhs, up_rhs, o_ref, *, W, Wh, cdt):
    L = x_ref.shape[2]                                            # B*H*W

    # conv1 (Cin=1) + ReLU, conv2 + ReLU  -- full resolution
    a0 = x_ref[0].astype(jnp.float32)                             # (1, L)
    a1 = jnp.maximum(_conv3x3(a0, w1, b1, mfull, W, cdt), 0.0)    # (12, L)
    a2 = jnp.maximum(_conv3x3(a1, w2, b2, mfull, W, cdt), 0.0)    # (12, L)

    # MaxPool 2x2: two lane rolls + VPU maxes put the 2x2 max at lane 2i*W+2j,
    # then one exact 0/1 compaction matmul gathers it into (12, B*Hh*Wh).
    m1 = jnp.maximum(a2, pltpu.roll(a2, L - 1, 1))                # max over w pair
    m2 = jnp.maximum(m1, pltpu.roll(m1, L - W, 1))                # max over h pair
    pooled = jnp.dot(m2.astype(cdt), pool_rhs[...],
                     preferred_element_type=jnp.float32)          # (12, Lh)

    # conv3 + ReLU, conv4 + ReLU  -- half resolution
    a3 = jnp.maximum(_conv3x3(pooled, w3, b3, mhalf, Wh, cdt), 0.0)   # (24, Lh)
    a4 = jnp.maximum(_conv3x3(a3, w4, b4, mhalf, Wh, cdt), 0.0)       # (24, Lh)

    # Bilinear x2 upsample (align_corners=True): one matmul, spatial on lanes.
    up = jnp.dot(a4.astype(cdt), up_rhs[...],
                 preferred_element_type=jnp.float32)              # (24, L)

    # final 3x3 conv (no ReLU): (1, L) row -> lane-dense output store.
    yf = _conv3x3(up, wf, bf, mfull, W, cdt)
    o_ref[0] = yf.astype(o_ref.dtype)


# ----------------------------------------------------------------------------
# Wrapper: NCHW in, NCHW out.  One pallas_call for the whole forward pass.
# ----------------------------------------------------------------------------
def simplenet_forward(x_nchw, params, *, compute_dtype=jnp.bfloat16,
                      block_images=2):
    N, C, H, W = x_nchw.shape
    assert C == 1, "SimpleNet conv1 expects a single input channel"
    assert H % 2 == 0 and W % 2 == 0, "MaxPool2d(2) requires even spatial dims"

    # Images per grid step: largest divisor of N <= block_images.  Amortizes
    # per-step overhead (v5e/v6e serial grid) and widens every matmul's lane
    # dim; keep >= 2 grid steps when possible so both v7x cores get work.
    B = max(d for d in range(1, min(N, block_images) + 1) if N % d == 0)
    G = N // B
    Hh, Wh = H // 2, W // 2
    L, Lh = B * H * W, B * Hh * Wh
    cdt = compute_dtype

    # NCHW (C=1) -> (grid step, 1, flat batched spatial): free row-major reshape.
    x = x_nchw.reshape(G, 1, L)

    def wtaps(w):   # HWIO (3,3,Cin,Cout) -> per-tap transposed (9, Cout, Cin)
        return jnp.transpose(w, (0, 1, 3, 2)).reshape(
            9, w.shape[3], w.shape[2]).astype(cdt)

    def bcol(b):
        return b.reshape(-1, 1).astype(jnp.float32)

    w1, b1 = wtaps(params["w1"]), bcol(params["b1"])
    w2, b2 = wtaps(params["w2"]), bcol(params["b2"])
    w3, b3 = wtaps(params["w3"]), bcol(params["b3"])
    w4, b4 = wtaps(params["w4"]), bcol(params["b4"])
    wf, bf = wtaps(params["wf"]), bcol(params["bf"])

    mfull = _tap_masks(H, W, B)                            # (9, 1, L)  exact 0/1
    mhalf = _tap_masks(Hh, Wh, B)                          # (9, 1, Lh) exact 0/1
    pool_rhs = _pool_compact_rhs(H, W, B).astype(cdt)      # (L, Lh)    exact 0/1
    up_rhs = _upsample_rhs(Hh, Wh, H, W, B).astype(cdt)    # (Lh, L)

    def full(a):   # grid-invariant constant: whole array as one block
        nd = a.ndim
        return pl.BlockSpec(a.shape, lambda g, _nd=nd: (0,) * _nd)

    out = pl.pallas_call(
        functools.partial(_simplenet_kernel, W=W, Wh=Wh, cdt=cdt),
        out_shape=jax.ShapeDtypeStruct((G, 1, L), x_nchw.dtype),
        grid=(G,),
        in_specs=[
            pl.BlockSpec((1, 1, L), lambda g: (g, 0, 0)),
            full(w1), full(b1), full(w2), full(b2), full(w3), full(b3),
            full(w4), full(b4), full(wf), full(bf),
            full(mfull), full(mhalf), full(pool_rhs), full(up_rhs),
        ],
        out_specs=pl.BlockSpec((1, 1, L), lambda g: (g, 0, 0)),
        compiler_params=pltpu.CompilerParams(
            dimension_semantics=("parallel",)),   # grid steps -> both v7x TCs
    )(x, w1, b1, w2, b2, w3, b3, w4, b4, wf, bf, mfull, mhalf, pool_rhs, up_rhs)

    # (G, 1, B*H*W) -> (N, 1, H, W): free row-major reshape.
    return out.reshape(N, 1, H, W)


# ----------------------------------------------------------------------------
# Deterministic parameter init (shapes from SimpleNet.__init__; HWIO layout).
# ----------------------------------------------------------------------------
def init_params(key):
    ks = jax.random.split(key, 10)

    def conv_init(kw, kb, cin, cout):
        bound = 1.0 / jnp.sqrt(jnp.float32(cin * 9))
        w = jax.random.uniform(kw, (3, 3, cin, cout), jnp.float32, -bound, bound)
        b = jax.random.uniform(kb, (cout,), jnp.float32, -bound, bound)
        return w, b

    w1, b1 = conv_init(ks[0], ks[1], 1, 12)
    w2, b2 = conv_init(ks[2], ks[3], 12, 12)
    w3, b3 = conv_init(ks[4], ks[5], 12, 24)
    w4, b4 = conv_init(ks[6], ks[7], 24, 24)
    wf, bf = conv_init(ks[8], ks[9], 24, 1)
    return dict(w1=w1, b1=b1, w2=w2, b2=b2, w3=w3, b3=b3,
                w4=w4, b4=b4, wf=wf, bf=bf)


# ----------------------------------------------------------------------------
# Pure-JAX f32 reference (numerical validation).
# ----------------------------------------------------------------------------
def ref_forward(x_nchw, params):
    def conv(x, w, b):
        y = jax.lax.conv_general_dilated(
            x, w, window_strides=(1, 1), padding="SAME",
            dimension_numbers=("NHWC", "HWIO", "NHWC"), precision=_PREC)
        return y + b

    x = jnp.transpose(x_nchw, (0, 2, 3, 1))
    x = jax.nn.relu(conv(x, params["w1"], params["b1"]))
    x = jax.nn.relu(conv(x, params["w2"], params["b2"]))
    x = jax.lax.reduce_window(x, -jnp.inf, jax.lax.max,
                              (1, 2, 2, 1), (1, 2, 2, 1), "VALID")
    x = jax.nn.relu(conv(x, params["w3"], params["b3"]))
    x = jax.nn.relu(conv(x, params["w4"], params["b4"]))
    Hh, Wh = x.shape[1], x.shape[2]
    ah = _interp_matrix(Hh, 2 * Hh)
    aw = _interp_matrix(Wh, 2 * Wh)
    x = jnp.einsum("oh,nhwc->nowc", ah, x, precision=_PREC)
    x = jnp.einsum("pw,nowc->nopc", aw, x, precision=_PREC)
    x = conv(x, params["wf"], params["bf"])
    return jnp.transpose(x, (0, 3, 1, 2))


if __name__ == "__main__":
    key = jax.random.PRNGKey(0)
    pkey, xkey = jax.random.split(key)
    params = init_params(pkey)

    # NCHW input, 1 channel, small even spatial size; N=4 so that two images
    # are packed per grid step and there are still 2 steps (both v7x cores).
    x = jax.random.normal(xkey, (4, 1, 16, 16), jnp.float32)

    ref = jax.block_until_ready(ref_forward(x, params))

    # Strict check: f32 MXU operands (bit-level semantics of the module).
    out_f32 = jax.block_until_ready(
        jax.jit(functools.partial(simplenet_forward,
                                  compute_dtype=jnp.float32,
                                  block_images=2))(x, params))
    assert out_f32.shape == (4, 1, 16, 16), out_f32.shape
    err32 = float(jnp.max(jnp.abs(out_f32 - ref)))
    assert err32 < 3e-3, f"f32 path max abs err {err32}"

    # Performance default: bf16 MXU operands, f32 activations/accumulation.
    out_bf16 = jax.block_until_ready(
        jax.jit(functools.partial(simplenet_forward,
                                  compute_dtype=jnp.bfloat16,
                                  block_images=2))(x, params))
    assert out_bf16.shape == (4, 1, 16, 16), out_bf16.shape
    err16 = float(jnp.max(jnp.abs(out_bf16 - ref)))
    assert err16 < 5e-2, f"bf16 path max abs err {err16}"

    print("KERNEL_OK")
</pallas_src>

<mosaic_0001>
module attributes {stable_mosaic.version = 11 : i64} {
  func.func @_simplenet_kernel(%arg0: i32, %arg1: memref<1x1x512xf32, #tpu.memory_space<vmem>>, %arg2: memref<9x12x1xf32, #tpu.memory_space<vmem>>, %arg3: memref<12x1xf32, #tpu.memory_space<vmem>>, %arg4: memref<9x12x12xf32, #tpu.memory_space<vmem>>, %arg5: memref<12x1xf32, #tpu.memory_space<vmem>>, %arg6: memref<9x24x12xf32, #tpu.memory_space<vmem>>, %arg7: memref<24x1xf32, #tpu.memory_space<vmem>>, %arg8: memref<9x24x24xf32, #tpu.memory_space<vmem>>, %arg9: memref<24x1xf32, #tpu.memory_space<vmem>>, %arg10: memref<9x1x24xf32, #tpu.memory_space<vmem>>, %arg11: memref<1x1xf32, #tpu.memory_space<vmem>>, %arg12: memref<9x1x512xf32, #tpu.memory_space<vmem>>, %arg13: memref<9x1x128xf32, #tpu.memory_space<vmem>>, %arg14: memref<512x128xf32, #tpu.memory_space<vmem>>, %arg15: memref<128x512xf32, #tpu.memory_space<vmem>>, %arg16: memref<1x1x512xf32, #tpu.memory_space<vmem>>) attributes {dimension_semantics = [#tpu.dimension_semantics<parallel>], iteration_bounds = array<i64: 2>, scalar_prefetch = 0 : i64, scratch_operands = 0 : i64, tpu.core_type = #tpu.core_type<tc>, window_params = [{transform_indices = @transform_0, window_bounds = array<i64: 1, 1, 512>}, {pipeline_mode = #tpu.pipeline_mode<synchronous>, transform_indices = @transform_1, window_bounds = array<i64: 9, 12, 1>}, {pipeline_mode = #tpu.pipeline_mode<synchronous>, transform_indices = @transform_2, window_bounds = array<i64: 12, 1>}, {pipeline_mode = #tpu.pipeline_mode<synchronous>, transform_indices = @transform_3, window_bounds = array<i64: 9, 12, 12>}, {pipeline_mode = #tpu.pipeline_mode<synchronous>, transform_indices = @transform_4, window_bounds = array<i64: 12, 1>}, {pipeline_mode = #tpu.pipeline_mode<synchronous>, transform_indices = @transform_5, window_bounds = array<i64: 9, 24, 12>}, {pipeline_mode = #tpu.pipeline_mode<synchronous>, transform_indices = @transform_6, window_bounds = array<i64: 24, 1>}, {pipeline_mode = #tpu.pipeline_mode<synchronous>, transform_indices = @transform_7, window_bounds = array<i64: 9, 24, 24>}, {pipeline_mode = #tpu.pipeline_mode<synchronous>, transform_indices = @transform_8, window_bounds = array<i64: 24, 1>}, {pipeline_mode = #tpu.pipeline_mode<synchronous>, transform_indices = @transform_9, window_bounds = array<i64: 9, 1, 24>}, {pipeline_mode = #tpu.pipeline_mode<synchronous>, transform_indices = @transform_10, window_bounds = array<i64: 1, 1>}, {pipeline_mode = #tpu.pipeline_mode<synchronous>, transform_indices = @transform_11, window_bounds = array<i64: 9, 1, 512>}, {pipeline_mode = #tpu.pipeline_mode<synchronous>, transform_indices = @transform_12, window_bounds = array<i64: 9, 1, 128>}, {pipeline_mode = #tpu.pipeline_mode<synchronous>, transform_indices = @transform_13, window_bounds = array<i64: 512, 128>}, {pipeline_mode = #tpu.pipeline_mode<synchronous>, transform_indices = @transform_14, window_bounds = array<i64: 128, 512>}, {transform_indices = @transform_15, window_bounds = array<i64: 1, 1, 512>}]} {
    %c0 = arith.constant 0 : index
    %c0_0 = arith.constant 0 : index
    %c0_1 = arith.constant 0 : index
    %0 = vector.load %arg1[%c0, %c0_0, %c0_1] : memref<1x1x512xf32, #tpu.memory_space<vmem>>, vector<1x1x512xf32>
    %1 = vector.shape_cast %0 : vector<1x1x512xf32> to vector<1x512xf32>
    %cst = arith.constant 0.000000e+00 : f32
    %2 = vector.broadcast %cst : f32 to vector<12x512xf32>
    %c17_i32 = arith.constant 17 : i32
    %3 = tpu.dynamic_rotate %1 by %c17_i32 dim 1 : vector<1x512xf32>, i32 -> vector<1x512xf32>
    %c0_2 = arith.constant 0 : index
    %c0_3 = arith.constant 0 : index
    %c0_4 = arith.constant 0 : index
    %4 = vector.load %arg12[%c0_2, %c0_3, %c0_4] : memref<9x1x512xf32, #tpu.memory_space<vmem>>, vector<1x1x512xf32>
    %5 = vector.shape_cast %4 : vector<1x1x512xf32> to vector<1x512xf32>
    %6 = arith.mulf %3, %5 : vector<1x512xf32>
    %c0_5 = arith.constant 0 : index
    %c0_6 = arith.constant 0 : index
    %c0_7 = arith.constant 0 : index
    %7 = vector.load %arg2[%c0_5, %c0_6, %c0_7] : memref<9x12x1xf32, #tpu.memory_space<vmem>>, vector<1x12x1xf32>
    %8 = vector.shape_cast %7 : vector<1x12x1xf32> to vector<12x1xf32>
    %9 = vector.broadcast %8 : vector<12x1xf32> to vector<12x512xf32>
    %10 = vector.broadcast %6 : vector<1x512xf32> to vector<12x512xf32>
    %11 = arith.mulf %9, %10 : vector<12x512xf32>
    %12 = arith.addf %2, %11 : vector<12x512xf32>
    %c16_i32 = arith.constant 16 : i32
    %13 = tpu.dynamic_rotate %1 by %c16_i32 dim 1 : vector<1x512xf32>, i32 -> vector<1x512xf32>
    %c1 = arith.constant 1 : index
    %c0_8 = arith.constant 0 : index
    %c0_9 = arith.constant 0 : index
    %14 = vector.load %arg12[%c1, %c0_8, %c0_9] : memref<9x1x512xf32, #tpu.memory_space<vmem>>, vector<1x1x512xf32>
    %15 = vector.shape_cast %14 : vector<1x1x512xf32> to vector<1x512xf32>
    %16 = arith.mulf %13, %15 : vector<1x512xf32>
    %c1_10 = arith.constant 1 : index
    %c0_11 = arith.constant 0 : index
    %c0_12 = arith.constant 0 : index
    %17 = vector.load %arg2[%c1_10, %c0_11, %c0_12] : memref<9x12x1xf32, #tpu.memory_space<vmem>>, vector<1x12x1xf32>
    %18 = vector.shape_cast %17 : vector<1x12x1xf32> to vector<12x1xf32>
    %19 = vector.broadcast %18 : vector<12x1xf32> to vector<12x512xf32>
    %20 = vector.broadcast %16 : vector<1x512xf32> to vector<12x512xf32>
    %21 = arith.mulf %19, %20 : vector<12x512xf32>
    %22 = arith.addf %12, %21 : vector<12x512xf32>
    %c15_i32 = arith.constant 15 : i32
    %23 = tpu.dynamic_rotate %1 by %c15_i32 dim 1 : vector<1x512xf32>, i32 -> vector<1x512xf32>
    %c2 = arith.constant 2 : index
    %c0_13 = arith.constant 0 : index
    %c0_14 = arith.constant 0 : index
    %24 = vector.load %arg12[%c2, %c0_13, %c0_14] : memref<9x1x512xf32, #tpu.memory_space<vmem>>, vector<1x1x512xf32>
    %25 = vector.shape_cast %24 : vector<1x1x512xf32> to vector<1x512xf32>
    %26 = arith.mulf %23, %25 : vector<1x512xf32>
    %c2_15 = arith.constant 2 : index
    %c0_16 = arith.constant 0 : index
    %c0_17 = arith.constant 0 : index
    %27 = vector.load %arg2[%c2_15, %c0_16, %c0_17] : memref<9x12x1xf32, #tpu.memory_space<vmem>>, vector<1x12x1xf32>
    %28 = vector.shape_cast %27 : vector<1x12x1xf32> to vector<12x1xf32>
    %29 = vector.broadcast %28 : vector<12x1xf32> to vector<12x512xf32>
    %30 = vector.broadcast %26 : vector<1x512xf32> to vector<12x512xf32>
    %31 = arith.mulf %29, %30 : vector<12x512xf32>
    %32 = arith.addf %22, %31 : vector<12x512xf32>
    %c1_i32 = arith.constant 1 : i32
    %33 = tpu.dynamic_rotate %1 by %c1_i32 dim 1 : vector<1x512xf32>, i32 -> vector<1x512xf32>
    %c3 = arith.constant 3 : index
    %c0_18 = arith.constant 0 : index
    %c0_19 = arith.constant 0 : index
    %34 = vector.load %arg12[%c3, %c0_18, %c0_19] : memref<9x1x512xf32, #tpu.memory_space<vmem>>, vector<1x1x512xf32>
    %35 = vector.shape_cast %34 : vector<1x1x512xf32> to vector<1x512xf32>
    %36 = arith.mulf %33, %35 : vector<1x512xf32>
    %c3_20 = arith.constant 3 : index
    %c0_21 = arith.constant 0 : index
    %c0_22 = arith.constant 0 : index
    %37 = vector.load %arg2[%c3_20, %c0_21, %c0_22] : memref<9x12x1xf32, #tpu.memory_space<vmem>>, vector<1x12x1xf32>
    %38 = vector.shape_cast %37 : vector<1x12x1xf32> to vector<12x1xf32>
    %39 = vector.broadcast %38 : vector<12x1xf32> to vector<12x512xf32>
    %40 = vector.broadcast %36 : vector<1x512xf32> to vector<12x512xf32>
    %41 = arith.mulf %39, %40 : vector<12x512xf32>
    %42 = arith.addf %32, %41 : vector<12x512xf32>
    %c4 = arith.constant 4 : index
    %c0_23 = arith.constant 0 : index
    %c0_24 = arith.constant 0 : index
    %43 = vector.load %arg2[%c4, %c0_23, %c0_24] : memref<9x12x1xf32, #tpu.memory_space<vmem>>, vector<1x12x1xf32>
    %44 = vector.shape_cast %43 : vector<1x12x1xf32> to vector<12x1xf32>
    %45 = vector.broadcast %44 : vector<12x1xf32> to vector<12x512xf32>
    %46 = vector.broadcast %1 : vector<1x512xf32> to vector<12x512xf32>
    %47 = arith.mulf %45, %46 : vector<12x512xf32>
    %48 = arith.addf %42, %47 : vector<12x512xf32>
    %c511_i32 = arith.constant 511 : i32
    %49 = tpu.dynamic_rotate %1 by %c511_i32 dim 1 : vector<1x512xf32>, i32 -> vector<1x512xf32>
    %c5 = arith.constant 5 : index
    %c0_25 = arith.constant 0 : index
    %c0_26 = arith.constant 0 : index
    %50 = vector.load %arg12[%c5, %c0_25, %c0_26] : memref<9x1x512xf32, #tpu.memory_space<vmem>>, vector<1x1x512xf32>
    %51 = vector.shape_cast %50 : vector<1x1x512xf32> to vector<1x512xf32>
    %52 = arith.mulf %49, %51 : vector<1x512xf32>
    %c5_27 = arith.constant 5 : index
    %c0_28 = arith.constant 0 : index
    %c0_29 = arith.constant 0 : index
    %53 = vector.load %arg2[%c5_27, %c0_28, %c0_29] : memref<9x12x1xf32, #tpu.memory_space<vmem>>, vector<1x12x1xf32>
    %54 = vector.shape_cast %53 : vector<1x12x1xf32> to vector<12x1xf32>
    %55 = vector.broadcast %54 : vector<12x1xf32> to vector<12x512xf32>
    %56 = vector.broadcast %52 : vector<1x512xf32> to vector<12x512xf32>
    %57 = arith.mulf %55, %56 : vector<12x512xf32>
    %58 = arith.addf %48, %57 : vector<12x512xf32>
    %c497_i32 = arith.constant 497 : i32
    %59 = tpu.dynamic_rotate %1 by %c497_i32 dim 1 : vector<1x512xf32>, i32 -> vector<1x512xf32>
    %c6 = arith.constant 6 : index
    %c0_30 = arith.constant 0 : index
    %c0_31 = arith.constant 0 : index
    %60 = vector.load %arg12[%c6, %c0_30, %c0_31] : memref<9x1x512xf32, #tpu.memory_space<vmem>>, vector<1x1x512xf32>
    %61 = vector.shape_cast %60 : vector<1x1x512xf32> to vector<1x512xf32>
    %62 = arith.mulf %59, %61 : vector<1x512xf32>
    %c6_32 = arith.constant 6 : index
    %c0_33 = arith.constant 0 : index
    %c0_34 = arith.constant 0 : index
    %63 = vector.load %arg2[%c6_32, %c0_33, %c0_34] : memref<9x12x1xf32, #tpu.memory_space<vmem>>, vector<1x12x1xf32>
    %64 = vector.shape_cast %63 : vector<1x12x1xf32> to vector<12x1xf32>
    %65 = vector.broadcast %64 : vector<12x1xf32> to vector<12x512xf32>
    %66 = vector.broadcast %62 : vector<1x512xf32> to vector<12x512xf32>
    %67 = arith.mulf %65, %66 : vector<12x512xf32>
    %68 = arith.addf %58, %67 : vector<12x512xf32>
    %c496_i32 = arith.constant 496 : i32
    %69 = tpu.dynamic_rotate %1 by %c496_i32 dim 1 : vector<1x512xf32>, i32 -> vector<1x512xf32>
    %c7 = arith.constant 7 : index
    %c0_35 = arith.constant 0 : index
    %c0_36 = arith.constant 0 : index
    %70 = vector.load %arg12[%c7, %c0_35, %c0_36] : memref<9x1x512xf32, #tpu.memory_space<vmem>>, vector<1x1x512xf32>
    %71 = vector.shape_cast %70 : vector<1x1x512xf32> to vector<1x512xf32>
    %72 = arith.mulf %69, %71 : vector<1x512xf32>
    %c7_37 = arith.constant 7 : index
    %c0_38 = arith.constant 0 : index
    %c0_39 = arith.constant 0 : index
    %73 = vector.load %arg2[%c7_37, %c0_38, %c0_39] : memref<9x12x1xf32, #tpu.memory_space<vmem>>, vector<1x12x1xf32>
    %74 = vector.shape_cast %73 : vector<1x12x1xf32> to vector<12x1xf32>
    %75 = vector.broadcast %74 : vector<12x1xf32> to vector<12x512xf32>
    %76 = vector.broadcast %72 : vector<1x512xf32> to vector<12x512xf32>
    %77 = arith.mulf %75, %76 : vector<12x512xf32>
    %78 = arith.addf %68, %77 : vector<12x512xf32>
    %c495_i32 = arith.constant 495 : i32
    %79 = tpu.dynamic_rotate %1 by %c495_i32 dim 1 : vector<1x512xf32>, i32 -> vector<1x512xf32>
    %c8 = arith.constant 8 : index
    %c0_40 = arith.constant 0 : index
    %c0_41 = arith.constant 0 : index
    %80 = vector.load %arg12[%c8, %c0_40, %c0_41] : memref<9x1x512xf32, #tpu.memory_space<vmem>>, vector<1x1x512xf32>
    %81 = vector.shape_cast %80 : vector<1x1x512xf32> to vector<1x512xf32>
    %82 = arith.mulf %79, %81 : vector<1x512xf32>
    %c8_42 = arith.constant 8 : index
    %c0_43 = arith.constant 0 : index
    %c0_44 = arith.constant 0 : index
    %83 = vector.load %arg2[%c8_42, %c0_43, %c0_44] : memref<9x12x1xf32, #tpu.memory_space<vmem>>, vector<1x12x1xf32>
    %84 = vector.shape_cast %83 : vector<1x12x1xf32> to vector<12x1xf32>
    %85 = vector.broadcast %84 : vector<12x1xf32> to vector<12x512xf32>
    %86 = vector.broadcast %82 : vector<1x512xf32> to vector<12x512xf32>
    %87 = arith.mulf %85, %86 : vector<12x512xf32>
    %88 = arith.addf %78, %87 : vector<12x512xf32>
    %c0_45 = arith.constant 0 : index
    %c0_46 = arith.constant 0 : index
    %89 = vector.load %arg3[%c0_45, %c0_46] : memref<12x1xf32, #tpu.memory_space<vmem>>, vector<12x1xf32>
    %90 = vector.broadcast %89 : vector<12x1xf32> to vector<12x512xf32>
    %91 = arith.addf %88, %90 : vector<12x512xf32>
    %cst_47 = arith.constant 0.000000e+00 : f32
    %92 = vector.broadcast %cst_47 : f32 to vector<12x512xf32>
    %93 = arith.maximumf %91, %92 : vector<12x512xf32>
    %cst_48 = arith.constant 0.000000e+00 : f32
    %94 = vector.broadcast %cst_48 : f32 to vector<12x512xf32>
    %c17_i32_49 = arith.constant 17 : i32
    %95 = tpu.dynamic_rotate %93 by %c17_i32_49 dim 1 : vector<12x512xf32>, i32 -> vector<12x512xf32>
    %c0_50 = arith.constant 0 : index
    %c0_51 = arith.constant 0 : index
    %c0_52 = arith.constant 0 : index
    %96 = vector.load %arg12[%c0_50, %c0_51, %c0_52] : memref<9x1x512xf32, #tpu.memory_space<vmem>>, vector<1x1x512xf32>
    %97 = vector.shape_cast %96 : vector<1x1x512xf32> to vector<1x512xf32>
    %98 = vector.broadcast %97 : vector<1x512xf32> to vector<12x512xf32>
    %99 = arith.mulf %95, %98 : vector<12x512xf32>
    %c0_53 = arith.constant 0 : index
    %c0_54 = arith.constant 0 : index
    %c0_55 = arith.constant 0 : index
    %100 = vector.load %arg4[%c0_53, %c0_54, %c0_55] : memref<9x12x12xf32, #tpu.memory_space<vmem>>, vector<1x12x12xf32>
    %101 = vector.shape_cast %100 : vector<1x12x12xf32> to vector<12x12xf32>
    %cst_56 = arith.constant dense<0.000000e+00> : vector<12x512xf32>
    %102 = tpu.matmul %101, %99, %cst_56 {dimension_numbers = #tpu.dot_dimension_numbers<[1], [0], [0], [1], [0, 0, 1, 1], [], []>} : vector<12x12xf32>, vector<12x512xf32>, vector<12x512xf32> -> vector<12x512xf32>
    %103 = arith.addf %94, %102 : vector<12x512xf32>
    %c16_i32_57 = arith.constant 16 : i32
    %104 = tpu.dynamic_rotate %93 by %c16_i32_57 dim 1 : vector<12x512xf32>, i32 -> vector<12x512xf32>
    %c1_58 = arith.constant 1 : index
    %c0_59 = arith.constant 0 : index
    %c0_60 = arith.constant 0 : index
    %105 = vector.load %arg12[%c1_58, %c0_59, %c0_60] : memref<9x1x512xf32, #tpu.memory_space<vmem>>, vector<1x1x512xf32>
    %106 = vector.shape_cast %105 : vector<1x1x512xf32> to vector<1x512xf32>
    %107 = vector.broadcast %106 : vector<1x512xf32> to vector<12x512xf32>
    %108 = arith.mulf %104, %107 : vector<12x512xf32>
    %c1_61 = arith.constant 1 : index
    %c0_62 = arith.constant 0 : index
    %c0_63 = arith.constant 0 : index
    %109 = vector.load %arg4[%c1_61, %c0_62, %c0_63] : memref<9x12x12xf32, #tpu.memory_space<vmem>>, vector<1x12x12xf32>
    %110 = vector.shape_cast %109 : vector<1x12x12xf32> to vector<12x12xf32>
    %cst_64 = arith.constant dense<0.000000e+00> : vector<12x512xf32>
    %111 = tpu.matmul %110, %108, %cst_64 {dimension_numbers = #tpu.dot_dimension_numbers<[1], [0], [0], [1], [0, 0, 1, 1], [], []>} : vector<12x12xf32>, vector<12x512xf32>, vector<12x512xf32> -> vector<12x512xf32>
    %112 = arith.addf %103, %111 : vector<12x512xf32>
    %c15_i32_65 = arith.constant 15 : i32
    %113 = tpu.dynamic_rotate %93 by %c15_i32_65 dim 1 : vector<12x512xf32>, i32 -> vector<12x512xf32>
    %c2_66 = arith.constant 2 : index
    %c0_67 = arith.constant 0 : index
    %c0_68 = arith.constant 0 : index
    %114 = vector.load %arg12[%c2_66, %c0_67, %c0_68] : memref<9x1x512xf32, #tpu.memory_space<vmem>>, vector<1x1x512xf32>
    %115 = vector.shape_cast %114 : vector<1x1x512xf32> to vector<1x512xf32>
    %116 = vector.broadcast %115 : vector<1x512xf32> to vector<12x512xf32>
    %117 = arith.mulf %113, %116 : vector<12x512xf32>
    %c2_69 = arith.constant 2 : index
    %c0_70 = arith.constant 0 : index
    %c0_71 = arith.constant 0 : index
    %118 = vector.load %arg4[%c2_69, %c0_70, %c0_71] : memref<9x12x12xf32, #tpu.memory_space<vmem>>, vector<1x12x12xf32>
    %119 = vector.shape_cast %118 : vector<1x12x12xf32> to vector<12x12xf32>
    %cst_72 = arith.constant dense<0.000000e+00> : vector<12x512xf32>
    %120 = tpu.matmul %119, %117, %cst_72 {dimension_numbers = #tpu.dot_dimension_numbers<[1], [0], [0], [1], [0, 0, 1, 1], [], []>} : vector<12x12xf32>, vector<12x512xf32>, vector<12x512xf32> -> vector<12x512xf32>
    %121 = arith.addf %112, %120 : vector<12x512xf32>
    %c1_i32_73 = arith.constant 1 : i32
    %122 = tpu.dynamic_rotate %93 by %c1_i32_73 dim 1 : vector<12x512xf32>, i32 -> vector<12x512xf32>
    %c3_74 = arith.constant 3 : index
    %c0_75 = arith.constant 0 : index
    %c0_76 = arith.constant 0 : index
    %123 = vector.load %arg12[%c3_74, %c0_75, %c0_76] : memref<9x1x512xf32, #tpu.memory_space<vmem>>, vector<1x1x512xf32>
    %124 = vector.shape_cast %123 : vector<1x1x512xf32> to vector<1x512xf32>
    %125 = vector.broadcast %124 : vector<1x512xf32> to vector<12x512xf32>
    %126 = arith.mulf %122, %125 : vector<12x512xf32>
    %c3_77 = arith.constant 3 : index
    %c0_78 = arith.constant 0 : index
    %c0_79 = arith.constant 0 : index
    %127 = vector.load %arg4[%c3_77, %c0_78, %c0_79] : memref<9x12x12xf32, #tpu.memory_space<vmem>>, vector<1x12x12xf32>
    %128 = vector.shape_cast %127 : vector<1x12x12xf32> to vector<12x12xf32>
    %cst_80 = arith.constant dense<0.000000e+00> : vector<12x512xf32>
    %129 = tpu.matmul %128, %126, %cst_80 {dimension_numbers = #tpu.dot_dimension_numbers<[1], [0], [0], [1], [0, 0, 1, 1], [], []>} : vector<12x12xf32>, vector<12x512xf32>, vector<12x512xf32> -> vector<12x512xf32>
    %130 = arith.addf %121, %129 : vector<12x512xf32>
    %c4_81 = arith.constant 4 : index
    %c0_82 = arith.constant 0 : index
    %c0_83 = arith.constant 0 : index
    %131 = vector.load %arg4[%c4_81, %c0_82, %c0_83] : memref<9x12x12xf32, #tpu.memory_space<vmem>>, vector<1x12x12xf32>
    %132 = vector.shape_cast %131 : vector<1x12x12xf32> to vector<12x12xf32>
    %cst_84 = arith.constant dense<0.000000e+00> : vector<12x512xf32>
    %133 = tpu.matmul %132, %93, %cst_84 {dimension_numbers = #tpu.dot_dimension_numbers<[1], [0], [0], [1], [0, 0, 1, 1], [], []>} : vector<12x12xf32>, vector<12x512xf32>, vector<12x512xf32> -> vector<12x512xf32>
    %134 = arith.addf %130, %133 : vector<12x512xf32>
    %c511_i32_85 = arith.constant 511 : i32
    %135 = tpu.dynamic_rotate %93 by %c511_i32_85 dim 1 : vector<12x512xf32>, i32 -> vector<12x512xf32>
    %c5_86 = arith.constant 5 : index
    %c0_87 = arith.constant 0 : index
    %c0_88 = arith.constant 0 : index
    %136 = vector.load %arg12[%c5_86, %c0_87, %c0_88] : memref<9x1x512xf32, #tpu.memory_space<vmem>>, vector<1x1x512xf32>
    %137 = vector.shape_cast %136 : vector<1x1x512xf32> to vector<1x512xf32>
    %138 = vector.broadcast %137 : vector<1x512xf32> to vector<12x512xf32>
    %139 = arith.mulf %135, %138 : vector<12x512xf32>
    %c5_89 = arith.constant 5 : index
    %c0_90 = arith.constant 0 : index
    %c0_91 = arith.constant 0 : index
    %140 = vector.load %arg4[%c5_89, %c0_90, %c0_91] : memref<9x12x12xf32, #tpu.memory_space<vmem>>, vector<1x12x12xf32>
    %141 = vector.shape_cast %140 : vector<1x12x12xf32> to vector<12x12xf32>
    %cst_92 = arith.constant dense<0.000000e+00> : vector<12x512xf32>
    %142 = tpu.matmul %141, %139, %cst_92 {dimension_numbers = #tpu.dot_dimension_numbers<[1], [0], [0], [1], [0, 0, 1, 1], [], []>} : vector<12x12xf32>, vector<12x512xf32>, vector<12x512xf32> -> vector<12x512xf32>
    %143 = arith.addf %134, %142 : vector<12x512xf32>
    %c497_i32_93 = arith.constant 497 : i32
    %144 = tpu.dynamic_rotate %93 by %c497_i32_93 dim 1 : vector<12x512xf32>, i32 -> vector<12x512xf32>
    %c6_94 = arith.constant 6 : index
    %c0_95 = arith.constant 0 : index
    %c0_96 = arith.constant 0 : index
    %145 = vector.load %arg12[%c6_94, %c0_95, %c0_96] : memref<9x1x512xf32, #tpu.memory_space<vmem>>, vector<1x1x512xf32>
    %146 = vector.shape_cast %145 : vector<1x1x512xf32> to vector<1x512xf32>
    %147 = vector.broadcast %146 : vector<1x512xf32> to vector<12x512xf32>
    %148 = arith.mulf %144, %147 : vector<12x512xf32>
    %c6_97 = arith.constant 6 : index
    %c0_98 = arith.constant 0 : index
    %c0_99 = arith.constant 0 : index
    %149 = vector.load %arg4[%c6_97, %c0_98, %c0_99] : memref<9x12x12xf32, #tpu.memory_space<vmem>>, vector<1x12x12xf32>
    %150 = vector.shape_cast %149 : vector<1x12x12xf32> to vector<12x12xf32>
    %cst_100 = arith.constant dense<0.000000e+00> : vector<12x512xf32>
    %151 = tpu.matmul %150, %148, %cst_100 {dimension_numbers = #tpu.dot_dimension_numbers<[1], [0], [0], [1], [0, 0, 1, 1], [], []>} : vector<12x12xf32>, vector<12x512xf32>, vector<12x512xf32> -> vector<12x512xf32>
    %152 = arith.addf %143, %151 : vector<12x512xf32>
    %c496_i32_101 = arith.constant 496 : i32
    %153 = tpu.dynamic_rotate %93 by %c496_i32_101 dim 1 : vector<12x512xf32>, i32 -> vector<12x512xf32>
    %c7_102 = arith.constant 7 : index
    %c0_103 = arith.constant 0 : index
    %c0_104 = arith.constant 0 : index
    %154 = vector.load %arg12[%c7_102, %c0_103, %c0_104] : memref<9x1x512xf32, #tpu.memory_space<vmem>>, vector<1x1x512xf32>
    %155 = vector.shape_cast %154 : vector<1x1x512xf32> to vector<1x512xf32>
    %156 = vector.broadcast %155 : vector<1x512xf32> to vector<12x512xf32>
    %157 = arith.mulf %153, %156 : vector<12x512xf32>
    %c7_105 = arith.constant 7 : index
    %c0_106 = arith.constant 0 : index
    %c0_107 = arith.constant 0 : index
    %158 = vector.load %arg4[%c7_105, %c0_106, %c0_107] : memref<9x12x12xf32, #tpu.memory_space<vmem>>, vector<1x12x12xf32>
    %159 = vector.shape_cast %158 : vector<1x12x12xf32> to vector<12x12xf32>
    %cst_108 = arith.constant dense<0.000000e+00> : vector<12x512xf32>
    %160 = tpu.matmul %159, %157, %cst_108 {dimension_numbers = #tpu.dot_dimension_numbers<[1], [0], [0], [1], [0, 0, 1, 1], [], []>} : vector<12x12xf32>, vector<12x512xf32>, vector<12x512xf32> -> vector<12x512xf32>
    %161 = arith.addf %152, %160 : vector<12x512xf32>
    %c495_i32_109 = arith.constant 495 : i32
    %162 = tpu.dynamic_rotate %93 by %c495_i32_109 dim 1 : vector<12x512xf32>, i32 -> vector<12x512xf32>
    %c8_110 = arith.constant 8 : index
    %c0_111 = arith.constant 0 : index
    %c0_112 = arith.constant 0 : index
    %163 = vector.load %arg12[%c8_110, %c0_111, %c0_112] : memref<9x1x512xf32, #tpu.memory_space<vmem>>, vector<1x1x512xf32>
    %164 = vector.shape_cast %163 : vector<1x1x512xf32> to vector<1x512xf32>
    %165 = vector.broadcast %164 : vector<1x512xf32> to vector<12x512xf32>
    %166 = arith.mulf %162, %165 : vector<12x512xf32>
    %c8_113 = arith.constant 8 : index
    %c0_114 = arith.constant 0 : index
    %c0_115 = arith.constant 0 : index
    %167 = vector.load %arg4[%c8_113, %c0_114, %c0_115] : memref<9x12x12xf32, #tpu.memory_space<vmem>>, vector<1x12x12xf32>
    %168 = vector.shape_cast %167 : vector<1x12x12xf32> to vector<12x12xf32>
    %cst_116 = arith.constant dense<0.000000e+00> : vector<12x512xf32>
    %169 = tpu.matmul %168, %166, %cst_116 {dimension_numbers = #tpu.dot_dimension_numbers<[1], [0], [0], [1], [0, 0, 1, 1], [], []>} : vector<12x12xf32>, vector<12x512xf32>, vector<12x512xf32> -> vector<12x512xf32>
    %170 = arith.addf %161, %169 : vector<12x512xf32>
    %c0_117 = arith.constant 0 : index
    %c0_118 = arith.constant 0 : index
    %171 = vector.load %arg5[%c0_117, %c0_118] : memref<12x1xf32, #tpu.memory_space<vmem>>, vector<12x1xf32>
    %172 = vector.broadcast %171 : vector<12x1xf32> to vector<12x512xf32>
    %173 = arith.addf %170, %172 : vector<12x512xf32>
    %cst_119 = arith.constant 0.000000e+00 : f32
    %174 = vector.broadcast %cst_119 : f32 to vector<12x512xf32>
    %175 = arith.maximumf %173, %174 : vector<12x512xf32>
    %c511_i32_120 = arith.constant 511 : i32
    %176 = tpu.dynamic_rotate %175 by %c511_i32_120 dim 1 : vector<12x512xf32>, i32 -> vector<12x512xf32>
    %177 = arith.maximumf %175, %176 : vector<12x512xf32>
    %c496_i32_121 = arith.constant 496 : i32
    %178 = tpu.dynamic_rotate %177 by %c496_i32_121 dim 1 : vector<12x512xf32>, i32 -> vector<12x512xf32>
    %179 = arith.maximumf %177, %178 : vector<12x512xf32>
    %c0_122 = arith.constant 0 : index
    %c0_123 = arith.constant 0 : index
    %180 = vector.load %arg14[%c0_122, %c0_123] : memref<512x128xf32, #tpu.memory_space<vmem>>, vector<512x128xf32>
    %cst_124 = arith.constant dense<0.000000e+00> : vector<12x128xf32>
    %181 = tpu.matmul %179, %180, %cst_124 {dimension_numbers = #tpu.dot_dimension_numbers<[1], [0], [0], [1], [0, 0, 1, 1], [], []>} : vector<12x512xf32>, vector<512x128xf32>, vector<12x128xf32> -> vector<12x128xf32>
    %cst_125 = arith.constant 0.000000e+00 : f32
    %182 = vector.broadcast %cst_125 : f32 to vector<24x128xf32>
    %c9_i32 = arith.constant 9 : i32
    %183 = tpu.dynamic_rotate %181 by %c9_i32 dim 1 : vector<12x128xf32>, i32 -> vector<12x128xf32>
    %c0_126 = arith.constant 0 : index
    %c0_127 = arith.constant 0 : index
    %c0_128 = arith.constant 0 : index
    %184 = vector.load %arg13[%c0_126, %c0_127, %c0_128] : memref<9x1x128xf32, #tpu.memory_space<vmem>>, vector<1x1x128xf32>
    %185 = vector.shape_cast %184 : vector<1x1x128xf32> to vector<1x128xf32>
    %186 = vector.broadcast %185 : vector<1x128xf32> to vector<12x128xf32>
    %187 = arith.mulf %183, %186 : vector<12x128xf32>
    %c0_129 = arith.constant 0 : index
    %c0_130 = arith.constant 0 : index
    %c0_131 = arith.constant 0 : index
    %188 = vector.load %arg6[%c0_129, %c0_130, %c0_131] : memref<9x24x12xf32, #tpu.memory_space<vmem>>, vector<1x24x12xf32>
    %189 = vector.shape_cast %188 : vector<1x24x12xf32> to vector<24x12xf32>
    %cst_132 = arith.constant dense<0.000000e+00> : vector<24x128xf32>
    %190 = tpu.matmul %189, %187, %cst_132 {dimension_numbers = #tpu.dot_dimension_numbers<[1], [0], [0], [1], [0, 0, 1, 1], [], []>} : vector<24x12xf32>, vector<12x128xf32>, vector<24x128xf32> -> vector<24x128xf32>
    %191 = arith.addf %182, %190 : vector<24x128xf32>
    %c8_i32 = arith.constant 8 : i32
    %192 = tpu.dynamic_rotate %181 by %c8_i32 dim 1 : vector<12x128xf32>, i32 -> vector<12x128xf32>
    %c1_133 = arith.constant 1 : index
    %c0_134 = arith.constant 0 : index
    %c0_135 = arith.constant 0 : index
    %193 = vector.load %arg13[%c1_133, %c0_134, %c0_135] : memref<9x1x128xf32, #tpu.memory_space<vmem>>, vector<1x1x128xf32>
    %194 = vector.shape_cast %193 : vector<1x1x128xf32> to vector<1x128xf32>
    %195 = vector.broadcast %194 : vector<1x128xf32> to vector<12x128xf32>
    %196 = arith.mulf %192, %195 : vector<12x128xf32>
    %c1_136 = arith.constant 1 : index
    %c0_137 = arith.constant 0 : index
    %c0_138 = arith.constant 0 : index
    %197 = vector.load %arg6[%c1_136, %c0_137, %c0_138] : memref<9x24x12xf32, #tpu.memory_space<vmem>>, vector<1x24x12xf32>
    %198 = vector.shape_cast %197 : vector<1x24x12xf32> to vector<24x12xf32>
    %cst_139 = arith.constant dense<0.000000e+00> : vector<24x128xf32>
    %199 = tpu.matmul %198, %196, %cst_139 {dimension_numbers = #tpu.dot_dimension_numbers<[1], [0], [0], [1], [0, 0, 1, 1], [], []>} : vector<24x12xf32>, vector<12x128xf32>, vector<24x128xf32> -> vector<24x128xf32>
    %200 = arith.addf %191, %199 : vector<24x128xf32>
    %c7_i32 = arith.constant 7 : i32
    %201 = tpu.dynamic_rotate %181 by %c7_i32 dim 1 : vector<12x128xf32>, i32 -> vector<12x128xf32>
    %c2_140 = arith.constant 2 : index
    %c0_141 = arith.constant 0 : index
    %c0_142 = arith.constant 0 : index
    %202 = vector.load %arg13[%c2_140, %c0_141, %c0_142] : memref<9x1x128xf32, #tpu.memory_space<vmem>>, vector<1x1x128xf32>
    %203 = vector.shape_cast %202 : vector<1x1x128xf32> to vector<1x128xf32>
    %204 = vector.broadcast %203 : vector<1x128xf32> to vector<12x128xf32>
    %205 = arith.mulf %201, %204 : vector<12x128xf32>
    %c2_143 = arith.constant 2 : index
    %c0_144 = arith.constant 0 : index
    %c0_145 = arith.constant 0 : index
    %206 = vector.load %arg6[%c2_143, %c0_144, %c0_145] : memref<9x24x12xf32, #tpu.memory_space<vmem>>, vector<1x24x12xf32>
    %207 = vector.shape_cast %206 : vector<1x24x12xf32> to vector<24x12xf32>
    %cst_146 = arith.constant dense<0.000000e+00> : vector<24x128xf32>
    %208 = tpu.matmul %207, %205, %cst_146 {dimension_numbers = #tpu.dot_dimension_numbers<[1], [0], [0], [1], [0, 0, 1, 1], [], []>} : vector<24x12xf32>, vector<12x128xf32>, vector<24x128xf32> -> vector<24x128xf32>
    %209 = arith.addf %200, %208 : vector<24x128xf32>
    %c1_i32_147 = arith.constant 1 : i32
    %210 = tpu.dynamic_rotate %181 by %c1_i32_147 dim 1 : vector<12x128xf32>, i32 -> vector<12x128xf32>
    %c3_148 = arith.constant 3 : index
    %c0_149 = arith.constant 0 : index
    %c0_150 = arith.constant 0 : index
    %211 = vector.load %arg13[%c3_148, %c0_149, %c0_150] : memref<9x1x128xf32, #tpu.memory_space<vmem>>, vector<1x1x128xf32>
    %212 = vector.shape_cast %211 : vector<1x1x128xf32> to vector<1x128xf32>
    %213 = vector.broadcast %212 : vector<1x128xf32> to vector<12x128xf32>
    %214 = arith.mulf %210, %213 : vector<12x128xf32>
    %c3_151 = arith.constant 3 : index
    %c0_152 = arith.constant 0 : index
    %c0_153 = arith.constant 0 : index
    %215 = vector.load %arg6[%c3_151, %c0_152, %c0_153] : memref<9x24x12xf32, #tpu.memory_space<vmem>>, vector<1x24x12xf32>
    %216 = vector.shape_cast %215 : vector<1x24x12xf32> to vector<24x12xf32>
    %cst_154 = arith.constant dense<0.000000e+00> : vector<24x128xf32>
    %217 = tpu.matmul %216, %214, %cst_154 {dimension_numbers = #tpu.dot_dimension_numbers<[1], [0], [0], [1], [0, 0, 1, 1], [], []>} : vector<24x12xf32>, vector<12x128xf32>, vector<24x128xf32> -> vector<24x128xf32>
    %218 = arith.addf %209, %217 : vector<24x128xf32>
    %c4_155 = arith.constant 4 : index
    %c0_156 = arith.constant 0 : index
    %c0_157 = arith.constant 0 : index
    %219 = vector.load %arg6[%c4_155, %c0_156, %c0_157] : memref<9x24x12xf32, #tpu.memory_space<vmem>>, vector<1x24x12xf32>
    %220 = vector.shape_cast %219 : vector<1x24x12xf32> to vector<24x12xf32>
    %cst_158 = arith.constant dense<0.000000e+00> : vector<24x128xf32>
    %221 = tpu.matmul %220, %181, %cst_158 {dimension_numbers = #tpu.dot_dimension_numbers<[1], [0], [0], [1], [0, 0, 1, 1], [], []>} : vector<24x12xf32>, vector<12x128xf32>, vector<24x128xf32> -> vector<24x128xf32>
    %222 = arith.addf %218, %221 : vector<24x128xf32>
    %c127_i32 = arith.constant 127 : i32
    %223 = tpu.dynamic_rotate %181 by %c127_i32 dim 1 : vector<12x128xf32>, i32 -> vector<12x128xf32>
    %c5_159 = arith.constant 5 : index
    %c0_160 = arith.constant 0 : index
    %c0_161 = arith.constant 0 : index
    %224 = vector.load %arg13[%c5_159, %c0_160, %c0_161] : memref<9x1x128xf32, #tpu.memory_space<vmem>>, vector<1x1x128xf32>
    %225 = vector.shape_cast %224 : vector<1x1x128xf32> to vector<1x128xf32>
    %226 = vector.broadcast %225 : vector<1x128xf32> to vector<12x128xf32>
    %227 = arith.mulf %223, %226 : vector<12x128xf32>
    %c5_162 = arith.constant 5 : index
    %c0_163 = arith.constant 0 : index
    %c0_164 = arith.constant 0 : index
    %228 = vector.load %arg6[%c5_162, %c0_163, %c0_164] : memref<9x24x12xf32, #tpu.memory_space<vmem>>, vector<1x24x12xf32>
    %229 = vector.shape_cast %228 : vector<1x24x12xf32> to vector<24x12xf32>
    %cst_165 = arith.constant dense<0.000000e+00> : vector<24x128xf32>
    %230 = tpu.matmul %229, %227, %cst_165 {dimension_numbers = #tpu.dot_dimension_numbers<[1], [0], [0], [1], [0, 0, 1, 1], [], []>} : vector<24x12xf32>, vector<12x128xf32>, vector<24x128xf32> -> vector<24x128xf32>
    %231 = arith.addf %222, %230 : vector<24x128xf32>
    %c121_i32 = arith.constant 121 : i32
    %232 = tpu.dynamic_rotate %181 by %c121_i32 dim 1 : vector<12x128xf32>, i32 -> vector<12x128xf32>
    %c6_166 = arith.constant 6 : index
    %c0_167 = arith.constant 0 : index
    %c0_168 = arith.constant 0 : index
    %233 = vector.load %arg13[%c6_166, %c0_167, %c0_168] : memref<9x1x128xf32, #tpu.memory_space<vmem>>, vector<1x1x128xf32>
    %234 = vector.shape_cast %233 : vector<1x1x128xf32> to vector<1x128xf32>
    %235 = vector.broadcast %234 : vector<1x128xf32> to vector<12x128xf32>
    %236 = arith.mulf %232, %235 : vector<12x128xf32>
    %c6_169 = arith.constant 6 : index
    %c0_170 = arith.constant 0 : index
    %c0_171 = arith.constant 0 : index
    %237 = vector.load %arg6[%c6_169, %c0_170, %c0_171] : memref<9x24x12xf32, #tpu.memory_space<vmem>>, vector<1x24x12xf32>
    %238 = vector.shape_cast %237 : vector<1x24x12xf32> to vector<24x12xf32>
    %cst_172 = arith.constant dense<0.000000e+00> : vector<24x128xf32>
    %239 = tpu.matmul %238, %236, %cst_172 {dimension_numbers = #tpu.dot_dimension_numbers<[1], [0], [0], [1], [0, 0, 1, 1], [], []>} : vector<24x12xf32>, vector<12x128xf32>, vector<24x128xf32> -> vector<24x128xf32>
    %240 = arith.addf %231, %239 : vector<24x128xf32>
    %c120_i32 = arith.constant 120 : i32
    %241 = tpu.dynamic_rotate %181 by %c120_i32 dim 1 : vector<12x128xf32>, i32 -> vector<12x128xf32>
    %c7_173 = arith.constant 7 : index
    %c0_174 = arith.constant 0 : index
    %c0_175 = arith.constant 0 : index
    %242 = vector.load %arg13[%c7_173, %c0_174, %c0_175] : memref<9x1x128xf32, #tpu.memory_space<vmem>>, vector<1x1x128xf32>
    %243 = vector.shape_cast %242 : vector<1x1x128xf32> to vector<1x128xf32>
    %244 = vector.broadcast %243 : vector<1x128xf32> to vector<12x128xf32>
    %245 = arith.mulf %241, %244 : vector<12x128xf32>
    %c7_176 = arith.constant 7 : index
    %c0_177 = arith.constant 0 : index
    %c0_178 = arith.constant 0 : index
    %246 = vector.load %arg6[%c7_176, %c0_177, %c0_178] : memref<9x24x12xf32, #tpu.memory_space<vmem>>, vector<1x24x12xf32>
    %247 = vector.shape_cast %246 : vector<1x24x12xf32> to vector<24x12xf32>
    %cst_179 = arith.constant dense<0.000000e+00> : vector<24x128xf32>
    %248 = tpu.matmul %247, %245, %cst_179 {dimension_numbers = #tpu.dot_dimension_numbers<[1], [0], [0], [1], [0, 0, 1, 1], [], []>} : vector<24x12xf32>, vector<12x128xf32>, vector<24x128xf32> -> vector<24x128xf32>
    %249 = arith.addf %240, %248 : vector<24x128xf32>
    %c119_i32 = arith.constant 119 : i32
    %250 = tpu.dynamic_rotate %181 by %c119_i32 dim 1 : vector<12x128xf32>, i32 -> vector<12x128xf32>
    %c8_180 = arith.constant 8 : index
    %c0_181 = arith.constant 0 : index
    %c0_182 = arith.constant 0 : index
    %251 = vector.load %arg13[%c8_180, %c0_181, %c0_182] : memref<9x1x128xf32, #tpu.memory_space<vmem>>, vector<1x1x128xf32>
    %252 = vector.shape_cast %251 : vector<1x1x128xf32> to vector<1x128xf32>
    %253 = vector.broadcast %252 : vector<1x128xf32> to vector<12x128xf32>
    %254 = arith.mulf %250, %253 : vector<12x128xf32>
    %c8_183 = arith.constant 8 : index
    %c0_184 = arith.constant 0 : index
    %c0_185 = arith.constant 0 : index
    %255 = vector.load %arg6[%c8_183, %c0_184, %c0_185] : memref<9x24x12xf32, #tpu.memory_space<vmem>>, vector<1x24x12xf32>
    %256 = vector.shape_cast %255 : vector<1x24x12xf32> to vector<24x12xf32>
    %cst_186 = arith.constant dense<0.000000e+00> : vector<24x128xf32>
    %257 = tpu.matmul %256, %254, %cst_186 {dimension_numbers = #tpu.dot_dimension_numbers<[1], [0], [0], [1], [0, 0, 1, 1], [], []>} : vector<24x12xf32>, vector<12x128xf32>, vector<24x128xf32> -> vector<24x128xf32>
    %258 = arith.addf %249, %257 : vector<24x128xf32>
    %c0_187 = arith.constant 0 : index
    %c0_188 = arith.constant 0 : index
    %259 = vector.load %arg7[%c0_187, %c0_188] : memref<24x1xf32, #tpu.memory_space<vmem>>, vector<24x1xf32>
    %260 = vector.broadcast %259 : vector<24x1xf32> to vector<24x128xf32>
    %261 = arith.addf %258, %260 : vector<24x128xf32>
    %cst_189 = arith.constant 0.000000e+00 : f32
    %262 = vector.broadcast %cst_189 : f32 to vector<24x128xf32>
    %263 = arith.maximumf %261, %262 : vector<24x128xf32>
    %cst_190 = arith.constant 0.000000e+00 : f32
    %264 = vector.broadcast %cst_190 : f32 to vector<24x128xf32>
    %c9_i32_191 = arith.constant 9 : i32
    %265 = tpu.dynamic_rotate %263 by %c9_i32_191 dim 1 : vector<24x128xf32>, i32 -> vector<24x128xf32>
    %c0_192 = arith.constant 0 : index
    %c0_193 = arith.constant 0 : index
    %c0_194 = arith.constant 0 : index
    %266 = vector.load %arg13[%c0_192, %c0_193, %c0_194] : memref<9x1x128xf32, #tpu.memory_space<vmem>>, vector<1x1x128xf32>
    %267 = vector.shape_cast %266 : vector<1x1x128xf32> to vector<1x128xf32>
    %268 = vector.broadcast %267 : vector<1x128xf32> to vector<24x128xf32>
    %269 = arith.mulf %265, %268 : vector<24x128xf32>
    %c0_195 = arith.constant 0 : index
    %c0_196 = arith.constant 0 : index
    %c0_197 = arith.constant 0 : index
    %270 = vector.load %arg8[%c0_195, %c0_196, %c0_197] : memref<9x24x24xf32, #tpu.memory_space<vmem>>, vector<1x24x24xf32>
    %271 = vector.shape_cast %270 : vector<1x24x24xf32> to vector<24x24xf32>
    %cst_198 = arith.constant dense<0.000000e+00> : vector<24x128xf32>
    %272 = tpu.matmul %271, %269, %cst_198 {dimension_numbers = #tpu.dot_dimension_numbers<[1], [0], [0], [1], [0, 0, 1, 1], [], []>} : vector<24x24xf32>, vector<24x128xf32>, vector<24x128xf32> -> vector<24x128xf32>
    %273 = arith.addf %264, %272 : vector<24x128xf32>
    %c8_i32_199 = arith.constant 8 : i32
    %274 = tpu.dynamic_rotate %263 by %c8_i32_199 dim 1 : vector<24x128xf32>, i32 -> vector<24x128xf32>
    %c1_200 = arith.constant 1 : index
    %c0_201 = arith.constant 0 : index
    %c0_202 = arith.constant 0 : index
    %275 = vector.load %arg13[%c1_200, %c0_201, %c0_202] : memref<9x1x128xf32, #tpu.memory_space<vmem>>, vector<1x1x128xf32>
    %276 = vector.shape_cast %275 : vector<1x1x128xf32> to vector<1x128xf32>
    %277 = vector.broadcast %276 : vector<1x128xf32> to vector<24x128xf32>
    %278 = arith.mulf %274, %277 : vector<24x128xf32>
    %c1_203 = arith.constant 1 : index
    %c0_204 = arith.constant 0 : index
    %c0_205 = arith.constant 0 : index
    %279 = vector.load %arg8[%c1_203, %c0_204, %c0_205] : memref<9x24x24xf32, #tpu.memory_space<vmem>>, vector<1x24x24xf32>
    %280 = vector.shape_cast %279 : vector<1x24x24xf32> to vector<24x24xf32>
    %cst_206 = arith.constant dense<0.000000e+00> : vector<24x128xf32>
    %281 = tpu.matmul %280, %278, %cst_206 {dimension_numbers = #tpu.dot_dimension_numbers<[1], [0], [0], [1], [0, 0, 1, 1], [], []>} : vector<24x24xf32>, vector<24x128xf32>, vector<24x128xf32> -> vector<24x128xf32>
    %282 = arith.addf %273, %281 : vector<24x128xf32>
    %c7_i32_207 = arith.constant 7 : i32
    %283 = tpu.dynamic_rotate %263 by %c7_i32_207 dim 1 : vector<24x128xf32>, i32 -> vector<24x128xf32>
    %c2_208 = arith.constant 2 : index
    %c0_209 = arith.constant 0 : index
    %c0_210 = arith.constant 0 : index
    %284 = vector.load %arg13[%c2_208, %c0_209, %c0_210] : memref<9x1x128xf32, #tpu.memory_space<vmem>>, vector<1x1x128xf32>
    %285 = vector.shape_cast %284 : vector<1x1x128xf32> to vector<1x128xf32>
    %286 = vector.broadcast %285 : vector<1x128xf32> to vector<24x128xf32>
    %287 = arith.mulf %283, %286 : vector<24x128xf32>
    %c2_211 = arith.constant 2 : index
    %c0_212 = arith.constant 0 : index
    %c0_213 = arith.constant 0 : index
    %288 = vector.load %arg8[%c2_211, %c0_212, %c0_213] : memref<9x24x24xf32, #tpu.memory_space<vmem>>, vector<1x24x24xf32>
    %289 = vector.shape_cast %288 : vector<1x24x24xf32> to vector<24x24xf32>
    %cst_214 = arith.constant dense<0.000000e+00> : vector<24x128xf32>
    %290 = tpu.matmul %289, %287, %cst_214 {dimension_numbers = #tpu.dot_dimension_numbers<[1], [0], [0], [1], [0, 0, 1, 1], [], []>} : vector<24x24xf32>, vector<24x128xf32>, vector<24x128xf32> -> vector<24x128xf32>
    %291 = arith.addf %282, %290 : vector<24x128xf32>
    %c1_i32_215 = arith.constant 1 : i32
    %292 = tpu.dynamic_rotate %263 by %c1_i32_215 dim 1 : vector<24x128xf32>, i32 -> vector<24x128xf32>
    %c3_216 = arith.constant 3 : index
    %c0_217 = arith.constant 0 : index
    %c0_218 = arith.constant 0 : index
    %293 = vector.load %arg13[%c3_216, %c0_217, %c0_218] : memref<9x1x128xf32, #tpu.memory_space<vmem>>, vector<1x1x128xf32>
    %294 = vector.shape_cast %293 : vector<1x1x128xf32> to vector<1x128xf32>
    %295 = vector.broadcast %294 : vector<1x128xf32> to vector<24x128xf32>
    %296 = arith.mulf %292, %295 : vector<24x128xf32>
    %c3_219 = arith.constant 3 : index
    %c0_220 = arith.constant 0 : index
    %c0_221 = arith.constant 0 : index
    %297 = vector.load %arg8[%c3_219, %c0_220, %c0_221] : memref<9x24x24xf32, #tpu.memory_space<vmem>>, vector<1x24x24xf32>
    %298 = vector.shape_cast %297 : vector<1x24x24xf32> to vector<24x24xf32>
    %cst_222 = arith.constant dense<0.000000e+00> : vector<24x128xf32>
    %299 = tpu.matmul %298, %296, %cst_222 {dimension_numbers = #tpu.dot_dimension_numbers<[1], [0], [0], [1], [0, 0, 1, 1], [], []>} : vector<24x24xf32>, vector<24x128xf32>, vector<24x128xf32> -> vector<24x128xf32>
    %300 = arith.addf %291, %299 : vector<24x128xf32>
    %c4_223 = arith.constant 4 : index
    %c0_224 = arith.constant 0 : index
    %c0_225 = arith.constant 0 : index
    %301 = vector.load %arg8[%c4_223, %c0_224, %c0_225] : memref<9x24x24xf32, #tpu.memory_space<vmem>>, vector<1x24x24xf32>
    %302 = vector.shape_cast %301 : vector<1x24x24xf32> to vector<24x24xf32>
    %cst_226 = arith.constant dense<0.000000e+00> : vector<24x128xf32>
    %303 = tpu.matmul %302, %263, %cst_226 {dimension_numbers = #tpu.dot_dimension_numbers<[1], [0], [0], [1], [0, 0, 1, 1], [], []>} : vector<24x24xf32>, vector<24x128xf32>, vector<24x128xf32> -> vector<24x128xf32>
    %304 = arith.addf %300, %303 : vector<24x128xf32>
    %c127_i32_227 = arith.constant 127 : i32
    %305 = tpu.dynamic_rotate %263 by %c127_i32_227 dim 1 : vector<24x128xf32>, i32 -> vector<24x128xf32>
    %c5_228 = arith.constant 5 : index
    %c0_229 = arith.constant 0 : index
    %c0_230 = arith.constant 0 : index
    %306 = vector.load %arg13[%c5_228, %c0_229, %c0_230] : memref<9x1x128xf32, #tpu.memory_space<vmem>>, vector<1x1x128xf32>
    %307 = vector.shape_cast %306 : vector<1x1x128xf32> to vector<1x128xf32>
    %308 = vector.broadcast %307 : vector<1x128xf32> to vector<24x128xf32>
    %309 = arith.mulf %305, %308 : vector<24x128xf32>
    %c5_231 = arith.constant 5 : index
    %c0_232 = arith.constant 0 : index
    %c0_233 = arith.constant 0 : index
    %310 = vector.load %arg8[%c5_231, %c0_232, %c0_233] : memref<9x24x24xf32, #tpu.memory_space<vmem>>, vector<1x24x24xf32>
    %311 = vector.shape_cast %310 : vector<1x24x24xf32> to vector<24x24xf32>
    %cst_234 = arith.constant dense<0.000000e+00> : vector<24x128xf32>
    %312 = tpu.matmul %311, %309, %cst_234 {dimension_numbers = #tpu.dot_dimension_numbers<[1], [0], [0], [1], [0, 0, 1, 1], [], []>} : vector<24x24xf32>, vector<24x128xf32>, vector<24x128xf32> -> vector<24x128xf32>
    %313 = arith.addf %304, %312 : vector<24x128xf32>
    %c121_i32_235 = arith.constant 121 : i32
    %314 = tpu.dynamic_rotate %263 by %c121_i32_235 dim 1 : vector<24x128xf32>, i32 -> vector<24x128xf32>
    %c6_236 = arith.constant 6 : index
    %c0_237 = arith.constant 0 : index
    %c0_238 = arith.constant 0 : index
    %315 = vector.load %arg13[%c6_236, %c0_237, %c0_238] : memref<9x1x128xf32, #tpu.memory_space<vmem>>, vector<1x1x128xf32>
    %316 = vector.shape_cast %315 : vector<1x1x128xf32> to vector<1x128xf32>
    %317 = vector.broadcast %316 : vector<1x128xf32> to vector<24x128xf32>
    %318 = arith.mulf %314, %317 : vector<24x128xf32>
    %c6_239 = arith.constant 6 : index
    %c0_240 = arith.constant 0 : index
    %c0_241 = arith.constant 0 : index
    %319 = vector.load %arg8[%c6_239, %c0_240, %c0_241] : memref<9x24x24xf32, #tpu.memory_space<vmem>>, vector<1x24x24xf32>
    %320 = vector.shape_cast %319 : vector<1x24x24xf32> to vector<24x24xf32>
    %cst_242 = arith.constant dense<0.000000e+00> : vector<24x128xf32>
    %321 = tpu.matmul %320, %318, %cst_242 {dimension_numbers = #tpu.dot_dimension_numbers<[1], [0], [0], [1], [0, 0, 1, 1], [], []>} : vector<24x24xf32>, vector<24x128xf32>, vector<24x128xf32> -> vector<24x128xf32>
    %322 = arith.addf %313, %321 : vector<24x128xf32>
    %c120_i32_243 = arith.constant 120 : i32
    %323 = tpu.dynamic_rotate %263 by %c120_i32_243 dim 1 : vector<24x128xf32>, i32 -> vector<24x128xf32>
    %c7_244 = arith.constant 7 : index
    %c0_245 = arith.constant 0 : index
    %c0_246 = arith.constant 0 : index
    %324 = vector.load %arg13[%c7_244, %c0_245, %c0_246] : memref<9x1x128xf32, #tpu.memory_space<vmem>>, vector<1x1x128xf32>
    %325 = vector.shape_cast %324 : vector<1x1x128xf32> to vector<1x128xf32>
    %326 = vector.broadcast %325 : vector<1x128xf32> to vector<24x128xf32>
    %327 = arith.mulf %323, %326 : vector<24x128xf32>
    %c7_247 = arith.constant 7 : index
    %c0_248 = arith.constant 0 : index
    %c0_249 = arith.constant 0 : index
    %328 = vector.load %arg8[%c7_247, %c0_248, %c0_249] : memref<9x24x24xf32, #tpu.memory_space<vmem>>, vector<1x24x24xf32>
    %329 = vector.shape_cast %328 : vector<1x24x24xf32> to vector<24x24xf32>
    %cst_250 = arith.constant dense<0.000000e+00> : vector<24x128xf32>
    %330 = tpu.matmul %329, %327, %cst_250 {dimension_numbers = #tpu.dot_dimension_numbers<[1], [0], [0], [1], [0, 0, 1, 1], [], []>} : vector<24x24xf32>, vector<24x128xf32>, vector<24x128xf32> -> vector<24x128xf32>
    %331 = arith.addf %322, %330 : vector<24x128xf32>
    %c119_i32_251 = arith.constant 119 : i32
    %332 = tpu.dynamic_rotate %263 by %c119_i32_251 dim 1 : vector<24x128xf32>, i32 -> vector<24x128xf32>
    %c8_252 = arith.constant 8 : index
    %c0_253 = arith.constant 0 : index
    %c0_254 = arith.constant 0 : index
    %333 = vector.load %arg13[%c8_252, %c0_253, %c0_254] : memref<9x1x128xf32, #tpu.memory_space<vmem>>, vector<1x1x128xf32>
    %334 = vector.shape_cast %333 : vector<1x1x128xf32> to vector<1x128xf32>
    %335 = vector.broadcast %334 : vector<1x128xf32> to vector<24x128xf32>
    %336 = arith.mulf %332, %335 : vector<24x128xf32>
    %c8_255 = arith.constant 8 : index
    %c0_256 = arith.constant 0 : index
    %c0_257 = arith.constant 0 : index
    %337 = vector.load %arg8[%c8_255, %c0_256, %c0_257] : memref<9x24x24xf32, #tpu.memory_space<vmem>>, vector<1x24x24xf32>
    %338 = vector.shape_cast %337 : vector<1x24x24xf32> to vector<24x24xf32>
    %cst_258 = arith.constant dense<0.000000e+00> : vector<24x128xf32>
    %339 = tpu.matmul %338, %336, %cst_258 {dimension_numbers = #tpu.dot_dimension_numbers<[1], [0], [0], [1], [0, 0, 1, 1], [], []>} : vector<24x24xf32>, vector<24x128xf32>, vector<24x128xf32> -> vector<24x128xf32>
    %340 = arith.addf %331, %339 : vector<24x128xf32>
    %c0_259 = arith.constant 0 : index
    %c0_260 = arith.constant 0 : index
    %341 = vector.load %arg9[%c0_259, %c0_260] : memref<24x1xf32, #tpu.memory_space<vmem>>, vector<24x1xf32>
    %342 = vector.broadcast %341 : vector<24x1xf32> to vector<24x128xf32>
    %343 = arith.addf %340, %342 : vector<24x128xf32>
    %cst_261 = arith.constant 0.000000e+00 : f32
    %344 = vector.broadcast %cst_261 : f32 to vector<24x128xf32>
    %345 = arith.maximumf %343, %344 : vector<24x128xf32>
    %c0_262 = arith.constant 0 : index
    %c0_263 = arith.constant 0 : index
    %346 = vector.load %arg15[%c0_262, %c0_263] : memref<128x512xf32, #tpu.memory_space<vmem>>, vector<128x512xf32>
    %cst_264 = arith.constant dense<0.000000e+00> : vector<24x512xf32>
    %347 = tpu.matmul %345, %346, %cst_264 {dimension_numbers = #tpu.dot_dimension_numbers<[1], [0], [0], [1], [0, 0, 1, 1], [], []>} : vector<24x128xf32>, vector<128x512xf32>, vector<24x512xf32> -> vector<24x512xf32>
    %cst_265 = arith.constant 0.000000e+00 : f32
    %348 = vector.broadcast %cst_265 : f32 to vector<1x512xf32>
    %c17_i32_266 = arith.constant 17 : i32
    %349 = tpu.dynamic_rotate %347 by %c17_i32_266 dim 1 : vector<24x512xf32>, i32 -> vector<24x512xf32>
    %c0_267 = arith.constant 0 : index
    %c0_268 = arith.constant 0 : index
    %c0_269 = arith.constant 0 : index
    %350 = vector.load %arg12[%c0_267, %c0_268, %c0_269] : memref<9x1x512xf32, #tpu.memory_space<vmem>>, vector<1x1x512xf32>
    %351 = vector.shape_cast %350 : vector<1x1x512xf32> to vector<1x512xf32>
    %352 = vector.broadcast %351 : vector<1x512xf32> to vector<24x512xf32>
    %353 = arith.mulf %349, %352 : vector<24x512xf32>
    %c0_270 = arith.constant 0 : index
    %c0_271 = arith.constant 0 : index
    %c0_272 = arith.constant 0 : index
    %354 = vector.load %arg10[%c0_270, %c0_271, %c0_272] : memref<9x1x24xf32, #tpu.memory_space<vmem>>, vector<1x1x24xf32>
    %355 = vector.shape_cast %354 : vector<1x1x24xf32> to vector<1x24xf32>
    %cst_273 = arith.constant dense<0.000000e+00> : vector<1x512xf32>
    %356 = tpu.matmul %355, %353, %cst_273 {dimension_numbers = #tpu.dot_dimension_numbers<[1], [0], [0], [1], [0, 0, 1, 1], [], []>} : vector<1x24xf32>, vector<24x512xf32>, vector<1x512xf32> -> vector<1x512xf32>
    %357 = arith.addf %348, %356 : vector<1x512xf32>
    %c16_i32_274 = arith.constant 16 : i32
    %358 = tpu.dynamic_rotate %347 by %c16_i32_274 dim 1 : vector<24x512xf32>, i32 -> vector<24x512xf32>
    %c1_275 = arith.constant 1 : index
    %c0_276 = arith.constant 0 : index
    %c0_277 = arith.constant 0 : index
    %359 = vector.load %arg12[%c1_275, %c0_276, %c0_277] : memref<9x1x512xf32, #tpu.memory_space<vmem>>, vector<1x1x512xf32>
    %360 = vector.shape_cast %359 : vector<1x1x512xf32> to vector<1x512xf32>
    %361 = vector.broadcast %360 : vector<1x512xf32> to vector<24x512xf32>
    %362 = arith.mulf %358, %361 : vector<24x512xf32>
    %c1_278 = arith.constant 1 : index
    %c0_279 = arith.constant 0 : index
    %c0_280 = arith.constant 0 : index
    %363 = vector.load %arg10[%c1_278, %c0_279, %c0_280] : memref<9x1x24xf32, #tpu.memory_space<vmem>>, vector<1x1x24xf32>
    %364 = vector.shape_cast %363 : vector<1x1x24xf32> to vector<1x24xf32>
    %cst_281 = arith.constant dense<0.000000e+00> : vector<1x512xf32>
    %365 = tpu.matmul %364, %362, %cst_281 {dimension_numbers = #tpu.dot_dimension_numbers<[1], [0], [0], [1], [0, 0, 1, 1], [], []>} : vector<1x24xf32>, vector<24x512xf32>, vector<1x512xf32> -> vector<1x512xf32>
    %366 = arith.addf %357, %365 : vector<1x512xf32>
    %c15_i32_282 = arith.constant 15 : i32
    %367 = tpu.dynamic_rotate %347 by %c15_i32_282 dim 1 : vector<24x512xf32>, i32 -> vector<24x512xf32>
    %c2_283 = arith.constant 2 : index
    %c0_284 = arith.constant 0 : index
    %c0_285 = arith.constant 0 : index
    %368 = vector.load %arg12[%c2_283, %c0_284, %c0_285] : memref<9x1x512xf32, #tpu.memory_space<vmem>>, vector<1x1x512xf32>
    %369 = vector.shape_cast %368 : vector<1x1x512xf32> to vector<1x512xf32>
    %370 = vector.broadcast %369 : vector<1x512xf32> to vector<24x512xf32>
    %371 = arith.mulf %367, %370 : vector<24x512xf32>
    %c2_286 = arith.constant 2 : index
    %c0_287 = arith.constant 0 : index
    %c0_288 = arith.constant 0 : index
    %372 = vector.load %arg10[%c2_286, %c0_287, %c0_288] : memref<9x1x24xf32, #tpu.memory_space<vmem>>, vector<1x1x24xf32>
    %373 = vector.shape_cast %372 : vector<1x1x24xf32> to vector<1x24xf32>
    %cst_289 = arith.constant dense<0.000000e+00> : vector<1x512xf32>
    %374 = tpu.matmul %373, %371, %cst_289 {dimension_numbers = #tpu.dot_dimension_numbers<[1], [0], [0], [1], [0, 0, 1, 1], [], []>} : vector<1x24xf32>, vector<24x512xf32>, vector<1x512xf32> -> vector<1x512xf32>
    %375 = arith.addf %366, %374 : vector<1x512xf32>
    %c1_i32_290 = arith.constant 1 : i32
    %376 = tpu.dynamic_rotate %347 by %c1_i32_290 dim 1 : vector<24x512xf32>, i32 -> vector<24x512xf32>
    %c3_291 = arith.constant 3 : index
    %c0_292 = arith.constant 0 : index
    %c0_293 = arith.constant 0 : index
    %377 = vector.load %arg12[%c3_291, %c0_292, %c0_293] : memref<9x1x512xf32, #tpu.memory_space<vmem>>, vector<1x1x512xf32>
    %378 = vector.shape_cast %377 : vector<1x1x512xf32> to vector<1x512xf32>
    %379 = vector.broadcast %378 : vector<1x512xf32> to vector<24x512xf32>
    %380 = arith.mulf %376, %379 : vector<24x512xf32>
    %c3_294 = arith.constant 3 : index
    %c0_295 = arith.constant 0 : index
    %c0_296 = arith.constant 0 : index
    %381 = vector.load %arg10[%c3_294, %c0_295, %c0_296] : memref<9x1x24xf32, #tpu.memory_space<vmem>>, vector<1x1x24xf32>
    %382 = vector.shape_cast %381 : vector<1x1x24xf32> to vector<1x24xf32>
    %cst_297 = arith.constant dense<0.000000e+00> : vector<1x512xf32>
    %383 = tpu.matmul %382, %380, %cst_297 {dimension_numbers = #tpu.dot_dimension_numbers<[1], [0], [0], [1], [0, 0, 1, 1], [], []>} : vector<1x24xf32>, vector<24x512xf32>, vector<1x512xf32> -> vector<1x512xf32>
    %384 = arith.addf %375, %383 : vector<1x512xf32>
    %c4_298 = arith.constant 4 : index
    %c0_299 = arith.constant 0 : index
    %c0_300 = arith.constant 0 : index
    %385 = vector.load %arg10[%c4_298, %c0_299, %c0_300] : memref<9x1x24xf32, #tpu.memory_space<vmem>>, vector<1x1x24xf32>
    %386 = vector.shape_cast %385 : vector<1x1x24xf32> to vector<1x24xf32>
    %cst_301 = arith.constant dense<0.000000e+00> : vector<1x512xf32>
    %387 = tpu.matmul %386, %347, %cst_301 {dimension_numbers = #tpu.dot_dimension_numbers<[1], [0], [0], [1], [0, 0, 1, 1], [], []>} : vector<1x24xf32>, vector<24x512xf32>, vector<1x512xf32> -> vector<1x512xf32>
    %388 = arith.addf %384, %387 : vector<1x512xf32>
    %c511_i32_302 = arith.constant 511 : i32
    %389 = tpu.dynamic_rotate %347 by %c511_i32_302 dim 1 : vector<24x512xf32>, i32 -> vector<24x512xf32>
    %c5_303 = arith.constant 5 : index
    %c0_304 = arith.constant 0 : index
    %c0_305 = arith.constant 0 : index
    %390 = vector.load %arg12[%c5_303, %c0_304, %c0_305] : memref<9x1x512xf32, #tpu.memory_space<vmem>>, vector<1x1x512xf32>
    %391 = vector.shape_cast %390 : vector<1x1x512xf32> to vector<1x512xf32>
    %392 = vector.broadcast %391 : vector<1x512xf32> to vector<24x512xf32>
    %393 = arith.mulf %389, %392 : vector<24x512xf32>
    %c5_306 = arith.constant 5 : index
    %c0_307 = arith.constant 0 : index
    %c0_308 = arith.constant 0 : index
    %394 = vector.load %arg10[%c5_306, %c0_307, %c0_308] : memref<9x1x24xf32, #tpu.memory_space<vmem>>, vector<1x1x24xf32>
    %395 = vector.shape_cast %394 : vector<1x1x24xf32> to vector<1x24xf32>
    %cst_309 = arith.constant dense<0.000000e+00> : vector<1x512xf32>
    %396 = tpu.matmul %395, %393, %cst_309 {dimension_numbers = #tpu.dot_dimension_numbers<[1], [0], [0], [1], [0, 0, 1, 1], [], []>} : vector<1x24xf32>, vector<24x512xf32>, vector<1x512xf32> -> vector<1x512xf32>
    %397 = arith.addf %388, %396 : vector<1x512xf32>
    %c497_i32_310 = arith.constant 497 : i32
    %398 = tpu.dynamic_rotate %347 by %c497_i32_310 dim 1 : vector<24x512xf32>, i32 -> vector<24x512xf32>
    %c6_311 = arith.constant 6 : index
    %c0_312 = arith.constant 0 : index
    %c0_313 = arith.constant 0 : index
    %399 = vector.load %arg12[%c6_311, %c0_312, %c0_313] : memref<9x1x512xf32, #tpu.memory_space<vmem>>, vector<1x1x512xf32>
    %400 = vector.shape_cast %399 : vector<1x1x512xf32> to vector<1x512xf32>
    %401 = vector.broadcast %400 : vector<1x512xf32> to vector<24x512xf32>
    %402 = arith.mulf %398, %401 : vector<24x512xf32>
    %c6_314 = arith.constant 6 : index
    %c0_315 = arith.constant 0 : index
    %c0_316 = arith.constant 0 : index
    %403 = vector.load %arg10[%c6_314, %c0_315, %c0_316] : memref<9x1x24xf32, #tpu.memory_space<vmem>>, vector<1x1x24xf32>
    %404 = vector.shape_cast %403 : vector<1x1x24xf32> to vector<1x24xf32>
    %cst_317 = arith.constant dense<0.000000e+00> : vector<1x512xf32>
    %405 = tpu.matmul %404, %402, %cst_317 {dimension_numbers = #tpu.dot_dimension_numbers<[1], [0], [0], [1], [0, 0, 1, 1], [], []>} : vector<1x24xf32>, vector<24x512xf32>, vector<1x512xf32> -> vector<1x512xf32>
    %406 = arith.addf %397, %405 : vector<1x512xf32>
    %c496_i32_318 = arith.constant 496 : i32
    %407 = tpu.dynamic_rotate %347 by %c496_i32_318 dim 1 : vector<24x512xf32>, i32 -> vector<24x512xf32>
    %c7_319 = arith.constant 7 : index
    %c0_320 = arith.constant 0 : index
    %c0_321 = arith.constant 0 : index
    %408 = vector.load %arg12[%c7_319, %c0_320, %c0_321] : memref<9x1x512xf32, #tpu.memory_space<vmem>>, vector<1x1x512xf32>
    %409 = vector.shape_cast %408 : vector<1x1x512xf32> to vector<1x512xf32>
    %410 = vector.broadcast %409 : vector<1x512xf32> to vector<24x512xf32>
    %411 = arith.mulf %407, %410 : vector<24x512xf32>
    %c7_322 = arith.constant 7 : index
    %c0_323 = arith.constant 0 : index
    %c0_324 = arith.constant 0 : index
    %412 = vector.load %arg10[%c7_322, %c0_323, %c0_324] : memref<9x1x24xf32, #tpu.memory_space<vmem>>, vector<1x1x24xf32>
    %413 = vector.shape_cast %412 : vector<1x1x24xf32> to vector<1x24xf32>
    %cst_325 = arith.constant dense<0.000000e+00> : vector<1x512xf32>
    %414 = tpu.matmul %413, %411, %cst_325 {dimension_numbers = #tpu.dot_dimension_numbers<[1], [0], [0], [1], [0, 0, 1, 1], [], []>} : vector<1x24xf32>, vector<24x512xf32>, vector<1x512xf32> -> vector<1x512xf32>
    %415 = arith.addf %406, %414 : vector<1x512xf32>
    %c495_i32_326 = arith.constant 495 : i32
    %416 = tpu.dynamic_rotate %347 by %c495_i32_326 dim 1 : vector<24x512xf32>, i32 -> vector<24x512xf32>
    %c8_327 = arith.constant 8 : index
    %c0_328 = arith.constant 0 : index
    %c0_329 = arith.constant 0 : index
    %417 = vector.load %arg12[%c8_327, %c0_328, %c0_329] : memref<9x1x512xf32, #tpu.memory_space<vmem>>, vector<1x1x512xf32>
    %418 = vector.shape_cast %417 : vector<1x1x512xf32> to vector<1x512xf32>
    %419 = vector.broadcast %418 : vector<1x512xf32> to vector<24x512xf32>
    %420 = arith.mulf %416, %419 : vector<24x512xf32>
    %c8_330 = arith.constant 8 : index
    %c0_331 = arith.constant 0 : index
    %c0_332 = arith.constant 0 : index
    %421 = vector.load %arg10[%c8_330, %c0_331, %c0_332] : memref<9x1x24xf32, #tpu.memory_space<vmem>>, vector<1x1x24xf32>
    %422 = vector.shape_cast %421 : vector<1x1x24xf32> to vector<1x24xf32>
    %cst_333 = arith.constant dense<0.000000e+00> : vector<1x512xf32>
    %423 = tpu.matmul %422, %420, %cst_333 {dimension_numbers = #tpu.dot_dimension_numbers<[1], [0], [0], [1], [0, 0, 1, 1], [], []>} : vector<1x24xf32>, vector<24x512xf32>, vector<1x512xf32> -> vector<1x512xf32>
    %424 = arith.addf %415, %423 : vector<1x512xf32>
    %c0_334 = arith.constant 0 : index
    %c0_335 = arith.constant 0 : index
    %425 = vector.load %arg11[%c0_334, %c0_335] : memref<1x1xf32, #tpu.memory_space<vmem>>, vector<1x1xf32>
    %426 = vector.broadcast %425 : vector<1x1xf32> to vector<1x512xf32>
    %427 = arith.addf %424, %426 : vector<1x512xf32>
    %c0_336 = arith.constant 0 : index
    %c0_337 = arith.constant 0 : index
    %c0_338 = arith.constant 0 : index
    %428 = vector.load %arg16[%c0_336, %c0_337, %c0_338] : memref<1x1x512xf32, #tpu.memory_space<vmem>>, vector<1x1x512xf32>
    %429 = vector.shape_cast %428 : vector<1x1x512xf32> to vector<1x512xf32>
    %430 = vector.shape_cast %427 : vector<1x512xf32> to vector<1x1x512xf32>
    tpu.vector_store %arg16[%c0_336, %c0_337, %c0_338], %430 {strides = array<i32>} : memref<1x1x512xf32, #tpu.memory_space<vmem>>, vector<1x1x512xf32>,
    return
  }
  func.func @transform_0(%arg0: i32) -> (i32, i32, i32) {
    %c0_i32 = arith.constant 0 : i32
    %c0_i32_0 = arith.constant 0 : i32
    %c0_i32_1 = arith.constant 0 : i32
    return %arg0, %c0_i32, %c0_i32_0 : i32, i32, i32
  }
  func.func @transform_1(%arg0: i32) -> (i32, i32, i32) {
    %c0_i32 = arith.constant 0 : i32
    %c0_i32_0 = arith.constant 0 : i32
    %c0_i32_1 = arith.constant 0 : i32
    %c0_i32_2 = arith.constant 0 : i32
    return %c0_i32, %c0_i32_0, %c0_i32_1 : i32, i32, i32
  }
  func.func @transform_2(%arg0: i32) -> (i32, i32) {
    %c0_i32 = arith.constant 0 : i32
    %c0_i32_0 = arith.constant 0 : i32
    %c0_i32_1 = arith.constant 0 : i32
    return %c0_i32, %c0_i32_0 : i32, i32
  }
  func.func @transform_3(%arg0: i32) -> (i32, i32, i32) {
    %c0_i32 = arith.constant 0 : i32
    %c0_i32_0 = arith.constant 0 : i32
    %c0_i32_1 = arith.constant 0 : i32
    %c0_i32_2 = arith.constant 0 : i32
    return %c0_i32, %c0_i32_0, %c0_i32_1 : i32, i32, i32
  }
  func.func @transform_4(%arg0: i32) -> (i32, i32) {
    %c0_i32 = arith.constant 0 : i32
    %c0_i32_0 = arith.constant 0 : i32
    %c0_i32_1 = arith.constant 0 : i32
    return %c0_i32, %c0_i32_0 : i32, i32
  }
  func.func @transform_5(%arg0: i32) -> (i32, i32, i32) {
    %c0_i32 = arith.constant 0 : i32
    %c0_i32_0 = arith.constant 0 : i32
    %c0_i32_1 = arith.constant 0 : i32
    %c0_i32_2 = arith.constant 0 : i32
    return %c0_i32, %c0_i32_0, %c0_i32_1 : i32, i32, i32
  }
  func.func @transform_6(%arg0: i32) -> (i32, i32) {
    %c0_i32 = arith.constant 0 : i32
    %c0_i32_0 = arith.constant 0 : i32
    %c0_i32_1 = arith.constant 0 : i32
    return %c0_i32, %c0_i32_0 : i32, i32
  }
  func.func @transform_7(%arg0: i32) -> (i32, i32, i32) {
    %c0_i32 = arith.constant 0 : i32
    %c0_i32_0 = arith.constant 0 : i32
    %c0_i32_1 = arith.constant 0 : i32
    %c0_i32_2 = arith.constant 0 : i32
    return %c0_i32, %c0_i32_0, %c0_i32_1 : i32, i32, i32
  }
  func.func @transform_8(%arg0: i32) -> (i32, i32) {
    %c0_i32 = arith.constant 0 : i32
    %c0_i32_0 = arith.constant 0 : i32
    %c0_i32_1 = arith.constant 0 : i32
    return %c0_i32, %c0_i32_0 : i32, i32
  }
  func.func @transform_9(%arg0: i32) -> (i32, i32, i32) {
    %c0_i32 = arith.constant 0 : i32
    %c0_i32_0 = arith.constant 0 : i32
    %c0_i32_1 = arith.constant 0 : i32
    %c0_i32_2 = arith.constant 0 : i32
    return %c0_i32, %c0_i32_0, %c0_i32_1 : i32, i32, i32
  }
  func.func @transform_10(%arg0: i32) -> (i32, i32) {
    %c0_i32 = arith.constant 0 : i32
    %c0_i32_0 = arith.constant 0 : i32
    %c0_i32_1 = arith.constant 0 : i32
    return %c0_i32, %c0_i32_0 : i32, i32
  }
  func.func @transform_11(%arg0: i32) -> (i32, i32, i32) {
    %c0_i32 = arith.constant 0 : i32
    %c0_i32_0 = arith.constant 0 : i32
    %c0_i32_1 = arith.constant 0 : i32
    %c0_i32_2 = arith.constant 0 : i32
    return %c0_i32, %c0_i32_0, %c0_i32_1 : i32, i32, i32
  }
  func.func @transform_12(%arg0: i32) -> (i32, i32, i32) {
    %c0_i32 = arith.constant 0 : i32
    %c0_i32_0 = arith.constant 0 : i32
    %c0_i32_1 = arith.constant 0 : i32
    %c0_i32_2 = arith.constant 0 : i32
    return %c0_i32, %c0_i32_0, %c0_i32_1 : i32, i32, i32
  }
  func.func @transform_13(%arg0: i32) -> (i32, i32) {
    %c0_i32 = arith.constant 0 : i32
    %c0_i32_0 = arith.constant 0 : i32
    %c0_i32_1 = arith.constant 0 : i32
    return %c0_i32, %c0_i32_0 : i32, i32
  }
  func.func @transform_14(%arg0: i32) -> (i32, i32) {
    %c0_i32 = arith.constant 0 : i32
    %c0_i32_0 = arith.constant 0 : i32
    %c0_i32_1 = arith.constant 0 : i32
    return %c0_i32, %c0_i32_0 : i32, i32
  }
  func.func @transform_15(%arg0: i32) -> (i32, i32, i32) {
    %c0_i32 = arith.constant 0 : i32
    %c0_i32_0 = arith.constant 0 : i32
    %c0_i32_1 = arith.constant 0 : i32
    return %arg0, %c0_i32, %c0_i32_0 : i32, i32, i32
  }
}

</mosaic_0001>

<bundles_post_ra>
// kernel: simplenet_forward.1
= control target key start
LH: loop header
LB: loop body
LE: loop exit
PB: predicated region body
PF: predicated region fallthrough
CT: control target
= control target key end

     0   :  { %s5527_s20 = smov 0   ;;  %s8565_s0 = inlined_call_operand.vmem [shape: f32[2,1,512], index: 0, kind: input, shape index: {}]   ;;  %s8566_s1 = inlined_call_operand.vmem [shape: f32[9,12,1], index: 1, kind: input, shape index: {}]   ;;  %s8567_s2 = inlined_call_operand.vmem [shape: f32[12,1], index: 2, kind: input, shape index: {}]   ;;  %s8568_s3 = inlined_call_operand.vmem [shape: f32[9,12,12], index: 3, kind: input, shape index: {}]   ;;  %s8569_s4 = inlined_call_operand.vmem [shape: f32[12,1], index: 4, kind: input, shape index: {}]   ;;  %s8570_s5 = inlined_call_operand.vmem [shape: f32[9,24,12], index: 5, kind: input, shape index: {}]   ;;  %s8571_s6 = inlined_call_operand.vmem [shape: f32[24,1], index: 6, kind: input, shape index: {}]   ;;  %s8572_s7 = inlined_call_operand.vmem [shape: f32[9,24,24], index: 7, kind: input, shape index: {}]   ;;  %s8573_s8 = inlined_call_operand.vmem [shape: f32[24,1], index: 8, kind: input, shape index: {}]   ;;  %s8574_s9 = inlined_call_operand.vmem [shape: f32[9,1,24], index: 9, kind: input, shape index: {}]   ;;  %s8575_s10 = inlined_call_operand.<no memory space> [shape: f32[1,1], index: 10, kind: input, shape index: {}]   ;;  %s8576_s11 = inlined_call_operand.vmem [shape: f32[9,1,512], index: 11, kind: input, shape index: {}]   ;;  %s8577_s12 = inlined_call_operand.vmem [shape: f32[9,1,128], index: 12, kind: input, shape index: {}]   ;;  %s8578_s13 = inlined_call_operand.vmem [shape: f32[512,128], index: 13, kind: input, shape index: {}]   ;;  %s8579_s14 = inlined_call_operand.vmem [shape: f32[128,512], index: 14, kind: input, shape index: {}]   ;;  %s8580_s15 = inlined_call_operand.vmem [shape: f32[2,1,512], index: 15, kind: output, shape index: {}]  }
   0x1   :  { %v20_v0 = vstv %s8575_s10 }
   0x2   :  { %21 = vst [vmem:[#allocation2] sm:$0x1] %v20_v0 }
   0x3 LB: > { %s5029_s21 = sadd.s32 4294967295, %s5427_s20   ;;  %p5033_p0 = scmp.ge.s32.totalorder %s5427_s20, 1  ;;  %s5427_s20 = sphi %s5527_s20, %s27_s20  }
   0x4   : > { %p438_p1 = scmp.lt.s32.totalorder %s5427_s20, 3 }
   0x6   : > { %p439_p2 = pnand %p5033_p0, %p438_p1 }
   0x8   : > { %442 = sbr.rel (%p439_p2) target bundleno = 2330 (0x91a), region = 80 }
   0xd   : > { %p484_p3 = scmp.lt.s32.totalorder %s5029_s21, 1  ;;  %s8688_s25 = smov 17   ;;  %v5431_v4 = vmov 0   ;;  %v532_v7 = vld [vmem:[%s8566_s1 + $0x8] sm:$0xf]  ;;  %v5037_v9 = vld [vmem:[%s8566_s1 + $0x10] sm:$0xff]  ;;  %v8586_v51 = vlaneseq }
   0xe   : > { %s8686_s26 = smov 16   ;;  %5371 = vset.pattern.permute.xlu2 %v5431_v4  ;;  %5370 = vset.pattern.permute.xlu1 %v5431_v4  ;;  %s8690_s27 = smov 15   ;;  %v5038_v8 = vld [vmem:[%s8566_s1 + $0x18] sm:$0xf]  ;;  %v5041_v10 = vld [vmem:[%s8566_s1 + $0x28] sm:$0xf] }
   0xf   : > { %s8899_s21 = smov (!%p484_p3, %s5029_s21), 1  ;;  %5372 = vset.pattern.permute.xlu0 %v5431_v4  ;;  %s8694_s28 = smov 1   ;;  %v531_v11 = vld [vmem:[%s8566_s1] sm:$0xff]  ;;  %v5044_v13 = vld [vmem:[%s8566_s1 + $0x38] sm:$0xf]  ;;  %v5043_v14 = vld [vmem:[%s8566_s1 + $0x30] sm:$0xff] }
  0x10   : > { %s8581_s10 = sshll.u32 %s8899_s21, 2  ;;  %s8692_s30 = smov 127   ;;  %v5040_v12 = vld [vmem:[%s8566_s1 + $0x20] sm:$0xff]  ;;  %v5046_v15 = vld [vmem:[%s8566_s1 + $0x48] sm:$0xf]  ;;  %v5048_v21 = vld [vmem:[%s8566_s1 + $0x50] sm:$0xff] }
  0x11   : > { %s487_s24 = scalar_lea.vmem %s8565_s0, %s8581_s10  ;;  %s8684_s22 = smov 113   ;;  %v5045_v17 = vld [vmem:[%s8566_s1 + $0x40] sm:$0xff]  ;;  %v5049_v18 = vld [vmem:[%s8566_s1 + $0x58] sm:$0xf]  ;;  %v5052_v22 = vld [vmem:[%s8566_s1 + $0x68] sm:$0xf] }
  0x12   : > { %v492_v1 = vld [vmem:[%s487_s24] sm:$0xf]  ;;  %s8584_s17 = smov 112   ;;  %s8582_s29 = smov 111   ;;  %v5055_v27 = vld [vmem:[%s8566_s1 + $0x78] sm:$0xf] }
  0x13   : > { %v5543_v2 = vperm.slane %v492_v1, 2  ;;  %v5545_v3 = vperm.slane %v492_v1, 0  ;;  %v5553_v5 = vperm.slane %v492_v1, 3  ;;  %v5555_v6 = vperm.slane %v492_v1, 1  ;;  %v5051_v26 = vld [vmem:[%s8566_s1 + $0x60] sm:$0xff]  ;;  %v5054_v28 = vld [vmem:[%s8566_s1 + $0x70] sm:$0xff] }
  0x14   : > { %v5058_v31 = vld [vmem:[%s8566_s1 + $0x88] sm:$0xf]  ;;  %v5057_v32 = vld [vmem:[%s8566_s1 + $0x80] sm:$0xff]  ;;  %v5716_v53 = vand.u32 127, %v8586_v51  ;;  %vm1123_vm8 = vcmask 1043456   ;;  %vm1116_vm9 = vcmask 97280  }
  0x15   : > { %8714 = vst [vmem:[#allocation3_spill] sm:$0xff] %v5543_v2  ;;  %506 = vrot.lane.b32.xlu1 %v5543_v2, %s8688_s25  ;;  %563 = vrot.lane.b32.xlu2 %v5545_v3, %s8686_s26  ;;  %v1020_v34 = vld [vmem:[%s8567_s2 + $0x8] sm:$0xf]  ;;  %v1019_v37 = vld [vmem:[%s8567_s2] sm:$0xff]  ;;  %s8775_s10 = smov 112   ;;  %s8778_s23 = smov 111  }
  0x16   : > { %502 = vrot.lane.b32.xlu0 %v5545_v3, %s8688_s25  ;;  %8715 = vst [vmem:[#allocation4_spill] sm:$0xff] %v5553_v5  ;;  %v5036_v55 = vld [vmem:[%s8576_s11 + $0x4] sm:$0xf]  ;;  %vm571_vm0 = vcmp.lt.s32.totalorder %v5716_v53, 16  ;;  %v5039_v60 = vld [vmem:[%s8576_s11 + $0x8] sm:$0xf] }
  0x17   : > { %8716 = vst [vmem:[#allocation5_spill] sm:$0xff] %v5716_v53  ;;  %v5728_v58 = vperm.slane %v5036_v55, 1  ;;  %v517_v61 = vld [vmem:[%s8576_s11] sm:$0xf]  ;;  %vm632_vm1 = vcmp.lt.s32.totalorder %v5716_v53, 15  ;;  %v5748_v1 = vperm.slane %v5039_v60, 0 }
  0x18   : > { %vm512_vm2 = vcmp.lt.s32.totalorder %v5716_v53, 17  ;;  %v5751_v4 = vperm.slane %v517_v61, 0  ;;  %vm693_vm3 = vcmp.lt.s32.totalorder %v5716_v53, 1  ;;  %vm783_vm4 = vcmp.lt.s32.totalorder %v5716_v53, 127  ;;  %s5440_s18 = smov 9   ;;  %s8696_s19 = smov 120  }
  0x19   : > { %8717 = vst [vmem:[#allocation6_spill] sm:$0xff] %v5728_v58  ;;  %vm844_vm5 = vcmp.lt.s32.totalorder %v5716_v53, 113  ;;  %vm905_vm6 = vcmp.lt.s32.totalorder %v5716_v53, 112  ;;  %vm966_vm7 = vcmp.lt.s32.totalorder %v5716_v53, 111  ;;  %s8698_s16 = smov 119   ;;  %vm3159_vm10 = vcmask 195584  }
  0x1a   : > { %8718 = vst [vmem:[#allocation7_spill] sm:$0xff] %v5748_v1  ;;  %vm4966_vm11 = vcmask 1042434   ;;  %vm4964_vm12 = vcmask 1040384   ;;  %vm4968_vm13 = vcmask 1041408  }
  0x1b   : > { %8719 = vst [vmem:[#allocation8_spill] sm:$0xff] %v5751_v4 }
  0x1d   : > { %508 = vrot.lane.b32.xlu1 %v5553_v5, %s8688_s25  ;;  %565 = vrot.lane.b32.xlu2 %v5555_v6, %s8686_s26 }
  0x1e   : > { %504 = vrot.lane.b32.xlu0 %v5555_v6, %s8688_s25 }
  0x25   : > { %569 = vrot.lane.b32.xlu1 %v5553_v5, %s8686_s26  ;;  %624 = vrot.lane.b32.xlu2 %v5545_v3, %s8690_s27 }
  0x26   : > { %567 = vrot.lane.b32.xlu0 %v5543_v2, %s8686_s26 }
  0x2d   : > { %628 = vrot.lane.b32.xlu1 %v5543_v2, %s8690_s27  ;;  %630 = vrot.lane.b32.xlu2 %v5553_v5, %s8690_s27 }
  0x2e   : > { %626 = vrot.lane.b32.xlu0 %v5555_v6, %s8690_s27 }
  0x35   : > { %687 = vrot.lane.b32.xlu1 %v5555_v6, %s8694_s28  ;;  %689 = vrot.lane.b32.xlu2 %v5543_v2, %s8694_s28 }
  0x36   : > { %685 = vrot.lane.b32.xlu0 %v5545_v3, %s8694_s28 }
  0x3d   : > { %540 = vperm.xlu1 %5370, %v532_v7   ;;  %601 = vperm.xlu2 %5371, %v5038_v8   ;;  %v5753_v7 = vperm.slane %v517_v61, 3 }
  0x3e   : > { %691 = vrot.lane.b32.xlu0 %v5553_v5, %s8694_s28 }
  0x3f   : > { %8720 = vst [vmem:[#allocation9_spill] sm:$0xff] %v5753_v7 }
  0x45   : > { %596 = vperm.xlu1 %5370, %v5037_v9   ;;  %662 = vperm.xlu2 %5371, %v5041_v10   ;;  %v5761_v10 = vperm.slane %v517_v61, 1 }
  0x46   : > { %535 = vperm.xlu0 %5372, %v531_v11   ;;  %v5763_v11 = vperm.slane %v517_v61, 2 }
  0x47   : > { %8721 = vst [vmem:[#allocation10_spill] sm:$0xff] %v5761_v10 }
  0x48   : > { %8722 = vst [vmem:[#allocation11_spill] sm:$0xff] %v5763_v11 }
  0x4d   : > { %775 = vrot.lane.b32.xlu1 %v5545_v3, %s8692_s30  ;;  %777 = vrot.lane.b32.xlu2 %v5555_v6, %s8692_s30 }
  0x4e   : > { %779 = vrot.lane.b32.xlu0 %v5543_v2, %s8692_s30 }
  0x55   : > { %781 = vrot.lane.b32.xlu1 %v5553_v5, %s8692_s30  ;;  %657 = vperm.xlu2 %5371, %v5040_v12   ;;  %v5765_v12 = vperm.slane %v5036_v55, 0 }
  0x56   : > { %723 = vperm.xlu0 %5372, %v5044_v13  }
  0x57   : > { %8723 = vst [vmem:[#allocation12_spill] sm:$0xff] %v5765_v12 }
  0x5d   : > { %836 = vrot.lane.b32.xlu1 %v5545_v3, %s8684_s22  ;;  %838 = vrot.lane.b32.xlu2 %v5555_v6, %s8684_s22 }
  0x5e   : > { %840 = vrot.lane.b32.xlu0 %v5543_v2, %s8684_s22 }
  0x65   : > { %842 = vrot.lane.b32.xlu1 %v5553_v5, %s8684_s22  ;;  %718 = vperm.xlu2 %5371, %v5043_v14  }
  0x66   : > { %756 = vperm.xlu0 %5372, %v5046_v15   ;;  %v5771_v15 = vperm.slane %v5036_v55, 2 }
  0x68   : > { %8724 = vst [vmem:[#allocation13_spill] sm:$0xff] %v5771_v15 }
  0x6d   : > { %897 = vrot.lane.b32.xlu1 %v5545_v3, %s8584_s17  ;;  %899 = vrot.lane.b32.xlu2 %v5555_v6, %s8584_s17 }
  0x6e   : > { %901 = vrot.lane.b32.xlu0 %v5543_v2, %s8584_s17 }
  0x6f   : > { %v5632_v16 = vpop.permute.xlu2 %563 }
  0x75   : > { %903 = vrot.lane.b32.xlu1 %v5553_v5, %s8584_s17  ;;  %751 = vperm.xlu2 %5371, %v5045_v17   ;;  %v5773_v17 = vperm.slane %v5036_v55, 3  ;;  %s5442_s17 = smov 121  }
  0x76   : > { %813 = vperm.xlu0 %5372, %v5049_v18  }
  0x77   : > { %v5642_v19 = vpop.permute.xlu2 %565  ;;  %8725 = vst [vmem:[#allocation14_spill] sm:$0xff] %v5773_v17 }
  0x78   : > { %v574_v59 = vsel %vm571_vm0, %v5632_v16, %v5642_v19 }
  0x79   : > { %v5741_v62 = vmul.f32 %v5728_v58, %v574_v59 }
  0x7b   : > { %v8595_v13 = vperm.slane %v5741_v62, 0 }
  0x7d   : > { %958 = vrot.lane.b32.xlu1 %v5545_v3, %s8582_s29  ;;  %960 = vrot.lane.b32.xlu2 %v5555_v6, %s8582_s29 }
  0x7e   : > { %962 = vrot.lane.b32.xlu0 %v5543_v2, %s8582_s29 }
  0x7f   : > { %v5650_v20 = vpop.permute.xlu2 %624 }
  0x85   : > { %964 = vrot.lane.b32.xlu1 %v5553_v5, %s8582_s29  ;;  %808 = vperm.xlu2 %5371, %v5048_v21   ;;  %v8743_v5 = vperm.slane %v5741_v62, 0  ;;  %s8817_s29 = smov 127  }
  0x86   : > { %874 = vperm.xlu0 %5372, %v5052_v22   ;;  %v5780_v22 = vperm.slane %v5039_v60, 3 }
  0x87   : > { %v5660_v23 = vpop.permute.xlu1 %506  ;;  %v5664_v25 = vpop.permute.xlu2 %630 }
  0x88   : > { %v5662_v24 = vpop.permute.xlu0 %502  ;;  %v636_v9 = vsel %vm632_vm1, %v5664_v25, %v5650_v20  ;;  %8726 = vst [vmem:[#allocation15_spill] sm:$0xff] %v5780_v22 }
  0x8d   : > { %869 = vperm.xlu1 %5370, %v5051_v26   ;;  %935 = vperm.xlu2 %5371, %v5055_v27   ;;  %v5782_v26 = vperm.slane %v5039_v60, 1  ;;  %v5785_v27 = vmul.f32 %v5748_v1, %v636_v9 }
  0x8e   : > { %930 = vperm.xlu0 %5372, %v5054_v28  }
  0x8f   : > { %v509_v29 = vpop.permute.xlu1 %508  ;;  %v5683_v33 = vpop.permute.xlu2 %689  ;;  %8727 = vst [vmem:[#allocation16_spill] sm:$0xff] %v5782_v26  ;;  %v665_v9 = vperm.slane %v5785_v27, 0 }
  0x90   : > { %v5675_v30 = vpop.permute.xlu0 %504  ;;  %v516_v28 = vsel %vm512_vm2, %v509_v29, %v5662_v24 }
  0x95   : > { %996 = vperm.xlu1 %5370, %v5058_v31   ;;  %991 = vperm.xlu2 %5371, %v5057_v32   ;;  %v5793_v31 = vperm.slane %v5039_v60, 2  ;;  %v514_v32 = vsel %vm512_vm2, %v5675_v30, %v5660_v23 }
  0x96   : > { %1028 = vperm.xlu0 %5372, %v1020_v34   ;;  %v515_v34 = vsel %vm512_vm2, %v5662_v24, %v5675_v30  ;;  %v527_v30 = vmul.f32 %v5751_v4, %v516_v28 }
  0x97   : > { %v570_v35 = vpop.permute.xlu1 %569  ;;  %v5691_v38 = vpop.permute.xlu2 %601  ;;  %8728 = vst [vmem:[#allocation17_spill] sm:$0xff] %v5793_v31  ;;  %v5833_v60 = vmul.f32 %v5761_v10, %v515_v34 }
  0x98   : > { %v568_v36 = vpop.permute.xlu0 %567  ;;  %v575_v14 = vsel %vm571_vm0, %v570_v35, %v5632_v16  ;;  %v513_v16 = vsel %vm512_vm2, %v5660_v23, %v509_v29 }
  0x99   : > { %v572_v18 = vsel %vm571_vm0, %v568_v36, %v570_v35  ;;  %v573_v21 = vsel %vm571_vm0, %v5642_v19, %v568_v36  ;;  %v5042_v19 = vld [vmem:[%s8576_s11 + $0xc] sm:$0xf]  ;;  %v5807_v35 = vmul.f32 %v5765_v12, %v575_v14  ;;  %v5825_v55 = vmul.f32 %v5753_v7, %v513_v16 }
  0x9a   : > { %v5813_v36 = vmul.f32 %v5771_v15, %v573_v21  ;;  %v5850_v21 = vperm.slane %v5042_v19, 0 }
  0x9b   : > { %v604_v28 = vperm.slane %v5807_v35, 0 }
  0x9c   : > { %8733 = vst [vmem:[#allocation22_spill] sm:$0xff] %v5850_v21 }
  0x9d   : > { %1023 = vperm.xlu1 %5370, %v1019_v37   ;;  %v5816_v37 = vmul.f32 %v5773_v17, %v572_v18 }
  0x9f   : > { %v629_v39 = vpop.permute.xlu1 %628  ;;  %v5693_v41 = vpop.permute.xlu2 %662  ;;  %v607_v34 = vperm.slane %v5816_v37, 0  ;;  %v544_v37 = vperm.slane %v5833_v60, 0 }
  0xa0   : > { %v627_v40 = vpop.permute.xlu0 %626  ;;  %v633_v29 = vsel %vm632_vm1, %v629_v39, %v5664_v25  ;;  %v5828_v25 = vperm.slane %v5042_v19, 2 }
  0xa1   : > { %v634_v23 = vsel %vm632_vm1, %v627_v40, %v629_v39  ;;  %v635_v24 = vsel %vm632_vm1, %v5650_v20, %v627_v40  ;;  %v5836_v39 = vmul.f32 %v5763_v11, %v514_v32  ;;  %v5839_v61 = vmul.f32 %v5780_v22, %v633_v29  ;;  %v5047_v29 = vld [vmem:[%s8576_s11 + $0x14] sm:$0xf] }
  0xa2   : > { %8729 = vst [vmem:[#allocation18_spill] sm:$0xff] %v5828_v25  ;;  %v5841_v20 = vperm.slane %v5042_v19, 1  ;;  %v649_v14 = vmul.f32 %v5782_v26, %v635_v24  ;;  %v5848_v18 = vmul.f32 %v5793_v31, %v634_v23  ;;  %v606_v32 = vperm.slane %v5813_v36, 0 }
  0xa3   : > { %v543_v23 = vperm.slane %v527_v30, 0  ;;  %v546_v24 = vperm.slane %v5825_v55, 0  ;;  %v5869_v36 = vperm.slane %v5042_v19, 3  ;;  %v545_v51 = vperm.slane %v5836_v39, 0 }
  0xa4   : > { %8731 = vst [vmem:[#allocation20_spill] sm:$0xff] %v5841_v20  ;;  %v613_v26 = vmul.f32 %v8595_v13, %v5691_v38  ;;  %v668_v1 = vperm.slane %v5839_v61, 0  ;;  %v666_v30 = vperm.slane %v649_v14, 0  ;;  %v667_v55 = vperm.slane %v5848_v18, 0  ;;  %v5050_v13 = vld [vmem:[%s8576_s11 + $0x18] sm:$0xf] }
  0xa5   : > { %8735 = vst [vmem:[#allocation24_spill] sm:$0xff] %v5869_v36  ;;  %v5881_v22 = vperm.slane %v5047_v29, 0  ;;  %v614_v19 = vmul.f32 %v606_v32, %v5691_v38  ;;  %v615_v60 = vmul.f32 %v607_v34, %v5691_v38  ;;  %v673_v61 = vmul.f32 %v665_v9, %v5693_v41 }
  0xa6   : > { %v5891_v14 = vperm.slane %v5047_v29, 1  ;;  %v5893_v18 = vperm.slane %v5047_v29, 2  ;;  %v674_v7 = vmul.f32 %v666_v30, %v5693_v41 }
  0xa7   : > { %v5695_v42 = vpop.permute.xlu1 %687  ;;  %v5703_v46 = vpop.permute.xlu2 %777  ;;  %8736 = vst [vmem:[#allocation25_spill] sm:$0xff] %v5881_v22 }
  0xa8   : > { %v5697_v43 = vpop.permute.xlu0 %685  ;;  %v695_v27 = vsel %vm693_vm3, %v5695_v42, %v5683_v33  ;;  %8737 = vst [vmem:[#allocation26_spill] sm:$0xff] %v5891_v14 }
  0xa9   : > { %v696_v35 = vsel %vm693_vm3, %v5697_v43, %v5695_v42  ;;  %v5879_v31 = vmul.f32 %v5828_v25, %v695_v27  ;;  %v612_v42 = vmul.f32 %v604_v28, %v5691_v38  ;;  %8738 = vst [vmem:[#allocation27_spill] sm:$0xff] %v5893_v18  ;;  %v5895_v27 = vperm.slane %v5047_v29, 3 }
  0xaa   : > { %v5887_v39 = vmul.f32 %v5841_v20, %v696_v35  ;;  %v676_v38 = vmul.f32 %v668_v1, %v5693_v41  ;;  %v675_v29 = vmul.f32 %v667_v55, %v5693_v41 }
  0xab   : > { %8739 = vst [vmem:[#allocation28_spill] sm:$0xff] %v5895_v27 }
  0xaf   : > { %v5699_v44 = vpop.permute.xlu1 %540  ;;  %v5709_v49 = vpop.permute.xlu2 %657 }
  0xb0   : > { %v5701_v45 = vpop.permute.xlu0 %691  ;;  %v551_v35 = vmul.f32 %v543_v23, %v5699_v44  ;;  %v552_v20 = vmul.f32 %v544_v37, %v5699_v44  ;;  %v553_v10 = vmul.f32 %v545_v51, %v5699_v44  ;;  %v554_v12 = vmul.f32 %v546_v24, %v5699_v44 }
  0xb1   : > { %v697_v17 = vsel %vm693_vm3, %v5701_v45, %v5697_v43  ;;  %v669_v58 = vmul.f32 %v665_v9, %v5709_v49  ;;  %v694_v41 = vsel %vm693_vm3, %v5683_v33, %v5701_v45  ;;  %v672_v62 = vmul.f32 %v668_v1, %v5709_v49 }
  0xb2   : > { %v620_v15 = vadd.f32 %v612_v42, %v551_v35  ;;  %v622_v44 = vadd.f32 %v614_v19, %v553_v10  ;;  %v709_v9 = vmul.f32 %v5850_v21, %v697_v17  ;;  %v623_v45 = vadd.f32 %v615_v60, %v554_v12 }
  0xb3   : > { %v671_v10 = vmul.f32 %v667_v55, %v5709_v49  ;;  %v5942_v17 = vperm.slane %v5050_v13, 1 }
  0xb5   : > { %8744 = vst [vmem:[#allocation32_spill] sm:$0xff] %v5942_v17 }
  0xb7   : > { %v5705_v47 = vpop.permute.xlu1 %596  ;;  %v5718_v54 = vpop.permute.xlu2 %838 }
  0xb8   : > { %v5707_v48 = vpop.permute.xlu0 %535  ;;  %v608_v11 = vmul.f32 %v604_v28, %v5705_v47  ;;  %v712_v28 = vmul.f32 %v5869_v36, %v694_v41 }
  0xb9   : > { %v548_v2 = vmul.f32 %v544_v37, %v5707_v48  ;;  %v549_v33 = vmul.f32 %v545_v51, %v5707_v48  ;;  %v681_v51 = vadd.f32 %v673_v61, %v620_v15  ;;  %v683_v37 = vadd.f32 %v675_v29, %v622_v44 }
  0xba   : > { %v729_v1 = vperm.slane %v712_v28, 0  ;;  %v5983_v29 = vperm.slane %v5050_v13, 3 }
  0xbc   : > { %8748 = vst [vmem:[#allocation34_spill] sm:$0xff] %v5983_v29 }
  0xbf   : > { %v5711_v50 = vpop.permute.xlu1 %775  ;;  %v5744_v63 = vpop.permute.xlu2 %718 }
  0xc0   : > { %v5713_v52 = vpop.permute.xlu0 %779 }
  0xc7   : > { %v5723_v56 = vpop.permute.xlu1 %781  ;;  %v5852_v16 = vpop.permute.xlu2 %899 }
  0xc8   : > { %v5726_v57 = vpop.permute.xlu0 %723  ;;  %8734 = vst [vmem:[#allocation23_spill] sm:$0xff] %v5852_v16  ;;  %v670_v16 = vmul.f32 %v666_v30, %v5709_v49  ;;  %v609_v30 = vmul.f32 %v8743_v5, %v5705_v47  ;;  %v785_v49 = vsel %vm783_vm4, %v5703_v46, %v5713_v52  ;;  %v784_v55 = vsel %vm783_vm4, %v5713_v52, %v5723_v56 }
  0xc9   : > { %v5975_v60 = vmul.f32 %v5891_v14, %v785_v49  ;;  %v787_v61 = vsel %vm783_vm4, %v5723_v56, %v5711_v50  ;;  %v5981_v52 = vperm.slane %v5050_v13, 2 }
  0xca   : > { %v5993_v28 = vmul.f32 %v5895_v27, %v787_v61 }
  0xcb   : > { %8747 = vst [vmem:[#allocation33_spill] sm:$0xff] %v5981_v52 }
  0xcf   : > { %v5746_v0 = vpop.permute.xlu1 %836  ;;  %v5927_v43 = vpop.permute.xlu2 %751 }
  0xd0   : > { %v5755_v8 = vpop.permute.xlu0 %840 }
  0xd7   : > { %v5830_v59 = vpop.permute.xlu1 %842  ;;  %v5985_v41 = vpop.permute.xlu2 %960 }
  0xd8   : > { %8730 = vst [vmem:[#allocation19_spill] sm:$0xff] %v5830_v59  ;;  %v5843_v40 = vpop.permute.xlu0 %756  ;;  %v610_v59 = vmul.f32 %v606_v32, %v5705_v47  ;;  %v726_v32 = vperm.slane %v709_v9, 0 }
  0xd9   : > { %8732 = vst [vmem:[#allocation21_spill] sm:$0xff] %v5843_v40  ;;  %v621_v40 = vadd.f32 %v613_v26, %v552_v20  ;;  %v550_v26 = vmul.f32 %v546_v24, %v5707_v48 }
  0xdb   : > { %v682_v12 = vadd.f32 %v674_v7, %v621_v40  ;;  %v684_v7 = vadd.f32 %v676_v38, %v623_v45  ;;  %v8746_v40 = vperm.slane %v5879_v31, 0 }
  0xdd   : > { %v732_v24 = vmul.f32 %v8746_v40, %v5744_v63 }
  0xdf   : > { %v5900_v25 = vpop.permute.xlu1 %897 }
  0xe0   : > { %8740 = vst [vmem:[#allocation29_spill] sm:$0xff] %v5900_v25  ;;  %v5906_v4 = vpop.permute.xlu0 %901  ;;  %v5918_v25 = vperm.slane %v5050_v13, 0 }
  0xe1   : > { %8741 = vst [vmem:[#allocation30_spill] sm:$0xff] %v5906_v4  ;;  %v547_v4 = vmul.f32 %v543_v23, %v5707_v48  ;;  %v611_v23 = vmul.f32 %v607_v34, %v5705_v47  ;;  %v617_v47 = vadd.f32 %v609_v30, %v548_v2  ;;  %v618_v34 = vadd.f32 %v610_v59, %v549_v33 }
  0xe2   : > { %8742 = vst [vmem:[#allocation31_spill] sm:$0xff] %v5918_v25  ;;  %v786_v48 = vsel %vm783_vm4, %v5711_v50, %v5703_v46  ;;  %v8745_v2 = vperm.slane %v5887_v39, 0  ;;  %v5053_v46 = vld [vmem:[%s8576_s11 + $0x1c] sm:$0xf]  ;;  %v734_v50 = vmul.f32 %v726_v32, %v5726_v57 }
  0xe3   : > { %v616_v5 = vadd.f32 %v608_v11, %v547_v4  ;;  %v619_v4 = vadd.f32 %v611_v23, %v550_v26  ;;  %v730_v11 = vmul.f32 %v726_v32, %v5744_v63  ;;  %v5971_v19 = vmul.f32 %v5881_v22, %v786_v48 }
  0xe4   : > { %v731_v59 = vmul.f32 %v8745_v2, %v5744_v63  ;;  %v678_v38 = vadd.f32 %v670_v16, %v617_v47  ;;  %v679_v35 = vadd.f32 %v671_v10, %v618_v34  ;;  %v5990_v30 = vperm.slane %v5053_v46, 0 }
  0xe5   : > { %v677_v15 = vadd.f32 %v669_v58, %v616_v5  ;;  %v733_v58 = vmul.f32 %v729_v1, %v5744_v63  ;;  %v680_v44 = vadd.f32 %v672_v62, %v619_v4  ;;  %v5988_v63 = vmul.f32 %v5893_v18, %v784_v55  ;;  %v8756_v55 = vld [vmem:[#allocation19_spill] sm:$0xff] }
  0xe6   : > { %8749 = vst [vmem:[#allocation35_spill] sm:$0xff] %v5990_v30  ;;  %v739_v33 = vadd.f32 %v731_v59, %v678_v38  ;;  %v740_v45 = vadd.f32 %v732_v24, %v679_v35  ;;  %v817_v23 = vperm.slane %v5975_v60, 0  ;;  %v6001_v26 = vperm.slane %v5053_v46, 1  ;;  %v8757_v38 = vld [vmem:[#allocation4_spill] sm:$0xff] }
  0xe7   : > { %v5944_v20 = vpop.permute.xlu1 %903  ;;  %v738_v9 = vadd.f32 %v730_v11, %v677_v15  ;;  %v741_v16 = vadd.f32 %v733_v58, %v680_v44  ;;  %v8751_v62 = vmov %v8745_v2  ;;  %v8752_v47 = vmov %v8746_v40  ;;  %v5056_v2 = vld [vmem:[%s8576_s11 + $0x20] sm:$0xf] }
  0xe8   : > { %v5946_v42 = vpop.permute.xlu0 %813  ;;  %8750 = vst [vmem:[#allocation36_spill] sm:$0xff] %v6001_v26  ;;  %v735_v5 = vmul.f32 %v8751_v62, %v5726_v57  ;;  %v736_v32 = vmul.f32 %v8752_v47, %v5726_v57  ;;  %v737_v34 = vmul.f32 %v729_v1, %v5726_v57  ;;  %v847_v48 = vsel %vm844_vm5, %v5746_v0, %v5718_v54  ;;  %v8755_v40 = vld [vmem:[#allocation3_spill] sm:$0xff] }
  0xe9   : > { %v818_v49 = vperm.slane %v5988_v63, 0  ;;  %v759_v4 = vmul.f32 %v5927_v43, %v5545_v3  ;;  %v6017_v11 = vperm.slane %v5053_v46, 2  ;;  %v6019_v39 = vperm.slane %v5053_v46, 3 }
  0xea   : > { %v8625_v15 = vperm.slane %v5993_v28, 0  ;;  %v742_v31 = vadd.f32 %v734_v50, %v681_v51  ;;  %v760_v57 = vmul.f32 %v5927_v43, %v5555_v6  ;;  %v846_v1 = vsel %vm844_vm5, %v5718_v54, %v5755_v8 }
  0xeb   : > { %8753 = vst [vmem:[#allocation37_spill] sm:$0xff] %v6017_v11  ;;  %v6032_v59 = vmul.f32 %v5918_v25, %v847_v48  ;;  %v761_v24 = vmul.f32 %v5927_v43, %v8755_v40  ;;  %v845_v51 = vsel %vm844_vm5, %v5755_v8, %v8756_v55  ;;  %v848_v54 = vsel %vm844_vm5, %v8756_v55, %v5746_v0  ;;  %v8760_v48 = vld [vmem:[#allocation30_spill] sm:$0xff] }
  0xec   : > { %8754 = vst [vmem:[#allocation38_spill] sm:$0xff] %v6019_v39  ;;  %v743_v46 = vadd.f32 %v735_v5, %v682_v12  ;;  %v744_v58 = vadd.f32 %v736_v32, %v683_v37  ;;  %v745_v61 = vadd.f32 %v737_v34, %v684_v7  ;;  %v762_v35 = vmul.f32 %v5927_v43, %v8757_v38  ;;  %v8759_v12 = vld [vmem:[#allocation21_spill] sm:$0xff]  ;;  %v809_v7 = vpop.permute.xlu2 %808 }
  0xed   : > { %v6046_v44 = vadd.f32 %v759_v4, %v738_v9  ;;  %v6049_v63 = vmul.f32 %v5942_v17, %v846_v1  ;;  %v6052_v50 = vperm.slane %v5056_v2, 0  ;;  %v768_v8 = vadd.f32 %v760_v57, %v739_v33  ;;  %v8761_v4 = vld [vmem:[#allocation23_spill] sm:$0xff] }
  0xee   : > { %v6055_v62 = vmul.f32 %v5981_v52, %v845_v51  ;;  %v863_v0 = vmul.f32 %v5983_v29, %v848_v54  ;;  %v763_v37 = vmul.f32 %v8759_v12, %v5545_v3  ;;  %v769_v5 = vadd.f32 %v761_v24, %v740_v45 }
  0xef   : > { %v5996_v56 = vpop.permute.xlu1 %958  ;;  %8758 = vst [vmem:[#allocation3_spill] sm:$0xff] %v6052_v50  ;;  %v764_v47 = vmul.f32 %v8759_v12, %v5555_v6  ;;  %v765_v32 = vmul.f32 %v8759_v12, %v8755_v40  ;;  %v770_v34 = vadd.f32 %v762_v35, %v741_v16  ;;  %v907_v57 = vsel %vm905_vm6, %v8761_v4, %v8760_v48  ;;  %v8763_v40 = vld [vmem:[#allocation29_spill] sm:$0xff] }
  0xf0   : > { %v963_v10 = vpop.permute.xlu0 %962  ;;  %v906_v3 = vsel %vm905_vm6, %v8760_v48, %v5944_v20  ;;  %v6075_v45 = vperm.slane %v5056_v2, 1  ;;  %v878_v6 = vperm.slane %v6049_v63, 0  ;;  %v766_v1 = vmul.f32 %v8759_v12, %v8757_v38 }
  0xf1   : > { %v909_v16 = vsel %vm905_vm6, %v5944_v20, %v8763_v40  ;;  %v6084_v24 = vperm.slane %v5056_v2, 2  ;;  %v879_v55 = vperm.slane %v6055_v62, 0  ;;  %v880_v51 = vperm.slane %v863_v0, 0 }
  0xf2   : > { %8762 = vst [vmem:[#allocation19_spill] sm:$0xff] %v6075_v45  ;;  %v6087_v54 = vadd.f32 %v763_v37, %v742_v31  ;;  %v6089_v35 = vperm.slane %v5056_v2, 3  ;;  %v772_v48 = vadd.f32 %v764_v47, %v743_v46  ;;  %v773_v9 = vadd.f32 %v765_v32, %v744_v58 }
  0xf3   : > { %8764 = vst [vmem:[#allocation4_spill] sm:$0xff] %v6084_v24  ;;  %v6092_v63 = vmul.f32 %v6001_v26, %v907_v57  ;;  %v6095_v38 = vmul.f32 %v6017_v11, %v906_v3  ;;  %v924_v12 = vmul.f32 %v6019_v39, %v909_v16  ;;  %v825_v20 = vmul.f32 %v817_v23, %v5946_v42 }
  0xf4   : > { %8765 = vst [vmem:[#allocation21_spill] sm:$0xff] %v6089_v35  ;;  %v826_v62 = vmul.f32 %v818_v49, %v5946_v42  ;;  %v827_v31 = vmul.f32 %v8625_v15, %v5946_v42  ;;  %v774_v2 = vadd.f32 %v766_v1, %v745_v61  ;;  %v908_v46 = vsel %vm905_vm6, %v8763_v40, %v8761_v4  ;;  %v6124_v16 = vpop.permute.xlu2 %935 }
  0xf5   : > { %v968_v58 = vsel %vm966_vm7, %v5985_v41, %v963_v10  ;;  %v821_v4 = vmul.f32 %v817_v23, %v809_v7  ;;  %v822_v3 = vmul.f32 %v818_v49, %v809_v7  ;;  %v939_v1 = vperm.slane %v6092_v63, 0 }
  0xf6   : > { %v940_v40 = vperm.slane %v6095_v38, 0  ;;  %v833_v13 = vadd.f32 %v825_v20, %v772_v48  ;;  %v835_v15 = vadd.f32 %v827_v31, %v774_v2  ;;  %v8766_v26 = vperm.slane %v5993_v28, 0 }
  0xf7   : > { %v965_v43 = vpop.permute.xlu1 %964  ;;  %v983_v17 = vmul.f32 %v6075_v45, %v968_v58  ;;  %v8767_v49 = vperm.slane %v5971_v19, 0  ;;  %v829_v48 = vadd.f32 %v821_v4, %v768_v8  ;;  %v947_v20 = vmul.f32 %v939_v1, %v6124_v16 }
  0xf8   : > { %v6065_v33 = vpop.permute.xlu0 %874  ;;  %v967_v0 = vsel %vm966_vm7, %v963_v10, %v965_v43  ;;  %v970_v37 = vsel %vm966_vm7, %v965_v43, %v5996_v56  ;;  %v941_v10 = vperm.slane %v924_v12, 0  ;;  %v834_v43 = vadd.f32 %v826_v62, %v773_v9 }
  0xf9   : > { %v886_v47 = vmul.f32 %v878_v6, %v6065_v33  ;;  %v887_v61 = vmul.f32 %v879_v55, %v6065_v33  ;;  %v888_v32 = vmul.f32 %v880_v51, %v6065_v33  ;;  %v823_v39 = vmul.f32 %v8766_v26, %v809_v7 }
  0xfa   : > { %v984_v60 = vmul.f32 %v6084_v24, %v967_v0  ;;  %v985_v23 = vmul.f32 %v6089_v35, %v970_v37  ;;  %v820_v63 = vmul.f32 %v8767_v49, %v809_v7  ;;  %v830_v9 = vadd.f32 %v822_v3, %v769_v5 }
  0xfb   : > { %v894_v38 = vadd.f32 %v886_v47, %v833_v13  ;;  %v895_v12 = vadd.f32 %v887_v61, %v834_v43  ;;  %v896_v25 = vadd.f32 %v888_v32, %v835_v15  ;;  %v948_v28 = vmul.f32 %v940_v40, %v6124_v16 }
  0xfc   : > { %v949_v26 = vmul.f32 %v941_v10, %v6124_v16  ;;  %v831_v58 = vadd.f32 %v823_v39, %v770_v34  ;;  %v1000_v0 = vperm.slane %v983_v17, 0  ;;  %v1001_v37 = vperm.slane %v984_v60, 0 }
  0xfd   : > { %v1002_v45 = vperm.slane %v985_v23, 0  ;;  %v8768_v13 = vmov %v8767_v49  ;;  %v955_v8 = vadd.f32 %v947_v20, %v894_v38  ;;  %v956_v5 = vadd.f32 %v948_v28, %v895_v12 }
  0xfe   : > { %v824_v7 = vmul.f32 %v8768_v13, %v5946_v42  ;;  %v957_v47 = vadd.f32 %v949_v26, %v896_v25  ;;  %v921_v3 = vmul.f32 %v5990_v30, %v908_v46  ;;  %v969_v17 = vsel %vm966_vm7, %v5996_v56, %v5985_v41 }
  0xff   : > { %v870_v57 = vpop.permute.xlu1 %869  ;;  %v8769_v43 = vperm.slane %v6032_v59, 0 }
 0x100   : > { %v6126_v11 = vpop.permute.xlu0 %930  ;;  %v884_v62 = vmul.f32 %v880_v51, %v870_v57  ;;  %v882_v31 = vmul.f32 %v878_v6, %v870_v57  ;;  %v883_v2 = vmul.f32 %v879_v55, %v870_v57  ;;  %v832_v25 = vadd.f32 %v824_v7, %v6087_v54 }
 0x101   : > { %v945_v19 = vmul.f32 %v941_v10, %v6126_v11  ;;  %v885_v60 = vmul.f32 %v8769_v43, %v6065_v33  ;;  %v943_v46 = vmul.f32 %v939_v1, %v6126_v11  ;;  %v944_v23 = vmul.f32 %v940_v40, %v6126_v11 }
 0x102   : > { %v892_v61 = vadd.f32 %v884_v62, %v831_v58  ;;  %v890_v39 = vadd.f32 %v882_v31, %v829_v48  ;;  %v891_v34 = vadd.f32 %v883_v2, %v830_v9  ;;  %v982_v10 = vmul.f32 %v6052_v50, %v969_v17  ;;  %v992_v48 = vpop.permute.xlu2 %991 }
 0x103   : > { %v8770_v9 = vmov %v8769_v43  ;;  %v1006_v28 = vmul.f32 %v1002_v45, %v992_v48  ;;  %v828_v40 = vadd.f32 %v820_v63, %v6046_v44  ;;  %v1004_v31 = vmul.f32 %v1000_v0, %v992_v48 }
 0x104   : > { %v953_v38 = vadd.f32 %v945_v19, %v892_v61  ;;  %v881_v20 = vmul.f32 %v8770_v9, %v870_v57  ;;  %v951_v54 = vadd.f32 %v943_v46, %v890_v39  ;;  %v952_v62 = vadd.f32 %v944_v23, %v891_v34  ;;  %v8773_v9 = vld [vmem:[#allocation13_spill] sm:$0xff] }
 0x105   : > { %v1005_v2 = vmul.f32 %v1001_v37, %v992_v48  ;;  %v938_v13 = vperm.slane %v921_v3, 0  ;;  %v893_v7 = vadd.f32 %v885_v60, %v832_v25  ;;  %v999_v59 = vperm.slane %v982_v10, 0  ;;  %v8771_v60 = vld [vmem:[#allocation6_spill] sm:$0xff] }
 0x106   : > { %v889_v57 = vadd.f32 %v881_v20, %v828_v40 }
 0x107   : > { %v997_v15 = vpop.permute.xlu1 %996  ;;  %v946_v44 = vmul.f32 %v938_v13, %v6124_v16  ;;  %v1003_v3 = vmul.f32 %v999_v59, %v992_v48 }
 0x108   : > { %v1008_v51 = vmul.f32 %v1000_v0, %v997_v15  ;;  %v1009_v32 = vmul.f32 %v1001_v37, %v997_v15  ;;  %v1010_v4 = vmul.f32 %v1002_v45, %v997_v15  ;;  %v1029_v49 = vpop.permute.xlu0 %1028  ;;  %v1012_v45 = vadd.f32 %v1004_v31, %v951_v54  ;;  %v8774_v54 = vld [vmem:[#allocation14_spill] sm:$0xff] }
 0x109   : > { %v942_v0 = vmul.f32 %v938_v13, %v6126_v11  ;;  %v1007_v37 = vmul.f32 %v999_v59, %v997_v15 }
 0x10a   : > { %v1016_v42 = vadd.f32 %v1008_v51, %v955_v8  ;;  %v1017_v6 = vadd.f32 %v1009_v32, %v956_v5  ;;  %v1018_v55 = vadd.f32 %v1010_v4, %v957_v47  ;;  %v1014_v8 = vadd.f32 %v1006_v28, %v953_v38 }
 0x10b   : > { %v1013_v5 = vadd.f32 %v1005_v2, %v952_v62  ;;  %v950_v51 = vadd.f32 %v942_v0, %v889_v57  ;;  %v954_v32 = vadd.f32 %v946_v44, %v893_v7  ;;  %v8776_v0 = vld [vmem:[#allocation11_spill] sm:$0xff] }
 0x10c   : > { %v1036_v41 = vadd.f32 %v1029_v49, %v1016_v42  ;;  %v1037_v56 = vadd.f32 %v1029_v49, %v1017_v6  ;;  %v1038_v12 = vadd.f32 %v1029_v49, %v1018_v55 }
 0x10d   : > { %v1015_v17 = vadd.f32 %v1007_v37, %v954_v32  ;;  %v1011_v16 = vadd.f32 %v1003_v3, %v950_v51  ;;  %v5060_v51 = vld [vmem:[%s8568_s3 + $0x18] sm:$0xf] }
 0x10e   : > { %v6156_v26 = vmax.f32 %v1036_v41, 0.0  ;;  %v6158_v33 = vmax.f32 %v1037_v56, 0.0  ;;  %v6160_v1 = vmax.f32 %v1038_v12, 0.0  ;;  %v8772_v56 = vld [vmem:[#allocation12_spill] sm:$0xff] }
 0x10f   : > { %v1024_v58 = vpop.permute.xlu1 %1023  ;;  %v1035_v11 = vadd.f32 %v1029_v49, %v1015_v17 }
 0x110   : > { %1095 = vrot.lane.b32.xlu1 %v6160_v1, %s8686_s26  ;;  %1091 = vrot.lane.b32.xlu0 %v6158_v33, %s8686_s26  ;;  %v1034_v63 = vadd.f32 %v1024_v58, %v1014_v8  ;;  %v1032_v47 = vadd.f32 %v1024_v58, %v1012_v45  ;;  %v1033_v61 = vadd.f32 %v1024_v58, %v1013_v5  ;;  %v5059_v8 = vld [vmem:[%s8568_s3 + $0x10] sm:$0xff] }
 0x111   : > { %1087 = vrot.lane.b32.xlu2 %v6156_v26, %s8686_s26  ;;  %v1031_v15 = vadd.f32 %v1024_v58, %v1011_v16  ;;  %v6183_v19 = vmax.f32 %v1035_v11, 0.0 }
 0x112   : > { %v6171_v4 = vmax.f32 %v1034_v63, 0.0  ;;  %v6173_v39 = vmax.f32 %v1032_v47, 0.0  ;;  %v6175_v34 = vmax.f32 %v1033_v61, 0.0 }
 0x113   : > { %v6185_v42 = vmax.f32 %v1031_v15, 0.0 }
 0x118   : > { %1093 = vrot.lane.b32.xlu1 %v6171_v4, %s8686_s26  ;;  %1089 = vrot.lane.b32.xlu0 %v6175_v34, %s8686_s26 }
 0x119   : > { %1085 = vrot.lane.b32.xlu2 %v6173_v39, %s8686_s26 }
 0x120   : > { %1053 = vrot.lane.b32.xlu1 %v6156_v26, %s8688_s25  ;;  %1081 = vrot.lane.b32.xlu0 %v6185_v42, %s8686_s26 }
 0x121   : > { %1083 = vrot.lane.b32.xlu2 %v6183_v19, %s8686_s26 }
 0x128   : > { %1051 = vrot.lane.b32.xlu1 %v6173_v39, %s8688_s25  ;;  %1061 = vrot.lane.b32.xlu0 %v6160_v1, %s8688_s25 }
 0x129   : > { %1057 = vrot.lane.b32.xlu2 %v6158_v33, %s8688_s25 }
 0x130   : > { %1049 = vrot.lane.b32.xlu1 %v6183_v19, %s8688_s25  ;;  %1059 = vrot.lane.b32.xlu0 %v6171_v4, %s8688_s25 }
 0x131   : > { %1055 = vrot.lane.b32.xlu2 %v6175_v34, %s8688_s25 }
 0x138   : > { %1348 = vrot.lane.b32.xlu1 %v6158_v33, %s8690_s27  ;;  %1344 = vrot.lane.b32.xlu0 %v6156_v26, %s8690_s27 }
 0x139   : > { %1047 = vrot.lane.b32.xlu2 %v6185_v42, %s8688_s25  ;;  %s5438_s25 = smov 8  }
 0x140   : > { %1346 = vrot.lane.b32.xlu1 %v6175_v34, %s8690_s27  ;;  %1342 = vrot.lane.b32.xlu0 %v6173_v39, %s8690_s27 }
 0x141   : > { %1352 = vrot.lane.b32.xlu2 %v6160_v1, %s8690_s27 }
 0x148   : > { %1338 = vrot.lane.b32.xlu1 %v6185_v42, %s8690_s27  ;;  %1340 = vrot.lane.b32.xlu0 %v6183_v19, %s8690_s27 }
 0x149   : > { %1350 = vrot.lane.b32.xlu2 %v6171_v4, %s8690_s27  ;;  %s5439_s27 = smov 7  }
 0x150   : > { %1505 = vrot.lane.b32.xlu1 %v6160_v1, %s8694_s28  ;;  %1501 = vrot.lane.b32.xlu0 %v6158_v33, %s8694_s28 }
 0x151   : > { %1497 = vrot.lane.b32.xlu2 %v6156_v26, %s8694_s28 }
 0x158   : > { %1503 = vrot.lane.b32.xlu1 %v6171_v4, %s8694_s28  ;;  %1499 = vrot.lane.b32.xlu0 %v6175_v34, %s8694_s28 }
 0x159   : > { %1495 = vrot.lane.b32.xlu2 %v6173_v39, %s8694_s28 }
 0x160   : > { %1767 = vrot.lane.b32.xlu1 %v6183_v19, %s8692_s30  ;;  %1491 = vrot.lane.b32.xlu0 %v6185_v42, %s8694_s28 }
 0x161   : > { %1493 = vrot.lane.b32.xlu2 %v6183_v19, %s8694_s28 }
 0x168   : > { %1765 = vrot.lane.b32.xlu1 %v6185_v42, %s8692_s30  ;;  %1779 = vrot.lane.b32.xlu0 %v6160_v1, %s8692_s30 }
 0x169   : > { %1775 = vrot.lane.b32.xlu2 %v6158_v33, %s8692_s30 }
 0x16b   : > { %v1088_v6 = vpop.permute.xlu2 %1087 }
 0x170   : > { %1771 = vrot.lane.b32.xlu1 %v6156_v26, %s8692_s30  ;;  %1777 = vrot.lane.b32.xlu0 %v6171_v4, %s8692_s30 }
 0x171   : > { %1773 = vrot.lane.b32.xlu2 %v6175_v34, %s8692_s30 }
 0x173   : > { %v1086_v55 = vpop.permute.xlu2 %1085 }
 0x178   : > { %1928 = vrot.lane.b32.xlu1 %v6158_v33, %s8684_s22  ;;  %1920 = vrot.lane.b32.xlu0 %v6183_v19, %s8684_s22 }
 0x179   : > { %1769 = vrot.lane.b32.xlu2 %v6173_v39, %s8692_s30 }
 0x17b   : > { %v1084_v25 = vpop.permute.xlu2 %1083 }
 0x17c   : > { %v1102_v43 = vsel %vm571_vm0, %v1084_v25, %v1088_v6 }
 0x17d   : > { %v1110_v46 = vmul.f32 %v1102_v43, %v8771_v60 }
 0x17f   : > { %5064 = vmatpush.msk.msra.mxu1 %vm1123_vm8, %v1110_v46 }
 0x180   : > { %1926 = vrot.lane.b32.xlu1 %v6175_v34, %s8684_s22  ;;  %1918 = vrot.lane.b32.xlu0 %v6185_v42, %s8684_s22 }
 0x181   : > { %1932 = vrot.lane.b32.xlu2 %v6160_v1, %s8684_s22 }
 0x182   : > { %v1096_v23 = vpop.permute.xlu1 %1095  ;;  %v1092_v49 = vpop.permute.xlu0 %1091 }
 0x183   : > { %v1058_v38 = vpop.permute.xlu2 %1057  ;;  %v1104_v41 = vsel %vm571_vm0, %v1096_v23, %v1084_v25  ;;  %v1100_v10 = vsel %vm571_vm0, %v1088_v6, %v1092_v49  ;;  %v1098_v48 = vsel %vm571_vm0, %v1092_v49, %v1096_v23  ;;  %v8777_v6 = vld [vmem:[#allocation9_spill] sm:$0xff]  ;;  %v1079_v25 = vld [vmem:[%s8568_s3] sm:$0xff] }
 0x184   : > { %v1109_v12 = vmul.f32 %v1104_v41, %v8772_v56  ;;  %v1111_v20 = vmul.f32 %v1100_v10, %v8773_v9  ;;  %v1112_v62 = vmul.f32 %v1098_v48, %v8774_v54  ;;  %v8779_v41 = vld [vmem:[#allocation8_spill] sm:$0xff]  ;;  %v8780_v10 = vld [vmem:[#allocation10_spill] sm:$0xff] }
 0x186   : > { %5061 = vmatpush.msk.msra.mxu0 %vm1123_vm8, %v1109_v12  ;;  %5067 = vmatpush.msk.msra.mxu2 %vm1123_vm8, %v1111_v20 }
 0x187   : > { %5070 = vmatpush.msk.msra.mxu3 %vm1123_vm8, %v1112_v62 }
 0x188   : > { %1922 = vrot.lane.b32.xlu1 %v6173_v39, %s8684_s22  ;;  %1924 = vrot.lane.b32.xlu0 %v6156_v26, %s8684_s22 }
 0x189   : > { %1930 = vrot.lane.b32.xlu2 %v6171_v4, %s8684_s22 }
 0x18a   : > { %v1094_v28 = vpop.permute.xlu1 %1093  ;;  %v1090_v40 = vpop.permute.xlu0 %1089 }
 0x18b   : > { %v1056_v31 = vpop.permute.xlu2 %1055  ;;  %v1099_v2 = vsel %vm571_vm0, %v1086_v55, %v1090_v40  ;;  %v1097_v58 = vsel %vm571_vm0, %v1090_v40, %v1094_v28 }
 0x18c   : > { %v1107_v13 = vmul.f32 %v1099_v2, %v8773_v9  ;;  %v1108_v7 = vmul.f32 %v1097_v58, %v8774_v54  ;;  %v1080_v58 = vld [vmem:[%s8568_s3 + $0x8] sm:$0xf] }
 0x18e   : > { %1197 = vmatpush.msra.mxu2 %v1107_v13  ;;  %1220 = vmatpush.msra.mxu3 %v1108_v7 }
 0x18f   : > { %5068 = vmatmul.msk.f32.vlgmr.msra.gmra.mxu2 %vm1116_vm9, %v5059_v8  ;;  %5071 = vmatmul.msk.f32.vlgmr.msra.gmra.mxu3 %vm1116_vm9, %v5059_v8 }
 0x190   : > { %2085 = vrot.lane.b32.xlu1 %v6160_v1, %s8775_s10  ;;  %2081 = vrot.lane.b32.xlu0 %v6158_v33, %s8775_s10 }
 0x191   : > { %2073 = vrot.lane.b32.xlu2 %v6183_v19, %s8775_s10 }
 0x192   : > { %v1054_v59 = vpop.permute.xlu1 %1053  ;;  %v1082_v57 = vpop.permute.xlu0 %1081 }
 0x193   : > { %v1066_v45 = vsel %vm512_vm2, %v1054_v59, %v1058_v38  ;;  %v1048_v5 = vpop.permute.xlu2 %1047  ;;  %v1103_v44 = vsel %vm571_vm0, %v1094_v28, %v1082_v57  ;;  %v1101_v63 = vsel %vm571_vm0, %v1082_v57, %v1086_v55 }
 0x194   : > { %v1077_v37 = vmul.f32 %v1066_v45, %v8776_v0  ;;  %v1105_v47 = vmul.f32 %v1103_v44, %v8772_v56  ;;  %v1106_v61 = vmul.f32 %v1101_v63, %v8771_v60  ;;  %v8781_v45 = vld [vmem:[#allocation15_spill] sm:$0xff]  ;;  %v8782_v44 = vld [vmem:[#allocation17_spill] sm:$0xff] }
 0x196   : > { %5079 = vmatpush.msk.msrb.mxu2 %vm1123_vm8, %v1077_v37  ;;  %1151 = vmatpush.msra.mxu0 %v1105_v47 }
 0x197   : > { %1174 = vmatpush.msra.mxu1 %v1106_v61  ;;  %5062 = vmatmul.msk.f32.vlgmr.msra.gmra.mxu0 %vm1116_vm9, %v5059_v8 }
 0x198   : > { %2083 = vrot.lane.b32.xlu1 %v6171_v4, %s8775_s10  ;;  %5065 = vmatmul.msk.f32.vlgmr.msra.gmra.mxu1 %vm1116_vm9, %v5059_v8 }
 0x199   : > { %2079 = vrot.lane.b32.xlu0 %v6175_v34, %s8775_s10  ;;  %2071 = vrot.lane.b32.xlu2 %v6185_v42, %s8775_s10 }
 0x19a   : > { %v1052_v32 = vpop.permute.xlu1 %1051  ;;  %5069 = vmatmul.msk.f32.gmra.mxu2 %vm1116_vm9, %v5060_v51  ;;  %v1062_v3 = vpop.permute.xlu0 %1061  ;;  %5072 = vmatmul.msk.f32.gmra.mxu3 %vm1116_vm9, %v5060_v51 }
 0x19b   : > { %v6326_v17 = vpop.permute.xlu2 %1352  ;;  %v1065_v16 = vsel %vm512_vm2, %v1052_v32, %v1056_v31  ;;  %v1064_v11 = vsel %vm512_vm2, %v1058_v38, %v1062_v3  ;;  %v1067_v40 = vsel %vm512_vm2, %v1048_v5, %v1052_v32 }
 0x19c   : > { %v1073_v15 = vmul.f32 %v1065_v16, %v8776_v0  ;;  %v1078_v55 = vmul.f32 %v1064_v11, %v8777_v6  ;;  %v1072_v2 = vmul.f32 %v1067_v40, %v8780_v10  ;;  %v5085_v11 = vld [vmem:[%s8568_s3 + $0x20] sm:$0xff] }
 0x19e   : > { %1307 = vmatpush.msrb.mxu2 %v1073_v15  ;;  %5082 = vmatpush.msk.msrb.mxu3 %vm1123_vm8, %v1078_v55  ;;  %v2377_v15 = vld [vmem:[%s8569_s4] sm:$0xff]  ;;  %v2378_v55 = vld [vmem:[%s8569_s4 + $0x8] sm:$0xf] }
 0x19f   : > { %5063 = vmatmul.msk.f32.gmra.mxu0 %vm1116_vm9, %v5060_v51 }
 0x1a0   : > { %2226 = vrot.lane.b32.xlu1 %v6183_v19, %s8778_s23  ;;  %5066 = vmatmul.msk.f32.gmra.mxu1 %vm1116_vm9, %v5060_v51 }
 0x1a1   : > { %2075 = vrot.lane.b32.xlu0 %v6173_v39, %s8775_s10  ;;  %2077 = vrot.lane.b32.xlu2 %v6156_v26, %s8775_s10 }
 0x1a2   : > { %v1050_v43 = vpop.permute.xlu1 %1049  ;;  %5080 = vmatmul.msk.f32.vlgmr.msrb.gmra.mxu2 %vm1116_vm9, %v1079_v25  ;;  %v1060_v46 = vpop.permute.xlu0 %1059 }
 0x1a3   : > { %v1068_v23 = vsel %vm512_vm2, %v1050_v43, %v1054_v59  ;;  %v1070_v49 = vsel %vm512_vm2, %v1062_v3, %v1050_v43  ;;  %v1351_v38 = vpop.permute.xlu2 %1350  ;;  %v1063_v20 = vsel %vm512_vm2, %v1056_v31, %v1060_v46  ;;  %v1069_v28 = vsel %vm512_vm2, %v1060_v46, %v1048_v5 }
 0x1a4   : > { %v1075_v12 = vmul.f32 %v1070_v49, %v8779_v41  ;;  %v1076_v48 = vmul.f32 %v1068_v23, %v8780_v10  ;;  %v1074_v62 = vmul.f32 %v1063_v20, %v8777_v6  ;;  %v1071_v31 = vmul.f32 %v1069_v28, %v8779_v41  ;;  %v8783_v20 = vld [vmem:[#allocation7_spill] sm:$0xff]  ;;  %v8784_v28 = vld [vmem:[#allocation16_spill] sm:$0xff] }
 0x1a6   : > { %5073 = vmatpush.msk.msrb.mxu0 %vm1123_vm8, %v1075_v12  ;;  %5076 = vmatpush.msk.msrb.mxu1 %vm1123_vm8, %v1076_v48 }
 0x1a7   : > { %1330 = vmatpush.msrb.mxu3 %v1074_v62 }
 0x1a8   : > { %5083 = vmatmul.msk.f32.vlgmr.msrb.gmra.mxu3 %vm1116_vm9, %v1079_v25  ;;  %2224 = vrot.lane.b32.xlu1 %v6185_v42, %s8778_s23 }
 0x1a9   : > { %2238 = vrot.lane.b32.xlu0 %v6160_v1, %s8778_s23  ;;  %2234 = vrot.lane.b32.xlu2 %v6158_v33, %s8778_s23 }
 0x1aa   : > { %1261 = vmatpush.msrb.mxu0 %v1071_v31  ;;  %1284 = vmatpush.msrb.mxu1 %v1072_v2  ;;  %v1349_v13 = vpop.permute.xlu1 %1348  ;;  %v1345_v7 = vpop.permute.xlu0 %1344  ;;  %v5086_v31 = vld [vmem:[%s8568_s3 + $0x28] sm:$0xf] }
 0x1ab   : > { %v1355_v8 = vsel %vm632_vm1, %v1349_v13, %v6326_v17  ;;  %v1498_v59 = vpop.permute.xlu2 %1497  ;;  %5077 = vmatmul.msk.f32.vlgmr.msrb.gmra.mxu1 %vm1116_vm9, %v1079_v25  ;;  %5074 = vmatmul.msk.f32.vlgmr.msrb.gmra.mxu0 %vm1116_vm9, %v1079_v25  ;;  %v1357_v57 = vsel %vm632_vm1, %v1345_v7, %v1349_v13 }
 0x1ac   : > { %v1369_v5 = vmul.f32 %v1355_v8, %v8781_v45  ;;  %5081 = vmatmul.msk.f32.gmra.mxu2 %vm1116_vm9, %v1080_v58  ;;  %v1368_v63 = vmul.f32 %v1357_v57, %v8782_v44 }
 0x1ae   : > { %5096 = vmatpush.msk.msra.mxu3 %vm1123_vm8, %v1369_v5  ;;  %5093 = vmatpush.msk.msra.mxu2 %vm1123_vm8, %v1368_v63 }
 0x1b0   : > { %5084 = vmatmul.msk.f32.gmra.mxu3 %vm1116_vm9, %v1080_v58  ;;  %2230 = vrot.lane.b32.xlu1 %v6156_v26, %s8778_s23 }
 0x1b1   : > { %2236 = vrot.lane.b32.xlu0 %v6171_v4, %s8778_s23  ;;  %2232 = vrot.lane.b32.xlu2 %v6175_v34, %s8778_s23 }
 0x1b2   : > { %v1347_v37 = vpop.permute.xlu1 %1346  ;;  %v1343_v47 = vpop.permute.xlu0 %1342 }
 0x1b3   : > { %v1354_v61 = vsel %vm632_vm1, %v1347_v37, %v1351_v38  ;;  %v6396_v51 = vpop.permute.xlu2 %1495  ;;  %5078 = vmatmul.msk.f32.gmra.mxu1 %vm1116_vm9, %v1080_v58  ;;  %5075 = vmatmul.msk.f32.gmra.mxu0 %vm1116_vm9, %v1080_v58  ;;  %v1356_v32 = vsel %vm632_vm1, %v1343_v47, %v1347_v37 }
 0x1b4   : > { %v1365_v3 = vmul.f32 %v1354_v61, %v8781_v45  ;;  %v1364_v16 = vmul.f32 %v1356_v32, %v8782_v44  ;;  %v8786_v61 = vld [vmem:[#allocation18_spill] sm:$0xff] }
 0x1b6   : > { %1475 = vmatpush.msra.mxu3 %v1365_v3  ;;  %1452 = vmatpush.msra.mxu2 %v1364_v16 }
 0x1b7   : > { %5094 = vmatmul.msk.f32.vlgmr.msra.gmra.mxu2 %vm1116_vm9, %v5085_v11 }
 0x1b8   : > { %5097 = vmatmul.msk.f32.vlgmr.msra.gmra.mxu3 %vm1116_vm9, %v5085_v11  ;;  %2386 = vperm.xlu1 %5370, %v2378_v55  }
 0x1b9   : > { %2381 = vperm.xlu0 %5372, %v2377_v15   ;;  %2228 = vrot.lane.b32.xlu2 %v6173_v39, %s8778_s23 }
 0x1ba   : > { %v1339_v25 = vpop.permute.xlu1 %1338  ;;  %v1341_v43 = vpop.permute.xlu0 %1340 }
 0x1bb   : > { %v1494_v46 = vpop.permute.xlu2 %1493  ;;  %v1359_v23 = vsel %vm632_vm1, %v1341_v43, %v1345_v7  ;;  %v1361_v49 = vsel %vm632_vm1, %v6326_v17, %v1341_v43  ;;  %v1358_v12 = vsel %vm632_vm1, %v1339_v25, %v1343_v47  ;;  %v1360_v48 = vsel %vm632_vm1, %v1351_v38, %v1339_v25  ;;  %v8785_v38 = vld [vmem:[#allocation20_spill] sm:$0xff] }
 0x1bc   : > { %v1366_v62 = vmul.f32 %v1361_v49, %v8783_v20  ;;  %v1367_v40 = vmul.f32 %v1359_v23, %v8784_v28  ;;  %v1512_v2 = vsel %vm693_vm3, %v1494_v46, %v1498_v59  ;;  %v1362_v17 = vmul.f32 %v1360_v48, %v8783_v20 }
 0x1bd   : > { %v1363_v58 = vmul.f32 %v1358_v12, %v8784_v28  ;;  %v1520_v13 = vmul.f32 %v1512_v2, %v8785_v38 }
 0x1be   : > { %5087 = vmatpush.msk.msra.mxu0 %vm1123_vm8, %v1366_v62  ;;  %5090 = vmatpush.msk.msra.mxu1 %vm1123_vm8, %v1367_v40 }
 0x1bf   : > { %5095 = vmatmul.msk.f32.gmra.mxu2 %vm1116_vm9, %v5086_v31 }
 0x1c0   : > { %5098 = vmatmul.msk.f32.gmra.mxu3 %vm1116_vm9, %v5086_v31  ;;  %1406 = vmatpush.msra.mxu0 %v1362_v17 }
 0x1c1   : > { %1429 = vmatpush.msra.mxu1 %v1363_v58  ;;  %5088 = vmatmul.msk.f32.vlgmr.msra.gmra.mxu0 %vm1116_vm9, %v5085_v11 }
 0x1c2   : > { %5091 = vmatmul.msk.f32.vlgmr.msra.gmra.mxu1 %vm1116_vm9, %v5085_v11  ;;  %v1506_v7 = vpop.permute.xlu1 %1505  ;;  %v1502_v8 = vpop.permute.xlu0 %1501 }
 0x1c3   : > { %5104 = vmatpush.msk.msrb.mxu1 %vm1123_vm8, %v1520_v13  ;;  %v1514_v57 = vsel %vm693_vm3, %v1506_v7, %v1494_v46  ;;  %v1776_v5 = vpop.permute.xlu2 %1775  ;;  %v1510_v63 = vsel %vm693_vm3, %v1498_v59, %v1502_v8  ;;  %v1508_v37 = vsel %vm693_vm3, %v1502_v8, %v1506_v7  ;;  %v5099_v46 = vld [vmem:[%s8568_s3 + $0x30] sm:$0xff] }
 0x1c4   : > { %v1519_v47 = vmul.f32 %v1514_v57, %v5850_v21  ;;  %v1521_v32 = vmul.f32 %v1510_v63, %v8786_v61  ;;  %v1522_v3 = vmul.f32 %v1508_v37, %v5869_v36 }
 0x1c6   : > { %5101 = vmatpush.msk.msrb.mxu0 %vm1123_vm8, %v1519_v47  ;;  %5107 = vmatpush.msk.msrb.mxu2 %vm1123_vm8, %v1521_v32 }
 0x1c7   : > { %5110 = vmatpush.msk.msrb.mxu3 %vm1123_vm8, %v1522_v3 }
 0x1c9   : > { %5089 = vmatmul.msk.f32.gmra.mxu0 %vm1116_vm9, %v5086_v31 }
 0x1ca   : > { %5092 = vmatmul.msk.f32.gmra.mxu1 %vm1116_vm9, %v5086_v31  ;;  %v1504_v59 = vpop.permute.xlu1 %1503  ;;  %v1500_v16 = vpop.permute.xlu0 %1499 }
 0x1cb   : > { %v1774_v11 = vpop.permute.xlu2 %1773  ;;  %v1509_v15 = vsel %vm693_vm3, %v6396_v51, %v1500_v16  ;;  %v1507_v55 = vsel %vm693_vm3, %v1500_v16, %v1504_v59 }
 0x1cc   : > { %v1517_v25 = vmul.f32 %v1509_v15, %v8786_v61  ;;  %v1518_v43 = vmul.f32 %v1507_v55, %v5869_v36 }
 0x1ce   : > { %1605 = vmatpush.msrb.mxu2 %v1517_v25  ;;  %1628 = vmatpush.msrb.mxu3 %v1518_v43 }
 0x1cf   : > { %5108 = vmatmul.msk.f32.vlgmr.msrb.gmra.mxu2 %vm1116_vm9, %v5099_v46  ;;  %5111 = vmatmul.msk.f32.vlgmr.msrb.gmra.mxu3 %vm1116_vm9, %v5099_v46 }
 0x1d0   : > { %5121 = vmatpush.msk.msra.mxu2 %vm1123_vm8, %v6158_v33  ;;  %5124 = vmatpush.msk.msra.mxu3 %vm1123_vm8, %v6160_v1  ;;  %v5100_v1 = vld [vmem:[%s8568_s3 + $0x38] sm:$0xf] }
 0x1d2   : > { %v1768_v23 = vpop.permute.xlu1 %1767  ;;  %1726 = vmatpush.msra.mxu2 %v6175_v34  ;;  %1749 = vmatpush.msra.mxu3 %v6171_v4  ;;  %v1492_v49 = vpop.permute.xlu0 %1491 }
 0x1d3   : > { %v1770_v12 = vpop.permute.xlu2 %1769  ;;  %v1511_v48 = vsel %vm693_vm3, %v1492_v49, %v6396_v51  ;;  %v1513_v62 = vsel %vm693_vm3, %v1504_v59, %v1492_v49  ;;  %v5114_v59 = vld [vmem:[%s8568_s3 + $0x48] sm:$0xf] }
 0x1d4   : > { %v1515_v40 = vmul.f32 %v1513_v62, %v5850_v21  ;;  %v1516_v33 = vmul.f32 %v1511_v48, %v8785_v38  ;;  %v1783_v47 = vsel %vm783_vm4, %v1770_v12, %v1774_v11 }
 0x1d6   : > { %1559 = vmatpush.msrb.mxu0 %v1515_v40  ;;  %1582 = vmatpush.msrb.mxu1 %v1516_v33 }
 0x1d7   : > { %5102 = vmatmul.msk.f32.vlgmr.msrb.gmra.mxu0 %vm1116_vm9, %v5099_v46  ;;  %5105 = vmatmul.msk.f32.vlgmr.msrb.gmra.mxu1 %vm1116_vm9, %v5099_v46 }
 0x1d8   : > { %5109 = vmatmul.msk.f32.gmra.mxu2 %vm1116_vm9, %v5100_v1  ;;  %5112 = vmatmul.msk.f32.gmra.mxu3 %vm1116_vm9, %v5100_v1 }
 0x1d9   : > { %5115 = vmatpush.msk.msra.mxu0 %vm1123_vm8, %v6183_v19  ;;  %5118 = vmatpush.msk.msra.mxu1 %vm1123_vm8, %v6156_v26  ;;  %v5113_v26 = vld [vmem:[%s8568_s3 + $0x40] sm:$0xff] }
 0x1da   : > { %v1766_v4 = vpop.permute.xlu1 %1765  ;;  %v1780_v34 = vpop.permute.xlu0 %1779 }
 0x1db   : > { %v1933_v51 = vpop.permute.xlu2 %1932  ;;  %1680 = vmatpush.msra.mxu0 %v6185_v42  ;;  %1703 = vmatpush.msra.mxu1 %v6173_v39  ;;  %v1782_v31 = vsel %vm783_vm4, %v1776_v5, %v1780_v34  ;;  %v1788_v2 = vsel %vm783_vm4, %v1780_v34, %v1768_v23 }
 0x1dc   : > { %v1795_v17 = vmul.f32 %v1782_v31, %v5893_v18  ;;  %v1796_v19 = vmul.f32 %v1788_v2, %v5895_v27 }
 0x1de   : > { %5135 = vmatpush.msk.msrb.mxu2 %vm1123_vm8, %v1795_v17  ;;  %5138 = vmatpush.msk.msrb.mxu3 %vm1123_vm8, %v1796_v19 }
 0x1df   : > { %5103 = vmatmul.msk.f32.gmra.mxu0 %vm1116_vm9, %v5100_v1  ;;  %5106 = vmatmul.msk.f32.gmra.mxu1 %vm1116_vm9, %v5100_v1 }
 0x1e0   : > { %5122 = vmatmul.msk.f32.vlgmr.msra.gmra.mxu2 %vm1116_vm9, %v5113_v26  ;;  %5125 = vmatmul.msk.f32.vlgmr.msra.gmra.mxu3 %vm1116_vm9, %v5113_v26 }
 0x1e2   : > { %v1772_v39 = vpop.permute.xlu1 %1771  ;;  %v1778_v42 = vpop.permute.xlu0 %1777 }
 0x1e3   : > { %v1784_v58 = vsel %vm783_vm4, %v1772_v39, %v1776_v5  ;;  %v1786_v13 = vsel %vm783_vm4, %v1768_v23, %v1772_v39  ;;  %v1931_v7 = vpop.permute.xlu2 %1930  ;;  %v1781_v8 = vsel %vm783_vm4, %v1774_v11, %v1778_v42  ;;  %v1787_v57 = vsel %vm783_vm4, %v1778_v42, %v1766_v4  ;;  %v8787_v39 = vld [vmem:[#allocation31_spill] sm:$0xff] }
 0x1e4   : > { %v1793_v63 = vmul.f32 %v1786_v13, %v5881_v22  ;;  %v1794_v37 = vmul.f32 %v1784_v58, %v5891_v14  ;;  %v1785_v5 = vsel %vm783_vm4, %v1766_v4, %v1770_v12  ;;  %v1791_v32 = vmul.f32 %v1781_v8, %v5893_v18  ;;  %v5127_v12 = vld [vmem:[%s8568_s3 + $0x50] sm:$0xff] }
 0x1e5   : > { %v1792_v3 = vmul.f32 %v1787_v57, %v5895_v27  ;;  %v1789_v16 = vmul.f32 %v1785_v5, %v5881_v22  ;;  %v1790_v11 = vmul.f32 %v1783_v47, %v5891_v14  ;;  %v8788_v58 = vld [vmem:[#allocation32_spill] sm:$0xff] }
 0x1e6   : > { %5129 = vmatpush.msk.msrb.mxu0 %vm1123_vm8, %v1793_v63  ;;  %5132 = vmatpush.msk.msrb.mxu1 %vm1123_vm8, %v1794_v37  ;;  %v5141_v63 = vld [vmem:[%s8568_s3 + $0x60] sm:$0xff] }
 0x1e7   : > { %1879 = vmatpush.msrb.mxu2 %v1791_v32  ;;  %1902 = vmatpush.msrb.mxu3 %v1792_v3 }
 0x1e8   : > { %5116 = vmatmul.msk.f32.vlgmr.msra.gmra.mxu0 %vm1116_vm9, %v5113_v26  ;;  %5119 = vmatmul.msk.f32.vlgmr.msra.gmra.mxu1 %vm1116_vm9, %v5113_v26 }
 0x1e9   : > { %5123 = vmatmul.msk.f32.gmra.mxu2 %vm1116_vm9, %v5114_v59  ;;  %5126 = vmatmul.msk.f32.gmra.mxu3 %vm1116_vm9, %v5114_v59 }
 0x1ea   : > { %1833 = vmatpush.msrb.mxu0 %v1789_v16  ;;  %1856 = vmatpush.msrb.mxu1 %v1790_v11  ;;  %v1929_v15 = vpop.permute.xlu1 %1928  ;;  %v1921_v55 = vpop.permute.xlu0 %1920 }
 0x1eb   : > { %v1935_v25 = vsel %vm844_vm5, %v1929_v15, %v1933_v51  ;;  %v2074_v43 = vpop.permute.xlu2 %2073  ;;  %v1941_v46 = vsel %vm844_vm5, %v1933_v51, %v1921_v55  ;;  %v5128_v51 = vld [vmem:[%s8568_s3 + $0x58] sm:$0xf] }
 0x1ec   : > { %v1948_v23 = vmul.f32 %v1935_v25, %v5981_v52  ;;  %v1949_v49 = vmul.f32 %v1941_v46, %v5983_v29  ;;  %v8790_v25 = vld [vmem:[#allocation36_spill] sm:$0xff] }
 0x1ee   : > { %5149 = vmatpush.msk.msra.mxu2 %vm1123_vm8, %v1948_v23  ;;  %5152 = vmatpush.msk.msra.mxu3 %vm1123_vm8, %v1949_v49  ;;  %v8791_v23 = vld [vmem:[#allocation37_spill] sm:$0xff] }
 0x1f0   : > { %5117 = vmatmul.msk.f32.gmra.mxu0 %vm1116_vm9, %v5114_v59  ;;  %5120 = vmatmul.msk.f32.gmra.mxu1 %vm1116_vm9, %v5114_v59 }
 0x1f1   : > { %5136 = vmatmul.msk.f32.vlgmr.msrb.gmra.mxu2 %vm1116_vm9, %v5127_v12  ;;  %5139 = vmatmul.msk.f32.vlgmr.msrb.gmra.mxu3 %vm1116_vm9, %v5127_v12 }
 0x1f2   : > { %v1927_v48 = vpop.permute.xlu1 %1926  ;;  %v1919_v62 = vpop.permute.xlu0 %1918 }
 0x1f3   : > { %v1934_v40 = vsel %vm844_vm5, %v1927_v48, %v1931_v7  ;;  %v6554_v33 = vpop.permute.xlu2 %2071  ;;  %v1940_v1 = vsel %vm844_vm5, %v1931_v7, %v1919_v62 }
 0x1f4   : > { %v1944_v4 = vmul.f32 %v1934_v40, %v5981_v52  ;;  %v1945_v34 = vmul.f32 %v1940_v1, %v5983_v29 }
 0x1f6   : > { %2032 = vmatpush.msra.mxu2 %v1944_v4  ;;  %2055 = vmatpush.msra.mxu3 %v1945_v34 }
 0x1f8   : > { %5130 = vmatmul.msk.f32.vlgmr.msrb.gmra.mxu0 %vm1116_vm9, %v5127_v12  ;;  %5133 = vmatmul.msk.f32.vlgmr.msrb.gmra.mxu1 %vm1116_vm9, %v5127_v12  ;;  %v5142_v12 = vld [vmem:[%s8568_s3 + $0x68] sm:$0xf] }
 0x1f9   : > { %5137 = vmatmul.msk.f32.gmra.mxu2 %vm1116_vm9, %v5128_v51  ;;  %5140 = vmatmul.msk.f32.gmra.mxu3 %vm1116_vm9, %v5128_v51 }
 0x1fa   : > { %v1923_v31 = vpop.permute.xlu1 %1922  ;;  %v1925_v2 = vpop.permute.xlu0 %1924 }
 0x1fb   : > { %v2078_v17 = vpop.permute.xlu2 %2077  ;;  %v1937_v19 = vsel %vm844_vm5, %v1925_v2, %v1929_v15  ;;  %v1939_v26 = vsel %vm844_vm5, %v1921_v55, %v1925_v2  ;;  %v1936_v7 = vsel %vm844_vm5, %v1923_v31, %v1927_v48  ;;  %v1938_v8 = vsel %vm844_vm5, %v1919_v62, %v1923_v31  ;;  %v8789_v15 = vld [vmem:[#allocation38_spill] sm:$0xff] }
 0x1fc   : > { %v1946_v42 = vmul.f32 %v1939_v26, %v8787_v39  ;;  %v1947_v13 = vmul.f32 %v1937_v19, %v8788_v58  ;;  %v2092_v57 = vsel %vm905_vm6, %v2074_v43, %v2078_v17  ;;  %v1942_v37 = vmul.f32 %v1938_v8, %v8787_v39 }
 0x1fd   : > { %v1943_v47 = vmul.f32 %v1936_v7, %v8788_v58  ;;  %v2099_v5 = vmul.f32 %v2092_v57, %v5990_v30  ;;  %v5156_v7 = vld [vmem:[%s8568_s3 + $0x78] sm:$0xf] }
 0x1fe   : > { %5143 = vmatpush.msk.msra.mxu0 %vm1123_vm8, %v1946_v42  ;;  %5146 = vmatpush.msk.msra.mxu1 %vm1123_vm8, %v1947_v13 }
 0x200   : > { %5131 = vmatmul.msk.f32.gmra.mxu0 %vm1116_vm9, %v5128_v51  ;;  %5134 = vmatmul.msk.f32.gmra.mxu1 %vm1116_vm9, %v5128_v51  ;;  %v5155_v51 = vld [vmem:[%s8568_s3 + $0x70] sm:$0xff] }
 0x201   : > { %5150 = vmatmul.msk.f32.vlgmr.msra.gmra.mxu2 %vm1116_vm9, %v5141_v63  ;;  %5153 = vmatmul.msk.f32.vlgmr.msra.gmra.mxu3 %vm1116_vm9, %v5141_v63 }
 0x202   : > { %1986 = vmatpush.msra.mxu0 %v1942_v37  ;;  %2009 = vmatpush.msra.mxu1 %v1943_v47  ;;  %v2086_v32 = vpop.permute.xlu1 %2085  ;;  %v2082_v3 = vpop.permute.xlu0 %2081 }
 0x203   : > { %v2094_v59 = vsel %vm905_vm6, %v2086_v32, %v2074_v43  ;;  %v2090_v16 = vsel %vm905_vm6, %v2078_v17, %v2082_v3  ;;  %v2088_v11 = vsel %vm905_vm6, %v2082_v3, %v2086_v32  ;;  %v2235_v40 = vpop.permute.xlu2 %2234 }
 0x204   : > { %5157 = vmatpush.msk.msrb.mxu0 %vm1123_vm8, %v2099_v5  ;;  %v2102_v55 = vmul.f32 %v2094_v59, %v8789_v15  ;;  %v2100_v46 = vmul.f32 %v2090_v16, %v8790_v25  ;;  %v2101_v49 = vmul.f32 %v2088_v11, %v8791_v23 }
 0x206   : > { %5166 = vmatpush.msk.msrb.mxu3 %vm1123_vm8, %v2102_v55  ;;  %5160 = vmatpush.msk.msrb.mxu1 %vm1123_vm8, %v2100_v46 }
 0x207   : > { %5163 = vmatpush.msk.msrb.mxu2 %vm1123_vm8, %v2101_v49 }
 0x208   : > { %5144 = vmatmul.msk.f32.vlgmr.msra.gmra.mxu0 %vm1116_vm9, %v5141_v63  ;;  %5147 = vmatmul.msk.f32.vlgmr.msra.gmra.mxu1 %vm1116_vm9, %v5141_v63 }
 0x209   : > { %5151 = vmatmul.msk.f32.gmra.mxu2 %vm1116_vm9, %v5142_v12  ;;  %5154 = vmatmul.msk.f32.gmra.mxu3 %vm1116_vm9, %v5142_v12 }
 0x20a   : > { %v2084_v43 = vpop.permute.xlu1 %2083 }
 0x20b   : > { %v2080_v48 = vpop.permute.xlu0 %2079  ;;  %v2093_v62 = vsel %vm905_vm6, %v2084_v43, %v6554_v33  ;;  %v2233_v13 = vpop.permute.xlu2 %2232 }
 0x20c   : > { %v2087_v1 = vsel %vm905_vm6, %v2080_v48, %v2084_v43  ;;  %v2098_v4 = vmul.f32 %v2093_v62, %v8789_v15 }
 0x20d   : > { %v2097_v34 = vmul.f32 %v2087_v1, %v8791_v23 }
 0x20e   : > { %2208 = vmatpush.msrb.mxu3 %v2098_v4 }
 0x20f   : > { %2185 = vmatpush.msrb.mxu2 %v2097_v34 }
 0x210   : > { %5145 = vmatmul.msk.f32.gmra.mxu0 %vm1116_vm9, %v5142_v12  ;;  %5148 = vmatmul.msk.f32.gmra.mxu1 %vm1116_vm9, %v5142_v12 }
 0x211   : > { %5164 = vmatmul.msk.f32.vlgmr.msrb.gmra.mxu2 %vm1116_vm9, %v5155_v51  ;;  %5167 = vmatmul.msk.f32.vlgmr.msrb.gmra.mxu3 %vm1116_vm9, %v5155_v51 }
 0x212   : > { %v2227_v31 = vpop.permute.xlu1 %2226  ;;  %v6637_v8 = vpop.f32.mrf.mxu2 }
 0x213   : > { %v2076_v2 = vpop.permute.xlu0 %2075  ;;  %v2229_v16 = vpop.permute.xlu2 %2228 }
 0x214   : > { %v2089_v17 = vsel %vm905_vm6, %v2076_v2, %v2080_v48  ;;  %v2091_v19 = vsel %vm905_vm6, %v6554_v33, %v2076_v2  ;;  %v6641_v33 = vpop.f32.mrf.mxu3  ;;  %v6651_v59 = vpop.f32.mrf.mxu0  ;;  %v2242_v46 = vsel %vm966_vm7, %v2229_v16, %v2233_v13 }
 0x215   : > { %v2095_v26 = vmul.f32 %v2091_v19, %v5990_v30  ;;  %v2096_v42 = vmul.f32 %v2089_v17, %v8790_v25  ;;  %v6649_v3 = vpop.f32.mrf.mxu1 }
 0x217   : > { %2139 = vmatpush.msrb.mxu0 %v2095_v26  ;;  %2162 = vmatpush.msrb.mxu1 %v2096_v42 }
 0x218   : > { %5158 = vmatmul.msk.f32.vlgmr.msrb.gmra.mxu0 %vm1116_vm9, %v5155_v51  ;;  %5161 = vmatmul.msk.f32.vlgmr.msrb.gmra.mxu1 %vm1116_vm9, %v5155_v51  ;;  %v8792_v51 = vld [vmem:[#allocation19_spill] sm:$0xff] }
 0x219   : > { %5165 = vmatmul.msk.f32.gmra.mxu2 %vm1116_vm9, %v5156_v7  ;;  %5168 = vmatmul.msk.f32.gmra.mxu3 %vm1116_vm9, %v5156_v7 }
 0x21a   : > { %v2225_v57 = vpop.permute.xlu1 %2224 }
 0x21b   : > { %v2239_v63 = vpop.permute.xlu0 %2238  ;;  %v2244_v49 = vsel %vm966_vm7, %v2225_v57, %v2229_v16 }
 0x21c   : > { %v2241_v37 = vsel %vm966_vm7, %v2235_v40, %v2239_v63  ;;  %v2247_v47 = vsel %vm966_vm7, %v2239_v63, %v2227_v31  ;;  %v6684_v26 = vpop.f32.mrf.mxu0  ;;  %v2248_v42 = vmul.f32 %v2244_v49, %v6052_v50  ;;  %v5170_v63 = vld [vmem:[%s8568_s3 + $0x88] sm:$0xf] }
 0x21d   : > { %v2254_v5 = vmul.f32 %v2241_v37, %v6084_v24  ;;  %v2255_v32 = vmul.f32 %v2247_v47, %v6089_v35  ;;  %v6657_v11 = vpop.f32.mrf.mxu2  ;;  %v6663_v12 = vpop.f32.mrf.mxu3 }
 0x21f   : > { %5177 = vmatpush.msk.msra.mxu2 %vm1123_vm8, %v2254_v5  ;;  %5180 = vmatpush.msk.msra.mxu3 %vm1123_vm8, %v2255_v32 }
 0x220   : > { %5159 = vmatmul.msk.f32.gmra.mxu0 %vm1116_vm9, %v5156_v7  ;;  %5162 = vmatmul.msk.f32.gmra.mxu1 %vm1116_vm9, %v5156_v7 }
 0x222   : > { %v2231_v55 = vpop.permute.xlu1 %2230 }
 0x223   : > { %v2237_v43 = vpop.permute.xlu0 %2236  ;;  %v2243_v48 = vsel %vm966_vm7, %v2231_v55, %v2235_v40  ;;  %v2245_v62 = vsel %vm966_vm7, %v2227_v31, %v2231_v55  ;;  %v5169_v40 = vld [vmem:[%s8568_s3 + $0x80] sm:$0xff]  ;;  %v6682_v31 = vpop.f32.mrf.mxu1 }
 0x224   : > { %v2240_v1 = vsel %vm966_vm7, %v2233_v13, %v2237_v43  ;;  %v2246_v4 = vsel %vm966_vm7, %v2237_v43, %v2225_v57  ;;  %v2252_v34 = vmul.f32 %v2245_v62, %v6052_v50  ;;  %v2253_v2 = vmul.f32 %v2243_v48, %v8792_v51 }
 0x225   : > { %v2250_v17 = vmul.f32 %v2240_v1, %v6084_v24  ;;  %v2251_v19 = vmul.f32 %v2246_v4, %v6089_v35  ;;  %v2249_v13 = vmul.f32 %v2242_v46, %v8792_v51  ;;  %v1309_v7 = vpop.f32.mrf.mxu2 }
 0x226   : > { %5171 = vmatpush.msk.msra.mxu0 %vm1123_vm8, %v2252_v34  ;;  %5174 = vmatpush.msk.msra.mxu1 %vm1123_vm8, %v2253_v2 }
 0x227   : > { %2338 = vmatpush.msra.mxu2 %v2250_v17  ;;  %2361 = vmatpush.msra.mxu3 %v2251_v19 }
 0x228   : > { %5178 = vmatmul.msk.f32.vlgmr.msra.gmra.mxu2 %vm1116_vm9, %v5169_v40  ;;  %5181 = vmatmul.msk.f32.vlgmr.msra.gmra.mxu3 %vm1116_vm9, %v5169_v40  ;;  %v1263_v47 = vpop.f32.mrf.mxu0 }
 0x229   : > { %2292 = vmatpush.msra.mxu0 %v2248_v42  ;;  %2315 = vmatpush.msra.mxu1 %v2249_v13  ;;  %v1264_v56 = vadd.f32 %v1263_v47, %v6651_v59 }
 0x22a   : > { %5172 = vmatmul.msk.f32.vlgmr.msra.gmra.mxu0 %vm1116_vm9, %v5169_v40  ;;  %5175 = vmatmul.msk.f32.vlgmr.msra.gmra.mxu1 %vm1116_vm9, %v5169_v40 }
 0x22b   : > { %v1332_v57 = vpop.f32.mrf.mxu3  ;;  %v1286_v37 = vpop.f32.mrf.mxu1 }
 0x22c   : > { %v1287_v45 = vadd.f32 %v1286_v37, %v6649_v3 }
 0x22f   : > { %v6699_v5 = vpop.f32.mrf.mxu2 }
 0x230   : > { %5179 = vmatmul.msk.f32.gmra.mxu2 %vm1116_vm9, %v5170_v63  ;;  %5182 = vmatmul.msk.f32.gmra.mxu3 %vm1116_vm9, %v5170_v63  ;;  %v1266_v55 = vpop.f32.mrf.mxu0 }
 0x231   : > { %v1267_v3 = vadd.f32 %v1266_v55, %v6684_v26 }
 0x232   : > { %5173 = vmatmul.msk.f32.gmra.mxu0 %vm1116_vm9, %v5170_v63  ;;  %5176 = vmatmul.msk.f32.gmra.mxu1 %vm1116_vm9, %v5170_v63 }
 0x233   : > { %v6701_v32 = vpop.f32.mrf.mxu3  ;;  %v1289_v16 = vpop.f32.mrf.mxu1 }
 0x23a   : > { %v1454_v46 = vpop.f32.mrf.mxu2 }
 0x23b   : > { %v1477_v49 = vpop.f32.mrf.mxu3 }
 0x23e   : > { %v1408_v43 = vpop.f32.mrf.mxu0 }
 0x23f   : > { %v1431_v48 = vpop.f32.mrf.mxu1  ;;  %v1483_v6 = vadd.f32 %v1408_v43, %v1264_v56 }
 0x240   : > { %v1484_v53 = vadd.f32 %v1431_v48, %v1287_v45 }
 0x242   : > { %v6703_v62 = vpop.f32.mrf.mxu2 }
 0x243   : > { %v6705_v1 = vpop.f32.mrf.mxu3 }
 0x246   : > { %v1411_v4 = vpop.f32.mrf.mxu0 }
 0x247   : > { %v1434_v34 = vpop.f32.mrf.mxu1  ;;  %v1487_v47 = vadd.f32 %v1411_v4, %v1267_v3 }
 0x252   : > { %v1607_v2 = vpop.f32.mrf.mxu2  ;;  %v1630_v17 = vpop.f32.mrf.mxu3 }
 0x254   : > { %v1561_v19 = vpop.f32.mrf.mxu0  ;;  %v1584_v40 = vpop.f32.mrf.mxu1 }
 0x25b   : > { %v6707_v42 = vpop.f32.mrf.mxu2  ;;  %v6709_v13 = vpop.f32.mrf.mxu3 }
 0x25c   : > { %8793 = vst [vmem:[#allocation30_spill] sm:$0xff] %v6709_v13  ;;  %v1564_v63 = vpop.f32.mrf.mxu0  ;;  %v1587_v35 = vpop.f32.mrf.mxu1  ;;  %v1290_v13 = vadd.f32 %v1289_v16, %v6682_v31 }
 0x263   : > { %v1728_v50 = vpop.f32.mrf.mxu2  ;;  %v1751_v24 = vpop.f32.mrf.mxu3  ;;  %v8804_v26 = vld [vmem:[#allocation30_spill] sm:$0xff] }
 0x265   : > { %v1682_v51 = vpop.f32.mrf.mxu0  ;;  %v1705_v15 = vpop.f32.mrf.mxu1 }
 0x26c   : > { %v6711_v30 = vpop.f32.mrf.mxu2  ;;  %v6713_v25 = vpop.f32.mrf.mxu3 }
 0x26d   : > { %8794 = vst [vmem:[#allocation23_spill] sm:$0xff] %v6711_v30  ;;  %v1685_v23 = vpop.f32.mrf.mxu0  ;;  %v1708_v58 = vpop.f32.mrf.mxu1 }
 0x26e   : > { %8795 = vst [vmem:[#allocation29_spill] sm:$0xff] %v6713_v25 }
 0x274   : > { %v1881_v52 = vpop.f32.mrf.mxu2  ;;  %v1904_v18 = vpop.f32.mrf.mxu3  ;;  %v8807_v55 = vld [vmem:[#allocation23_spill] sm:$0xff] }
 0x275   : > { %v1835_v29 = vpop.f32.mrf.mxu0  ;;  %v1858_v14 = vpop.f32.mrf.mxu1 }
 0x27c   : > { %v6715_v39 = vpop.f32.mrf.mxu2  ;;  %v6717_v22 = vpop.f32.mrf.mxu3 }
 0x27d   : > { %8796 = vst [vmem:[#allocation39_spill] sm:$0xff] %v6715_v39  ;;  %v6719_v61 = vpop.f32.mrf.mxu0  ;;  %v6721_v38 = vpop.f32.mrf.mxu1  ;;  %v1333_v39 = vadd.f32 %v1332_v57, %v6641_v33 }
 0x27e   : > { %8797 = vst [vmem:[#allocation40_spill] sm:$0xff] %v6717_v22  ;;  %v1310_v22 = vadd.f32 %v1309_v7, %v6637_v8  ;;  %v1488_v8 = vadd.f32 %v1434_v34, %v1290_v13 }
 0x27f   : > { %8798 = vst [vmem:[#allocation41_spill] sm:$0xff] %v6719_v61 }
 0x280   : > { %8799 = vst [vmem:[#allocation42_spill] sm:$0xff] %v6721_v38  ;;  %v1485_v30 = vadd.f32 %v1454_v46, %v1310_v22  ;;  %v1313_v22 = vadd.f32 %v6699_v5, %v6657_v11 }
 0x282   : > { %v1638_v37 = vadd.f32 %v1607_v2, %v1485_v30 }
 0x284   : > { %v2034_v27 = vpop.f32.mrf.mxu2  ;;  %v2057_v44 = vpop.f32.mrf.mxu3 }
 0x285   : > { %v1988_v28 = vpop.f32.mrf.mxu0  ;;  %v2011_v21 = vpop.f32.mrf.mxu1 }
 0x28c   : > { %v6727_v41 = vpop.f32.mrf.mxu2  ;;  %v6729_v54 = vpop.f32.mrf.mxu3 }
 0x28d   : > { %v6723_v20 = vpop.f32.mrf.mxu0  ;;  %v6725_v10 = vpop.f32.mrf.mxu1  ;;  %8802 = vst [vmem:[#allocation45_spill] sm:$0xff] %v6727_v41 }
 0x28e   : > { %8800 = vst [vmem:[#allocation43_spill] sm:$0xff] %v6723_v20  ;;  %v1636_v20 = vadd.f32 %v1561_v19, %v1483_v6  ;;  %v1759_v6 = vadd.f32 %v1728_v50, %v1638_v37  ;;  %v8811_v19 = vld [vmem:[#allocation39_spill] sm:$0xff] }
 0x28f   : > { %8801 = vst [vmem:[#allocation44_spill] sm:$0xff] %v6725_v10  ;;  %v1637_v10 = vadd.f32 %v1584_v40, %v1484_v53 }
 0x290   : > { %8803 = vst [vmem:[#allocation46_spill] sm:$0xff] %v6729_v54  ;;  %v1486_v54 = vadd.f32 %v1477_v49, %v1333_v39  ;;  %v1757_v38 = vadd.f32 %v1682_v51, %v1636_v20  ;;  %v1640_v20 = vadd.f32 %v1564_v63, %v1487_v47  ;;  %v1641_v39 = vadd.f32 %v1587_v35, %v1488_v8 }
 0x291   : > { %v1758_v61 = vadd.f32 %v1705_v15, %v1637_v10  ;;  %v1336_v10 = vadd.f32 %v6701_v32, %v6663_v12  ;;  %v1912_v30 = vadd.f32 %v1881_v52, %v1759_v6  ;;  %v2382_v52 = vpop.permute.xlu0 %2381 }
 0x292   : > { %v1639_v59 = vadd.f32 %v1630_v17, %v1486_v54  ;;  %v1910_v56 = vadd.f32 %v1835_v29, %v1757_v38  ;;  %v1489_v38 = vadd.f32 %v6703_v62, %v1313_v22  ;;  %v1761_v50 = vadd.f32 %v1685_v23, %v1640_v20  ;;  %v2387_v22 = vpop.permute.xlu1 %2386 }
 0x293   : > { %v1911_v45 = vadd.f32 %v1858_v14, %v1758_v61  ;;  %v1490_v61 = vadd.f32 %v6705_v1, %v1336_v10  ;;  %v2065_v15 = vadd.f32 %v2034_v27, %v1912_v30 }
 0x294   : > { %v2187_v36 = vpop.f32.mrf.mxu2  ;;  %v2210_v0 = vpop.f32.mrf.mxu3  ;;  %v1760_v53 = vadd.f32 %v1751_v24, %v1639_v59  ;;  %v2063_v57 = vadd.f32 %v1988_v28, %v1910_v56  ;;  %v1762_v24 = vadd.f32 %v1708_v58, %v1641_v39  ;;  %v1642_v12 = vadd.f32 %v6707_v42, %v1489_v38  ;;  %v8808_v58 = vld [vmem:[#allocation29_spill] sm:$0xff] }
 0x295   : > { %v2141_v9 = vpop.f32.mrf.mxu0  ;;  %v2164_v60 = vpop.f32.mrf.mxu1  ;;  %v2064_v43 = vadd.f32 %v2011_v21, %v1911_v45  ;;  %v1643_v35 = vadd.f32 %v8804_v26, %v1490_v61  ;;  %v2218_v32 = vadd.f32 %v2187_v36, %v2065_v15  ;;  %v8809_v62 = vld [vmem:[#allocation43_spill] sm:$0xff]  ;;  %v8812_v36 = vld [vmem:[#allocation40_spill] sm:$0xff]  ;;  %v8813_v37 = vld [vmem:[#allocation45_spill] sm:$0xff] }
 0x296   : > { %v1913_v54 = vadd.f32 %v1904_v18, %v1760_v53  ;;  %v2216_v29 = vadd.f32 %v2141_v9, %v2063_v57  ;;  %v8805_v18 = vld [vmem:[#allocation41_spill] sm:$0xff]  ;;  %v1763_v23 = vadd.f32 %v8807_v55, %v1642_v12  ;;  %v8810_v4 = vld [vmem:[#allocation44_spill] sm:$0xff] }
 0x297   : > { %v2217_v14 = vadd.f32 %v2164_v60, %v2064_v43  ;;  %v1914_v9 = vadd.f32 %v8805_v18, %v1761_v50  ;;  %v8806_v60 = vld [vmem:[#allocation42_spill] sm:$0xff]  ;;  %v1764_v46 = vadd.f32 %v8808_v58, %v1643_v35  ;;  %v2499_v18 = vld [vmem:[%s8578_s13 + $0xf0] sm:$0xff]  ;;  %v2530_v55 = vld [vmem:[%s8578_s13 + $0x1e8] sm:$0xff] }
 0x298   : > { %v2066_v51 = vadd.f32 %v2057_v44, %v1913_v54  ;;  %v1915_v5 = vadd.f32 %v8806_v60, %v1762_v24  ;;  %v1916_v40 = vadd.f32 %v8811_v19, %v1763_v23  ;;  %v8814_v56 = vld [vmem:[#allocation46_spill] sm:$0xff]  ;;  %v2531_v60 = vld [vmem:[%s8578_s13 + $0x1f0] sm:$0xff] }
 0x299   : > { %v2067_v1 = vadd.f32 %v8809_v62, %v1914_v9  ;;  %v2500_v12 = vld [vmem:[%s8578_s13 + $0xf8] sm:$0xff]  ;;  %v2515_v9 = vld [vmem:[%s8578_s13 + $0x170] sm:$0xff]  ;;  %v2481_v23 = vld [vmem:[%s8578_s13 + $0x60] sm:$0xff] }
 0x29a   : > { %v2219_v16 = vadd.f32 %v2210_v0, %v2066_v51  ;;  %v2068_v34 = vadd.f32 %v8810_v4, %v1915_v5  ;;  %v1917_v0 = vadd.f32 %v8812_v36, %v1764_v46  ;;  %v2069_v59 = vadd.f32 %v8813_v37, %v1916_v40  ;;  %v2516_v26 = vld [vmem:[%s8578_s13 + $0x178] sm:$0xff]  ;;  %2556 = vmatpush.msrb.mxu1 %v2500_v12  ;;  %v2482_v5 = vld [vmem:[%s8578_s13 + $0x68] sm:$0xff]  ;;  %v2497_v58 = vld [vmem:[%s8578_s13 + $0xe0] sm:$0xff] }
 0x29b   : > { %v2532_v35 = vld [vmem:[%s8578_s13 + $0x1f8] sm:$0xff]  ;;  %2579 = vmatpush.msrb.mxu2 %v2516_v26  ;;  %v2513_v46 = vld [vmem:[%s8578_s13 + $0x160] sm:$0xff] }
 0x29c   : > { %v2190_v7 = vpop.f32.mrf.mxu2  ;;  %v2213_v33 = vpop.f32.mrf.mxu3  ;;  %v2070_v45 = vadd.f32 %v8814_v56, %v1917_v0  ;;  %2602 = vmatpush.msrb.mxu3 %v2532_v35  ;;  %2557 = vmatpush.msrb.mxu1 %v2499_v18  ;;  %v2496_v62 = vld [vmem:[%s8578_s13 + $0xd8] sm:$0xff]  ;;  %v2475_v18 = vld [vmem:[%s8578_s13 + $0x30] sm:$0xff] }
 0x29d   : > { %v2144_v25 = vpop.f32.mrf.mxu0  ;;  %v2167_v41 = vpop.f32.mrf.mxu1  ;;  %v2222_v10 = vadd.f32 %v2190_v7, %v2069_v59  ;;  %2580 = vmatpush.msrb.mxu2 %v2515_v9  ;;  %v2528_v4 = vld [vmem:[%s8578_s13 + $0x1d8] sm:$0xff]  ;;  %v2491_v9 = vld [vmem:[%s8578_s13 + $0xb0] sm:$0xff] }
 0x29e   : > { %v2220_v42 = vadd.f32 %v2144_v25, %v2067_v1  ;;  %v2221_v13 = vadd.f32 %v2167_v41, %v2068_v34  ;;  %v2223_v20 = vadd.f32 %v2213_v33, %v2070_v45  ;;  %2603 = vmatpush.msrb.mxu3 %v2531_v60  ;;  %v2512_v1 = vld [vmem:[%s8578_s13 + $0x158] sm:$0xff]  ;;  %v2507_v60 = vld [vmem:[%s8578_s13 + $0x130] sm:$0xff] }
 0x29f   : > { %v2476_v12 = vld [vmem:[%s8578_s13 + $0x38] sm:$0xff] }
 0x2a0   : > { %2604 = vmatpush.msrb.mxu3 %v2530_v55  ;;  %v2492_v26 = vld [vmem:[%s8578_s13 + $0xb8] sm:$0xff]  ;;  %v2506_v55 = vld [vmem:[%s8578_s13 + $0x128] sm:$0xff] }
 0x2a1   : > { %v2508_v35 = vld [vmem:[%s8578_s13 + $0x138] sm:$0xff] }
 0x2a7   : > { %v2294_v28 = vpop.f32.mrf.mxu0  ;;  %v2317_v21 = vpop.f32.mrf.mxu1 }
 0x2a8   : > { %v2369_v11 = vadd.f32 %v2294_v28, %v2216_v29  ;;  %v2370_v31 = vadd.f32 %v2317_v21, %v2217_v14 }
 0x2aa   : > { %v6749_v49 = vadd.f32 %v2382_v52, %v2369_v11  ;;  %v6751_v27 = vadd.f32 %v2382_v52, %v2370_v31  ;;  %v2484_v31 = vld [vmem:[%s8578_s13 + $0x78] sm:$0xff] }
 0x2ab   : > { %v2340_v44 = vpop.f32.mrf.mxu2  ;;  %v2363_v48 = vpop.f32.mrf.mxu3  ;;  %2533 = vmatpush.msrb.mxu0 %v2484_v31  ;;  %v2525_v31 = vld [vmem:[%s8578_s13 + $0x1c0] sm:$0xff] }
 0x2ac   : > { %v2371_v2 = vadd.f32 %v2340_v44, %v2218_v32  ;;  %v2372_v17 = vadd.f32 %v2363_v48, %v2219_v16  ;;  %v2397_v47 = vmax.f32 %v6749_v49, 0.0  ;;  %v2398_v8 = vmax.f32 %v6751_v27, 0.0  ;;  %v2498_v32 = vld [vmem:[%s8578_s13 + $0xe8] sm:$0xff]  ;;  %v2529_v44 = vld [vmem:[%s8578_s13 + $0x1e0] sm:$0xff]  ;;  %v2480_v48 = vld [vmem:[%s8578_s13 + $0x58] sm:$0xff] }
 0x2ad   : > { %v2514_v16 = vld [vmem:[%s8578_s13 + $0x168] sm:$0xff]  ;;  %2558 = vmatpush.msrb.mxu1 %v2498_v32  ;;  %2605 = vmatpush.msrb.mxu3 %v2529_v44  ;;  %v2505_v44 = vld [vmem:[%s8578_s13 + $0x120] sm:$0xff] }
 0x2ae   : > { %v6757_v63 = vadd.f32 %v2382_v52, %v2371_v2  ;;  %v6759_v3 = vadd.f32 %v2382_v52, %v2372_v17  ;;  %v2483_v52 = vld [vmem:[%s8578_s13 + $0x70] sm:$0xff]  ;;  %2581 = vmatpush.msrb.mxu2 %v2514_v16  ;;  %v2474_v32 = vld [vmem:[%s8578_s13 + $0x28] sm:$0xff] }
 0x2af   : > { %v2297_v6 = vpop.f32.mrf.mxu0  ;;  %v2320_v53 = vpop.f32.mrf.mxu1  ;;  %2534 = vmatpush.msrb.mxu0 %v2483_v52  ;;  %2559 = vmatpush.msrb.mxu1 %v2497_v58  ;;  %v2524_v52 = vld [vmem:[%s8578_s13 + $0x1b8] sm:$0xff]  ;;  %v2490_v16 = vld [vmem:[%s8578_s13 + $0xa8] sm:$0xff]  ;;  %v2473_v58 = vld [vmem:[%s8578_s13 + $0x20] sm:$0xff] }
 0x2b0   : > { %v2399_v57 = vmax.f32 %v6757_v63, 0.0  ;;  %v2400_v43 = vmax.f32 %v6759_v3, 0.0  ;;  %v2373_v25 = vadd.f32 %v2297_v6, %v2220_v42  ;;  %v2374_v41 = vadd.f32 %v2320_v53, %v2221_v13  ;;  %2582 = vmatpush.msrb.mxu2 %v2513_v46  ;;  %2606 = vmatpush.msrb.mxu3 %v2528_v4  ;;  %v2489_v46 = vld [vmem:[%s8578_s13 + $0xa0] sm:$0xff]  ;;  %v2504_v4 = vld [vmem:[%s8578_s13 + $0x118] sm:$0xff] }
 0x2b1   : > { %2535 = vmatpush.msrb.mxu0 %v2482_v5  ;;  %2560 = vmatpush.msrb.mxu1 %v2496_v62  ;;  %v2523_v5 = vld [vmem:[%s8578_s13 + $0x1b0] sm:$0xff]  ;;  %v2472_v62 = vld [vmem:[%s8578_s13 + $0x18] sm:$0xff] }
 0x2b2   : > { %v5373_v39 = vpack.i.bf16 %v2399_v57, %v2397_v47  ;;  %v5378_v30 = vpack.i.bf16 %v2398_v8, %v2400_v43  ;;  %v6775_v54 = vadd.f32 %v2387_v22, %v2373_v25  ;;  %v6777_v38 = vadd.f32 %v2387_v22, %v2374_v41  ;;  %2583 = vmatpush.msrb.mxu2 %v2512_v1  ;;  %v2488_v1 = vld [vmem:[%s8578_s13 + $0x98] sm:$0xff] }
 0x2b3   : > { %v2343_v29 = vpop.f32.mrf.mxu2  ;;  %v2366_v14 = vpop.f32.mrf.mxu3  ;;  %2536 = vmatpush.msrb.mxu0 %v2481_v23  ;;  %v2522_v23 = vld [vmem:[%s8578_s13 + $0x1a8] sm:$0xff] }
 0x2b4   : > { %v2375_v61 = vadd.f32 %v2343_v29, %v2222_v10  ;;  %v2376_v50 = vadd.f32 %v2366_v14, %v2223_v20  ;;  %5374 = vrot.lane.b32.xlu2 %v5373_v39, %s8692_s30  ;;  %5379 = vrot.lane.b32.xlu0 %v5378_v30, %s8692_s30  ;;  %v2401_v24 = vmax.f32 %v6775_v54, 0.0  ;;  %v2402_v28 = vmax.f32 %v6777_v38, 0.0  ;;  %v2479_v38 = vld [vmem:[%s8578_s13 + $0x50] sm:$0xff] }
 0x2b5   : > { %2537 = vmatpush.msrb.mxu0 %v2480_v48  ;;  %v2521_v48 = vld [vmem:[%s8578_s13 + $0x1a0] sm:$0xff] }
 0x2b6   : > { %v6781_v7 = vadd.f32 %v2387_v22, %v2375_v61  ;;  %v6783_v33 = vadd.f32 %v2387_v22, %v2376_v50  ;;  %v2495_v61 = vld [vmem:[%s8578_s13 + $0xd0] sm:$0xff] }
 0x2b7   : > { %v2511_v50 = vld [vmem:[%s8578_s13 + $0x150] sm:$0xff]  ;;  %2538 = vmatpush.msrb.mxu0 %v2479_v38  ;;  %2561 = vmatpush.msrb.mxu1 %v2495_v61 }
 0x2b8   : > { %v2403_v21 = vmax.f32 %v6781_v7, 0.0  ;;  %v2404_v15 = vmax.f32 %v6783_v33, 0.0  ;;  %v2527_v7 = vld [vmem:[%s8578_s13 + $0x1d0] sm:$0xff]  ;;  %v2478_v33 = vld [vmem:[%s8578_s13 + $0x48] sm:$0xff]  ;;  %2584 = vmatpush.msrb.mxu2 %v2511_v50 }
 0x2b9   : > { %2607 = vmatpush.msrb.mxu3 %v2527_v7  ;;  %2539 = vmatpush.msrb.mxu0 %v2478_v33 }
 0x2ba   : > { %v5383_v51 = vpack.i.bf16 %v2403_v21, %v2401_v24  ;;  %v5388_v11 = vpack.i.bf16 %v2402_v28, %v2404_v15 }
 0x2bc   : > { %5384 = vrot.lane.b32.xlu1 %v5383_v51, %s8692_s30  ;;  %5389 = vrot.lane.b32.xlu2 %v5388_v11, %s8692_s30  ;;  %v2493_v51 = vld [vmem:[%s8578_s13 + $0xc0] sm:$0xff] }
 0x2bd   : > { %v2509_v11 = vld [vmem:[%s8578_s13 + $0x140] sm:$0xff] }
 0x30e   : > { %v5375_v34 = vpop.permute.xlu2 %5374 }
 0x30f   : > { %v5377_v17 = vunpack.i.h.bf16 %v5375_v34  ;;  %v5376_v19 = vunpack.i.l.bf16 %v5375_v34  ;;  %v2520_v34 = vld [vmem:[%s8578_s13 + $0x198] sm:$0xff] }
 0x316   : > { %v5390_v25 = vpop.permute.xlu2 %5389 }
 0x317   : > { %v5392_v27 = vunpack.i.h.bf16 %v5390_v25  ;;  %v5391_v63 = vunpack.i.l.bf16 %v5390_v25  ;;  %v2485_v25 = vld [vmem:[%s8578_s13 + $0x80] sm:$0xff] }
 0x326   : > { %v5380_v2 = vpop.permute.xlu0 %5379 }
 0x327   : > { %v5382_v40 = vunpack.i.h.bf16 %v5380_v2  ;;  %v5381_v36 = vunpack.i.l.bf16 %v5380_v2  ;;  %v2471_v2 = vld [vmem:[%s8578_s13 + $0x10] sm:$0xff] }
 0x329   : > { %v2423_v42 = vsel %vm783_vm4, %v5382_v40, %v5377_v17  ;;  %v2425_v13 = vsel %vm783_vm4, %v5376_v19, %v5382_v40  ;;  %v2421_v37 = vsel %vm783_vm4, %v5377_v17, %v5381_v36  ;;  %v2427_v59 = vsel %vm783_vm4, %v5381_v36, %v5376_v19  ;;  %v2487_v17 = vld [vmem:[%s8578_s13 + $0x90] sm:$0xff]  ;;  %v2470_v36 = vld [vmem:[%s8578_s13 + $0x8] sm:$0xff] }
 0x32a   : > { %v6869_v56 = vmax.f32 %v2397_v47, %v2425_v13  ;;  %v6873_v45 = vmax.f32 %v2398_v8, %v2423_v42  ;;  %v6877_v6 = vmax.f32 %v2399_v57, %v2421_v37  ;;  %v6881_v53 = vmax.f32 %v2400_v43, %v2427_v59  ;;  %v2503_v19 = vld [vmem:[%s8578_s13 + $0x110] sm:$0xff]  ;;  %v2486_v42 = vld [vmem:[%s8578_s13 + $0x88] sm:$0xff]  ;;  %v2469_v59 = vld [vmem:[%s8578_s13] sm:$0xff] }
 0x32b   : > { %v2519_v40 = vld [vmem:[%s8578_s13 + $0x190] sm:$0xff]  ;;  %v2502_v13 = vld [vmem:[%s8578_s13 + $0x108] sm:$0xff] }
 0x32c   : > { %v5398_v41 = vpack.i.bf16 %v6873_v45, %v6869_v56  ;;  %v5393_v49 = vpack.i.bf16 %v6881_v53, %v6877_v6  ;;  %v2518_v37 = vld [vmem:[%s8578_s13 + $0x188] sm:$0xff] }
 0x32e   : > { %v5385_v47 = vpop.permute.xlu1 %5384  ;;  %5399 = vrot.lane.b32.xlu1 %v5398_v41, %s8775_s10  ;;  %5394 = vrot.lane.b32.xlu0 %v5393_v49, %s8775_s10  ;;  %v2501_v41 = vld [vmem:[%s8578_s13 + $0x100] sm:$0xff] }
 0x32f   : > { %v5387_v8 = vunpack.i.h.bf16 %v5385_v47  ;;  %v5386_v57 = vunpack.i.l.bf16 %v5385_v47  ;;  %v2517_v49 = vld [vmem:[%s8578_s13 + $0x180] sm:$0xff] }
 0x331   : > { %v2424_v3 = vsel %vm783_vm4, %v5392_v27, %v5387_v8  ;;  %v2426_v43 = vsel %vm783_vm4, %v5386_v57, %v5392_v27  ;;  %v2422_v22 = vsel %vm783_vm4, %v5387_v8, %v5391_v63  ;;  %v2428_v10 = vsel %vm783_vm4, %v5391_v63, %v5386_v57 }
 0x332   : > { %v6899_v20 = vmax.f32 %v2401_v24, %v2426_v43  ;;  %v6903_v39 = vmax.f32 %v2402_v28, %v2424_v3  ;;  %v6907_v30 = vmax.f32 %v2403_v21, %v2422_v22  ;;  %v6911_v29 = vmax.f32 %v2404_v15, %v2428_v10  ;;  %v2494_v24 = vld [vmem:[%s8578_s13 + $0xc8] sm:$0xff]  ;;  %v2477_v15 = vld [vmem:[%s8578_s13 + $0x40] sm:$0xff] }
 0x333   : > { %v2510_v28 = vld [vmem:[%s8578_s13 + $0x148] sm:$0xff]  ;;  %2562 = vmatpush.msrb.mxu1 %v2494_v24  ;;  %2540 = vmatpush.msrb.mxu0 %v2477_v15 }
 0x334   : > { %v5408_v14 = vpack.i.bf16 %v6903_v39, %v6899_v20  ;;  %v5403_v54 = vpack.i.bf16 %v6911_v29, %v6907_v30  ;;  %v2526_v21 = vld [vmem:[%s8578_s13 + $0x1c8] sm:$0xff]  ;;  %2585 = vmatpush.msrb.mxu2 %v2510_v28 }
 0x335   : > { %2608 = vmatpush.msrb.mxu3 %v2526_v21  ;;  %2563 = vmatpush.msrb.mxu1 %v2493_v51 }
 0x336   : > { %5409 = vrot.lane.b32.xlu0 %v5408_v14, %s8775_s10  ;;  %5404 = vrot.lane.b32.xlu2 %v5403_v54, %s8775_s10 }
 0x337   : > { %2586 = vmatpush.msrb.mxu2 %v2509_v11  ;;  %2609 = vmatpush.msrb.mxu3 %v2525_v31 }
 0x338   : > { %2541 = vmatpush.msrb.mxu0 %v2476_v12  ;;  %2564 = vmatpush.msrb.mxu1 %v2492_v26 }
 0x339   : > { %2587 = vmatpush.msrb.mxu2 %v2508_v35  ;;  %2610 = vmatpush.msrb.mxu3 %v2524_v52 }
 0x33a   : > { %2542 = vmatpush.msrb.mxu0 %v2475_v18  ;;  %2565 = vmatpush.msrb.mxu1 %v2491_v9 }
 0x33b   : > { %2588 = vmatpush.msrb.mxu2 %v2507_v60  ;;  %2611 = vmatpush.msrb.mxu3 %v2523_v5 }
 0x33c   : > { %2543 = vmatpush.msrb.mxu0 %v2474_v32  ;;  %2566 = vmatpush.msrb.mxu1 %v2490_v16 }
 0x33d   : > { %2589 = vmatpush.msrb.mxu2 %v2506_v55  ;;  %2612 = vmatpush.msrb.mxu3 %v2522_v23  ;;  %v3112_v23 = vld [vmem:[%s8571_s6 + $0x10] sm:$0xff] }
 0x33e   : > { %2544 = vmatpush.msrb.mxu0 %v2473_v58  ;;  %2567 = vmatpush.msrb.mxu1 %v2489_v46  ;;  %v3111_v58 = vld [vmem:[%s8571_s6 + $0x8] sm:$0xff]  ;;  %v3110_v46 = vld [vmem:[%s8571_s6] sm:$0xff] }
 0x33f   : > { %2590 = vmatpush.msrb.mxu2 %v2505_v44  ;;  %2613 = vmatpush.msrb.mxu3 %v2521_v48  ;;  %v7103_v48 = vld [vmem:[%s8577_s12 + $0x3] ss:$0 sm:$0xff] }
 0x340   : > { %2545 = vmatpush.msrb.mxu0 %v2472_v62  ;;  %2568 = vmatpush.msrb.mxu1 %v2488_v1 }
 0x341   : > { %2591 = vmatpush.msrb.mxu2 %v2504_v4  ;;  %2614 = vmatpush.msrb.mxu3 %v2520_v34  ;;  %v7110_v4 = vld [vmem:[%s8577_s12 + $0x2] ss:$0 sm:$0xff]  ;;  %v7115_v34 = vld [vmem:[%s8577_s12 + $0x1] ss:$0 sm:$0xff] }
 0x342   : > { %2546 = vmatpush.msrb.mxu0 %v2471_v2  ;;  %2569 = vmatpush.msrb.mxu1 %v2487_v17 }
 0x343   : > { %2592 = vmatpush.msrb.mxu2 %v2503_v19  ;;  %2615 = vmatpush.msrb.mxu3 %v2519_v40 }
 0x344   : > { %2547 = vmatpush.msrb.mxu0 %v2470_v36  ;;  %2570 = vmatpush.msrb.mxu1 %v2486_v42  ;;  %v5184_v42 = vld [vmem:[%s8570_s5 + $0x18] sm:$0xff] }
 0x345   : > { %2593 = vmatpush.msrb.mxu2 %v2502_v13  ;;  %2616 = vmatpush.msrb.mxu3 %v2518_v37  ;;  %v7128_v37 = vld [vmem:[%s8577_s12] ss:$0 sm:$0xff] }
 0x346   : > { %2548 = vmatpush.msrb.mxu0 %v2469_v59  ;;  %2571 = vmatpush.msrb.mxu1 %v2485_v25 }
 0x347   : > { %2594 = vmatpush.msrb.mxu2 %v2501_v41  ;;  %2617 = vmatpush.msrb.mxu3 %v2517_v49 }
 0x390   : > { %v5405_v43 = vpop.permute.xlu2 %5404 }
 0x391   : > { %v5407_v33 = vunpack.i.h.bf16 %v5405_v43  ;;  %v5406_v24 = vunpack.i.l.bf16 %v5405_v43  ;;  %v7156_v43 = vld [vmem:[%s8577_s12 + $0x7] ss:$0 sm:$0xff] }
 0x393   : > { %v2454_v51 = vsel %vm905_vm6, %v5406_v24, %v5407_v33 }
 0x394   : > { %v2467_v12 = vmax.f32 %v6907_v30, %v2454_v51 }
 0x3a0   : > { %v5400_v47 = vpop.permute.xlu1 %5399  ;;  %v5395_v27 = vpop.permute.xlu0 %5394 }
 0x3a1   : > { %v5402_v63 = vunpack.i.h.bf16 %v5400_v47  ;;  %v5401_v8 = vunpack.i.l.bf16 %v5400_v47  ;;  %v5397_v57 = vunpack.i.h.bf16 %v5395_v27  ;;  %v5396_v3 = vunpack.i.l.bf16 %v5395_v27  ;;  %v5196_v47 = vld [vmem:[%s8570_s5 + $0x30] sm:$0xff] }
 0x3a3   : > { %v2457_v22 = vsel %vm905_vm6, %v5401_v8, %v5402_v63  ;;  %v2459_v10 = vsel %vm905_vm6, %v5397_v57, %v5401_v8  ;;  %v2453_v14 = vsel %vm905_vm6, %v5396_v3, %v5397_v57  ;;  %v2455_v54 = vsel %vm905_vm6, %v5402_v63, %v5396_v3  ;;  %v2635_v63 = vld [vmem:[%s8570_s5] sm:$0xff] }
 0x3a4   : > { %v2461_v38 = vmax.f32 %v6869_v56, %v2457_v22  ;;  %v2464_v61 = vmax.f32 %v6881_v53, %v2459_v10  ;;  %v2462_v50 = vmax.f32 %v6873_v45, %v2455_v54  ;;  %v2463_v7 = vmax.f32 %v6877_v6, %v2453_v14  ;;  %v5185_v8 = vld [vmem:[%s8570_s5 + $0x20] sm:$0xff] }
 0x3a5   : > { %v7149_v57 = vld [vmem:[%s8577_s12 + $0x6] ss:$0 sm:$0xff] }
 0x3a6   : > { %2549 = vmatmul.f32.vlgmr.msrb.gmra.mxu0 %v2461_v38  ;;  %2572 = vmatmul.f32.vlgmr.msrb.gmra.mxu1 %v2462_v50  ;;  %v5197_v38 = vld [vmem:[%s8570_s5 + $0x38] sm:$0xff]  ;;  %v2636_v50 = vld [vmem:[%s8570_s5 + $0x8] sm:$0xff] }
 0x3a7   : > { %2595 = vmatmul.f32.vlgmr.msrb.gmra.mxu2 %v2463_v7  ;;  %2618 = vmatmul.f32.vlgmr.msrb.gmra.mxu3 %v2464_v61  ;;  %v5204_v61 = vld [vmem:[%s8570_s5 + $0x48] sm:$0xff] }
 0x3a8   : > { %v5410_v28 = vpop.permute.xlu0 %5409 }
 0x3a9   : > { %v5412_v21 = vunpack.i.h.bf16 %v5410_v28  ;;  %v5411_v15 = vunpack.i.l.bf16 %v5410_v28 }
 0x3ab   : > { %v2458_v56 = vsel %vm905_vm6, %v5411_v15, %v5412_v21  ;;  %v2456_v45 = vsel %vm905_vm6, %v5412_v21, %v5406_v24  ;;  %v2460_v6 = vsel %vm905_vm6, %v5407_v33, %v5411_v15  ;;  %v5186_v33 = vld [vmem:[%s8570_s5 + $0x28] sm:$0xff]  ;;  %v7181_v24 = vld [vmem:[%s8577_s12 + $0x5] ss:$0 sm:$0xff] }
 0x3ac   : > { %v2465_v53 = vmax.f32 %v6899_v20, %v2458_v56  ;;  %v2466_v11 = vmax.f32 %v6903_v39, %v2456_v45  ;;  %v2468_v31 = vmax.f32 %v6911_v29, %v2460_v6  ;;  %v5198_v45 = vld [vmem:[%s8570_s5 + $0x40] sm:$0xff]  ;;  %v5205_v6 = vld [vmem:[%s8570_s5 + $0x50] sm:$0xff] }
 0x3ae   : > { %2552 = vmatmul.f32.gmra.mxu0 %v2465_v53  ;;  %2575 = vmatmul.f32.gmra.mxu1 %v2466_v11  ;;  %v2637_v11 = vld [vmem:[%s8570_s5 + $0x10] sm:$0xff] }
 0x3af   : > { %2598 = vmatmul.f32.gmra.mxu2 %v2467_v12  ;;  %2621 = vmatmul.f32.gmra.mxu3 %v2468_v31  ;;  %v5211_v31 = vld [vmem:[%s8570_s5 + $0x60] sm:$0xff]  ;;  %v7205_v12 = vld [vmem:[%s8577_s12 + $0x8] ss:$0 sm:$0xff] }
 0x423   : > { %v2550_v26 = vpop.f32.mrf.mxu0  ;;  %v2573_v35 = vpop.f32.mrf.mxu1 }
 0x424   : > { %v2574_v52 = vadd.f32 %v2573_v35, %v2550_v26 }
 0x42a   : > { %v2596_v18 = vpop.f32.mrf.mxu2  ;;  %v2619_v9 = vpop.f32.mrf.mxu3 }
 0x42b   : > { %v2597_v60 = vadd.f32 %v2596_v18, %v2574_v52  ;;  %v2553_v32 = vpop.f32.mrf.mxu0  ;;  %v2576_v16 = vpop.f32.mrf.mxu1 }
 0x42c   : > { %v2577_v20 = vadd.f32 %v2576_v16, %v2553_v32  ;;  %v5219_v32 = vld [vmem:[%s8570_s5 + $0x78] sm:$0xff] }
 0x42d   : > { %v2620_v5 = vadd.f32 %v2619_v9, %v2597_v60  ;;  %v5206_v9 = vld [vmem:[%s8570_s5 + $0x58] sm:$0xff]  ;;  %v5227_v60 = vld [vmem:[%s8570_s5 + $0x90] sm:$0xff] }
 0x42f   : > { %2638 = vrot.lane.b32.xlu2 %v2620_v5, %s5438_s25 }
 0x432   : > { %v2599_v39 = vpop.f32.mrf.mxu2  ;;  %v2622_v30 = vpop.f32.mrf.mxu3 }
 0x433   : > { %v2600_v29 = vadd.f32 %v2599_v39, %v2577_v20  ;;  %v5228_v39 = vld [vmem:[%s8570_s5 + $0x98] sm:$0xff] }
 0x435   : > { %v2623_v55 = vadd.f32 %v2622_v30, %v2600_v29  ;;  %v5235_v29 = vld [vmem:[%s8570_s5 + $0xa8] sm:$0xff]  ;;  %v5213_v30 = vld [vmem:[%s8570_s5 + $0x70] sm:$0xff] }
 0x437   : > { %2787 = vrot.lane.b32.xlu2 %v2623_v55, %s8694_s28  ;;  %2731 = vrot.lane.b32.xlu0 %v2623_v55, %s5439_s27 }
 0x438   : > { %2640 = vrot.lane.b32.xlu1 %v2623_v55, %s5438_s25 }
 0x43f   : > { %2625 = vrot.lane.b32.xlu2 %v2620_v5, %s5440_s18  ;;  %2627 = vrot.lane.b32.xlu0 %v2623_v55, %s5440_s18 }
 0x440   : > { %2729 = vrot.lane.b32.xlu1 %v2620_v5, %s5439_s27 }
 0x447   : > { %3000 = vrot.lane.b32.xlu2 %v2623_v55, %s8696_s19  ;;  %2944 = vrot.lane.b32.xlu0 %v2623_v55, %s5442_s17 }
 0x448   : > { %2785 = vrot.lane.b32.xlu1 %v2620_v5, %s8694_s28 }
 0x44f   : > { %2886 = vrot.lane.b32.xlu2 %v2620_v5, %s8692_s30  ;;  %2888 = vrot.lane.b32.xlu0 %v2623_v55, %s8692_s30  ;;  %s8816_s30 = smov 1  }
 0x450   : > { %2942 = vrot.lane.b32.xlu1 %v2620_v5, %s5442_s17 }
 0x457   : > { %3125 = vperm.xlu2 %5371, %v3112_v23   ;;  %3056 = vrot.lane.b32.xlu0 %v2623_v55, %s8698_s16  ;;  %v5229_v23 = vld [vmem:[%s8570_s5 + $0xa0] sm:$0xff] }
 0x458   : > { %2998 = vrot.lane.b32.xlu1 %v2620_v5, %s8696_s19  ;;  %s8824_s19 = smov 113  }
 0x45f   : > { %3120 = vperm.xlu0 %5372, %v3111_v58   ;;  %v5236_v58 = vld [vmem:[%s8570_s5 + $0xb0] sm:$0xff] }
 0x460   : > { %3054 = vrot.lane.b32.xlu1 %v2620_v5, %s8698_s16 }
 0x468   : > { %3115 = vperm.xlu1 %5370, %v3110_v46   ;;  %v5221_v46 = vld [vmem:[%s8570_s5 + $0x88] sm:$0xff] }
 0x489   : > { %v2639_v44 = vpop.permute.xlu2 %2638 }
 0x48a   : > { %v2647_v36 = vmul.f32 %v7115_v34, %v2639_v44  ;;  %v5243_v44 = vld [vmem:[%s8570_s5 + $0xc0] sm:$0xff] }
 0x491   : > { %v2788_v62 = vpop.permute.xlu2 %2787 }
 0x492   : > { %v2795_v1 = vmul.f32 %v7103_v48, %v2788_v62  ;;  %v5237_v62 = vld [vmem:[%s8570_s5 + $0xb8] sm:$0xff] }
 0x494   : > { %5207 = vmatpush.msk.msra.mxu3 %vm1123_vm8, %v2795_v1  ;;  %v5244_v1 = vld [vmem:[%s8570_s5 + $0xc8] sm:$0xff] }
 0x499   : > { %v2626_v13 = vpop.permute.xlu2 %2625 }
 0x49a   : > { %v2633_v27 = vmul.f32 %v7128_v37, %v2626_v13 }
 0x4a1   : > { %v3001_v3 = vpop.permute.xlu2 %3000 }
 0x4a2   : > { %v3008_v7 = vmul.f32 %v7156_v43, %v3001_v3 }
 0x4a9   : > { %v2732_v2 = vpop.permute.xlu0 %2731  ;;  %v2887_v21 = vpop.permute.xlu2 %2886 }
 0x4aa   : > { %v2739_v17 = vmul.f32 %v7110_v4, %v2732_v2  ;;  %v2641_v19 = vpop.permute.xlu1 %2640  ;;  %v2895_v53 = vmul.f32 %v7181_v24, %v2887_v21  ;;  %v5245_v2 = vld [vmem:[%s8570_s5 + $0xd0] sm:$0xff] }
 0x4ab   : > { %v2648_v40 = vmul.f32 %v7115_v34, %v2641_v19 }
 0x4ac   : > { %5199 = vmatpush.msk.msra.mxu2 %vm1123_vm8, %v2739_v17 }
 0x4ad   : > { %5187 = vmatpush.msk.msra.mxu0 %vm1123_vm8, %v2648_v40 }
 0x4af   : > { %2680 = vmatpush.msra.mxu0 %v2647_v36 }
 0x4b0   : > { %5188 = vmatmul.msk.f32.vlgmr.msra.gmra.mxu0 %vm1116_vm9, %v5184_v42 }
 0x4b1   : > { %5214 = vmatpush.msk.msrb.mxu0 %vm1123_vm8, %v2623_v55  ;;  %v2628_v59 = vpop.permute.xlu0 %2627  ;;  %v5220_v55 = vld [vmem:[%s8570_s5 + $0x80] sm:$0xff] }
 0x4b2   : > { %v2634_v25 = vmul.f32 %v7128_v37, %v2628_v59  ;;  %v2730_v41 = vpop.permute.xlu1 %2729 }
 0x4b3   : > { %2872 = vmatpush.msrb.mxu0 %v2620_v5  ;;  %v2738_v49 = vmul.f32 %v7110_v4, %v2730_v41  ;;  %v5212_v5 = vld [vmem:[%s8570_s5 + $0x68] sm:$0xff] }
 0x4b4   : > { %5191 = vmatpush.msk.msra.mxu1 %vm1123_vm8, %v2634_v25 }
 0x4b5   : > { %2771 = vmatpush.msra.mxu2 %v2738_v49 }
 0x4b6   : > { %5200 = vmatmul.msk.f32.vlgmr.msra.gmra.mxu2 %vm1116_vm9, %v5196_v47  ;;  %2718 = vmatpush.msra.mxu1 %v2633_v27 }
 0x4b7   : > { %5192 = vmatmul.msk.f32.vlgmr.msra.gmra.mxu1 %vm1116_vm9, %v2635_v63 }
 0x4b8   : > { %5189 = vmatmul.msk.f32.gmra.mxu0 %vm1116_vm9, %v5185_v8 }
 0x4b9   : > { %v2945_v22 = vpop.permute.xlu0 %2944 }
 0x4ba   : > { %v2952_v10 = vmul.f32 %v7149_v57, %v2945_v22  ;;  %v2786_v14 = vpop.permute.xlu1 %2785 }
 0x4bb   : > { %v2794_v54 = vmul.f32 %v7103_v48, %v2786_v14 }
 0x4bc   : > { %5230 = vmatpush.msk.msrb.mxu2 %vm1123_vm8, %v2952_v10 }
 0x4bd   : > { %2827 = vmatpush.msra.mxu3 %v2794_v54 }
 0x4be   : > { %5201 = vmatmul.msk.f32.gmra.mxu2 %vm1116_vm9, %v5197_v38  ;;  %5208 = vmatmul.msk.f32.vlgmr.msra.gmra.mxu3 %vm1116_vm9, %v5204_v61 }
 0x4bf   : > { %5238 = vmatpush.msk.msrb.mxu3 %vm1123_vm8, %v3008_v7  ;;  %5193 = vmatmul.msk.f32.gmra.mxu1 %vm1116_vm9, %v2636_v50 }
 0x4c0   : > { %5190 = vmatmul.msk.f32.gmra.mxu0 %vm1116_vm9, %v5186_v33 }
 0x4c1   : > { %v2889_v28 = vpop.permute.xlu0 %2888 }
 0x4c2   : > { %v2896_v15 = vmul.f32 %v7181_v24, %v2889_v28  ;;  %v2943_v51 = vpop.permute.xlu1 %2942 }
 0x4c3   : > { %v2951_v56 = vmul.f32 %v7149_v57, %v2943_v51 }
 0x4c4   : > { %5222 = vmatpush.msk.msrb.mxu1 %vm1123_vm8, %v2896_v15 }
 0x4c5   : > { %2984 = vmatpush.msrb.mxu2 %v2951_v56 }
 0x4c6   : > { %5202 = vmatmul.msk.f32.gmra.mxu2 %vm1116_vm9, %v5198_v45  ;;  %5209 = vmatmul.msk.f32.gmra.mxu3 %vm1116_vm9, %v5205_v6 }
 0x4c7   : > { %2928 = vmatpush.msrb.mxu1 %v2895_v53 }
 0x4c8   : > { %5194 = vmatmul.msk.f32.gmra.mxu1 %vm1116_vm9, %v2637_v11  ;;  %5215 = vmatmul.msk.f32.vlgmr.msrb.gmra.mxu0 %vm1116_vm9, %v5211_v31 }
 0x4c9   : > { %v3057_v26 = vpop.permute.xlu0 %3056 }
 0x4ca   : > { %v3064_v35 = vmul.f32 %v7205_v12, %v3057_v26  ;;  %v2999_v52 = vpop.permute.xlu1 %2998 }
 0x4cb   : > { %v3007_v18 = vmul.f32 %v7156_v43, %v2999_v52 }
 0x4cc   : > { %5246 = vmatpush.msk.msra.mxu0 %vm1123_vm8, %v3064_v35 }
 0x4cd   : > { %3040 = vmatpush.msrb.mxu3 %v3007_v18 }
 0x4ce   : > { %5210 = vmatmul.msk.f32.gmra.mxu3 %vm1116_vm9, %v5206_v9  ;;  %5231 = vmatmul.msk.f32.vlgmr.msrb.gmra.mxu2 %vm1116_vm9, %v5227_v60 }
 0x4d0   : > { %5216 = vmatmul.msk.f32.gmra.mxu0 %vm1116_vm9, %v5212_v5  ;;  %5223 = vmatmul.msk.f32.vlgmr.msrb.gmra.mxu1 %vm1116_vm9, %v5219_v32 }
 0x4d2   : > { %v3055_v16 = vpop.permute.xlu1 %3054 }
 0x4d3   : > { %v3063_v20 = vmul.f32 %v7205_v12, %v3055_v16 }
 0x4d5   : > { %3096 = vmatpush.msra.mxu0 %v3063_v20 }
 0x4d6   : > { %5232 = vmatmul.msk.f32.gmra.mxu2 %vm1116_vm9, %v5228_v39  ;;  %5239 = vmatmul.msk.f32.vlgmr.msrb.gmra.mxu3 %vm1116_vm9, %v5235_v29 }
 0x4d8   : > { %5217 = vmatmul.msk.f32.gmra.mxu0 %vm1116_vm9, %v5213_v30  ;;  %5224 = vmatmul.msk.f32.gmra.mxu1 %vm1116_vm9, %v5220_v55  ;;  %v3121_v55 = vpop.permute.xlu0 %3120 }
 0x4da   : > { %v3116_v31 = vpop.permute.xlu1 %3115 }
 0x4de   : > { %5233 = vmatmul.msk.f32.gmra.mxu2 %vm1116_vm9, %v5229_v23  ;;  %5240 = vmatmul.msk.f32.gmra.mxu3 %vm1116_vm9, %v5236_v58 }
 0x4e0   : > { %5225 = vmatmul.msk.f32.gmra.mxu1 %vm1116_vm9, %v5221_v46  ;;  %5247 = vmatmul.msk.f32.vlgmr.msra.gmra.mxu0 %vm1116_vm9, %v5243_v44 }
 0x4e6   : > { %5241 = vmatmul.msk.f32.gmra.mxu3 %vm1116_vm9, %v5237_v62 }
 0x4e8   : > { %5248 = vmatmul.msk.f32.gmra.mxu0 %vm1116_vm9, %v5244_v1 }
 0x4f0   : > { %5249 = vmatmul.msk.f32.gmra.mxu0 %vm1116_vm9, %v5245_v2 }
 0x52d   : > { %v2682_v17 = vpop.f32.mrf.mxu0 }
 0x534   : > { %v2720_v19 = vpop.f32.mrf.mxu1 }
 0x535   : > { %v2685_v40 = vpop.f32.mrf.mxu0  ;;  %v2721_v8 = vadd.f32 %v2720_v19, %v2682_v17 }
 0x539   : > { %v2773_v36 = vpop.f32.mrf.mxu2 }
 0x53a   : > { %v2782_v10 = vadd.f32 %v2773_v36, %v2721_v8 }
 0x53c   : > { %v2723_v13 = vpop.f32.mrf.mxu1 }
 0x53d   : > { %v2688_v42 = vpop.f32.mrf.mxu0  ;;  %v2724_v50 = vadd.f32 %v2723_v13, %v2685_v40  ;;  %v3126_v40 = vpop.permute.xlu2 %3125  ;;  %v3580_v13 = vld [vmem:[%s8573_s8 + $0x10] sm:$0xff] }
 0x541   : > { %v2776_v59 = vpop.f32.mrf.mxu2  ;;  %v2829_v25 = vpop.f32.mrf.mxu3 }
 0x542   : > { %v2838_v54 = vadd.f32 %v2829_v25, %v2782_v10  ;;  %v2783_v28 = vadd.f32 %v2776_v59, %v2724_v50  ;;  %v3579_v59 = vld [vmem:[%s8573_s8 + $0x8] sm:$0xff]  ;;  %v3578_v25 = vld [vmem:[%s8573_s8] sm:$0xff] }
 0x545   : > { %v2874_v41 = vpop.f32.mrf.mxu0  ;;  %v2726_v49 = vpop.f32.mrf.mxu1 }
 0x546   : > { %v2883_v61 = vadd.f32 %v2874_v41, %v2838_v54  ;;  %v2727_v26 = vadd.f32 %v2726_v49, %v2688_v42  ;;  %v5250_v54 = vld [vmem:[%s8572_s7 + $0x18] sm:$0xff] }
 0x549   : > { %v2779_v47 = vpop.f32.mrf.mxu2  ;;  %v2832_v27 = vpop.f32.mrf.mxu3 }
 0x54a   : > { %v2839_v51 = vadd.f32 %v2832_v27, %v2783_v28  ;;  %v2784_v9 = vadd.f32 %v2779_v47, %v2727_v26 }
 0x54d   : > { %v2877_v63 = vpop.f32.mrf.mxu0  ;;  %v2930_v3 = vpop.f32.mrf.mxu1 }
 0x54e   : > { %v2939_v7 = vadd.f32 %v2930_v3, %v2883_v61  ;;  %v2884_v53 = vadd.f32 %v2877_v63, %v2839_v51 }
 0x551   : > { %v2835_v22 = vpop.f32.mrf.mxu3  ;;  %v2986_v14 = vpop.f32.mrf.mxu2 }
 0x552   : > { %v2995_v21 = vadd.f32 %v2986_v14, %v2939_v7  ;;  %v2840_v32 = vadd.f32 %v2835_v22, %v2784_v9 }
 0x555   : > { %v2880_v38 = vpop.f32.mrf.mxu0  ;;  %v2933_v15 = vpop.f32.mrf.mxu1 }
 0x556   : > { %v2940_v35 = vadd.f32 %v2933_v15, %v2884_v53  ;;  %v2885_v29 = vadd.f32 %v2880_v38, %v2840_v32  ;;  %v5251_v15 = vld [vmem:[%s8572_s7 + $0x20] sm:$0xff]  ;;  %v3144_v53 = vld [vmem:[%s8572_s7 + $0x8] sm:$0xff] }
 0x557   : > { %v5265_v32 = vld [vmem:[%s8572_s7 + $0x48] sm:$0xff] }
 0x559   : > { %v3042_v33 = vpop.f32.mrf.mxu3  ;;  %v2989_v45 = vpop.f32.mrf.mxu2 }
 0x55a   : > { %v3051_v56 = vadd.f32 %v3042_v33, %v2995_v21  ;;  %v2996_v60 = vadd.f32 %v2989_v45, %v2940_v35  ;;  %v3143_v21 = vld [vmem:[%s8572_s7] sm:$0xff] }
 0x55d   : > { %v3098_v6 = vpop.f32.mrf.mxu0  ;;  %v2936_v20 = vpop.f32.mrf.mxu1 }
 0x55e   : > { %v3107_v11 = vadd.f32 %v3098_v6, %v3051_v56  ;;  %v2941_v58 = vadd.f32 %v2936_v20, %v2885_v29 }
 0x560   : > { %v3128_v52 = vadd.f32 %v3116_v31, %v3107_v11  ;;  %v5259_v11 = vld [vmem:[%s8572_s7 + $0x30] sm:$0xff]  ;;  %v5252_v31 = vld [vmem:[%s8572_s7 + $0x28] sm:$0xff] }
 0x561   : > { %v3045_v18 = vpop.f32.mrf.mxu3  ;;  %v2992_v23 = vpop.f32.mrf.mxu2 }
 0x562   : > { %v7273_v5 = vmax.f32 %v3128_v52, 0.0  ;;  %v3052_v16 = vadd.f32 %v3045_v18, %v2996_v60  ;;  %v2997_v62 = vadd.f32 %v2992_v23, %v2941_v58  ;;  %v3145_v60 = vld [vmem:[%s8572_s7 + $0x10] sm:$0xff]  ;;  %v5261_v58 = vld [vmem:[%s8572_s7 + $0x40] sm:$0xff] }
 0x564   : > { %3146 = vrot.lane.b32.xlu1 %v7273_v5, %s5438_s25 }
 0x565   : > { %v3101_v39 = vpop.f32.mrf.mxu0 }
 0x566   : > { %v3108_v30 = vadd.f32 %v3101_v39, %v3052_v16  ;;  %v5271_v16 = vld [vmem:[%s8572_s7 + $0x60] sm:$0xff] }
 0x568   : > { %v3129_v46 = vadd.f32 %v3121_v55, %v3108_v30 }
 0x569   : > { %v3048_v44 = vpop.f32.mrf.mxu3 }
 0x56a   : > { %v3132_v1 = vmax.f32 %v3129_v46, 0.0  ;;  %v3053_v2 = vadd.f32 %v3048_v44, %v2997_v62  ;;  %v5277_v46 = vld [vmem:[%s8572_s7 + $0x78] sm:$0xff]  ;;  %v5266_v44 = vld [vmem:[%s8572_s7 + $0x50] sm:$0xff]  ;;  %v5272_v62 = vld [vmem:[%s8572_s7 + $0x68] sm:$0xff] }
 0x56c   : > { %3148 = vrot.lane.b32.xlu0 %v3132_v1, %s5438_s25  ;;  %3230 = vrot.lane.b32.xlu1 %v7273_v5, %s5439_s27 }
 0x56d   : > { %v3104_v17 = vpop.f32.mrf.mxu0 }
 0x56e   : > { %v3109_v19 = vadd.f32 %v3104_v17, %v3053_v2 }
 0x570   : > { %v3130_v36 = vadd.f32 %v3126_v40, %v3109_v19  ;;  %v5278_v40 = vld [vmem:[%s8572_s7 + $0x80] sm:$0xff] }
 0x572   : > { %v3133_v42 = vmax.f32 %v3130_v36, 0.0  ;;  %v5283_v36 = vld [vmem:[%s8572_s7 + $0x90] sm:$0xff] }
 0x574   : > { %3136 = vrot.lane.b32.xlu0 %v3132_v1, %s5440_s18  ;;  %3150 = vrot.lane.b32.xlu2 %v3133_v42, %s5438_s25  ;;  %s8818_s25 = smov 119  }
 0x575   : > { %3234 = vrot.lane.b32.xlu1 %v3133_v42, %s5439_s27 }
 0x57c   : > { %3232 = vrot.lane.b32.xlu0 %v3132_v1, %s5439_s27  ;;  %3134 = vrot.lane.b32.xlu2 %v7273_v5, %s5440_s18  ;;  %s8819_s27 = smov 120  }
 0x57d   : > { %3281 = vrot.lane.b32.xlu1 %v7273_v5, %s8816_s30 }
 0x584   : > { %3283 = vrot.lane.b32.xlu0 %v3132_v1, %s8816_s30  ;;  %3138 = vrot.lane.b32.xlu2 %v3133_v42, %s5440_s18  ;;  %s8823_s18 = smov 16  }
 0x585   : > { %3425 = vrot.lane.b32.xlu1 %v7273_v5, %s5442_s17 }
 0x58c   : > { %3376 = vrot.lane.b32.xlu0 %v3132_v1, %s8817_s29  ;;  %3285 = vrot.lane.b32.xlu2 %v3133_v42, %s8816_s30 }
 0x58d   : > { %3429 = vrot.lane.b32.xlu1 %v3133_v42, %s5442_s17 }
 0x594   : > { %3427 = vrot.lane.b32.xlu0 %v3132_v1, %s5442_s17  ;;  %3374 = vrot.lane.b32.xlu2 %v7273_v5, %s8817_s29  ;;  %s8896_s17 = sshll.u32 %s8899_s21, 2 }
 0x595   : > { %3531 = vrot.lane.b32.xlu1 %v3133_v42, %s8818_s25  ;;  %s491_s22 = scalar_lea.vmem %s8580_s15, %s8896_s17 }
 0x59c   : > { %3478 = vrot.lane.b32.xlu0 %v3132_v1, %s8819_s27  ;;  %3378 = vrot.lane.b32.xlu2 %v3133_v42, %s8817_s29 }
 0x59d   : > { %3527 = vrot.lane.b32.xlu1 %v7273_v5, %s8818_s25 }
 0x5a4   : > { %3529 = vrot.lane.b32.xlu0 %v3132_v1, %s8818_s25  ;;  %3480 = vrot.lane.b32.xlu2 %v3133_v42, %s8819_s27  ;;  %s8821_s25 = smov 15  }
 0x5a5   : > { %3593 = vperm.xlu1 %5370, %v3580_v13   ;;  %v5273_v13 = vld [vmem:[%s8572_s7 + $0x70] sm:$0xff] }
 0x5ac   : > { %3588 = vperm.xlu0 %5372, %v3579_v59   ;;  %3476 = vrot.lane.b32.xlu2 %v7273_v5, %s8819_s27  ;;  %s8822_s27 = smov 17  }
 0x5b4   : > { %3583 = vperm.xlu2 %5371, %v3578_v25  }
 0x5ce   : > { %v3151_v41 = vpop.permute.xlu2 %3150 }
 0x5cf   : > { %v3154_v49 = vmul.f32 %v7115_v34, %v3151_v41 }
 0x5d1   : > { %3182 = vmatpush.msra.mxu1 %v3154_v49  ;;  %v5279_v49 = vld [vmem:[%s8572_s7 + $0x88] sm:$0xff] }
 0x5d6   : > { %v3135_v47 = vpop.permute.xlu2 %3134  ;;  %v3147_v27 = vpop.permute.xlu1 %3146 }
 0x5d7   : > { %v3152_v14 = vmul.f32 %v7115_v34, %v3147_v27  ;;  %v3140_v28 = vmul.f32 %v7128_v37, %v3135_v47  ;;  %v5284_v47 = vld [vmem:[%s8572_s7 + $0x98] sm:$0xff]  ;;  %v5289_v27 = vld [vmem:[%s8572_s7 + $0xa8] sm:$0xff] }
 0x5de   : > { %v3149_v63 = vpop.permute.xlu0 %3148  ;;  %v3139_v8 = vpop.permute.xlu2 %3138 }
 0x5df   : > { %v3153_v3 = vmul.f32 %v7115_v34, %v3149_v63  ;;  %v3142_v22 = vmul.f32 %v7128_v37, %v3139_v8  ;;  %v3231_v10 = vpop.permute.xlu1 %3230 }
 0x5e0   : > { %v3236_v6 = vmul.f32 %v7110_v4, %v3231_v10  ;;  %v5295_v10 = vld [vmem:[%s8572_s7 + $0xc0] sm:$0xff] }
 0x5e1   : > { %3183 = vmatpush.msra.mxu1 %v3153_v3  ;;  %3217 = vmatpush.msra.mxu2 %v3142_v22  ;;  %v5285_v22 = vld [vmem:[%s8572_s7 + $0xa0] sm:$0xff] }
 0x5e3   : > { %3184 = vmatpush.msra.mxu1 %v3152_v14  ;;  %v5290_v14 = vld [vmem:[%s8572_s7 + $0xb0] sm:$0xff] }
 0x5e4   : > { %5253 = vmatmul.msk.f32.vlgmr.msra.gmra.mxu1 %vm3159_vm10, %v5250_v54  ;;  %v5291_v54 = vld [vmem:[%s8572_s7 + $0xb8] sm:$0xff] }
 0x5e5   : > { %3358 = vmatpush.msrb.mxu1 %v3133_v42  ;;  %v5267_v42 = vld [vmem:[%s8572_s7 + $0x58] sm:$0xff] }
 0x5e6   : > { %v3137_v38 = vpop.permute.xlu0 %3136  ;;  %v3286_v61 = vpop.permute.xlu2 %3285 }
 0x5e7   : > { %3359 = vmatpush.msrb.mxu1 %v3132_v1  ;;  %v3141_v50 = vmul.f32 %v7128_v37, %v3137_v38  ;;  %v3289_v7 = vmul.f32 %v7103_v48, %v3286_v61  ;;  %v3235_v33 = vpop.permute.xlu1 %3234  ;;  %v5297_v38 = vld [vmem:[%s8572_s7 + $0xd0] sm:$0xff]  ;;  %v3662_v61 = vld [vmem:[%s8579_s14 + $0x1e0] sm:$0xff] }
 0x5e8   : > { %v3238_v34 = vmul.f32 %v7110_v4, %v3235_v33 }
 0x5e9   : > { %3360 = vmatpush.msrb.mxu1 %v7273_v5  ;;  %3218 = vmatpush.msra.mxu2 %v3141_v50  ;;  %v5260_v5 = vld [vmem:[%s8572_s7 + $0x38] sm:$0xff]  ;;  %v3663_v50 = vld [vmem:[%s8579_s14 + $0x1e8] sm:$0xff] }
 0x5ea   : > { %3316 = vmatpush.msrb.mxu0 %v3289_v7  ;;  %3265 = vmatpush.msra.mxu3 %v3238_v34  ;;  %v3664_v7 = vld [vmem:[%s8579_s14 + $0x1f0] sm:$0xff]  ;;  %v3665_v34 = vld [vmem:[%s8579_s14 + $0x1f8] sm:$0xff] }
 0x5eb   : > { %3219 = vmatpush.msra.mxu2 %v3140_v28  ;;  %v3658_v28 = vld [vmem:[%s8579_s14 + $0x1c0] sm:$0xff] }
 0x5ec   : > { %5256 = vmatmul.msk.f32.vlgmr.msra.gmra.mxu2 %vm3159_vm10, %v3143_v21  ;;  %5254 = vmatmul.msk.f32.gmra.mxu1 %vm3159_vm10, %v5251_v15  ;;  %v3659_v21 = vld [vmem:[%s8579_s14 + $0x1c8] sm:$0xff]  ;;  %v3660_v15 = vld [vmem:[%s8579_s14 + $0x1d0] sm:$0xff] }
 0x5ee   : > { %v3233_v51 = vpop.permute.xlu0 %3232  ;;  %v3375_v56 = vpop.permute.xlu2 %3374 }
 0x5ef   : > { %v3237_v37 = vmul.f32 %v7110_v4, %v3233_v51  ;;  %v3282_v45 = vpop.permute.xlu1 %3281  ;;  %v3380_v23 = vmul.f32 %v7181_v24, %v3375_v56  ;;  %v3661_v51 = vld [vmem:[%s8579_s14 + $0x1d8] sm:$0xff]  ;;  %v3654_v56 = vld [vmem:[%s8579_s14 + $0x1a0] sm:$0xff] }
 0x5f0   : > { %v3287_v9 = vmul.f32 %v7103_v48, %v3282_v45  ;;  %v3656_v45 = vld [vmem:[%s8579_s14 + $0x1b0] sm:$0xff] }
 0x5f1   : > { %3266 = vmatpush.msra.mxu3 %v3237_v37  ;;  %v3655_v37 = vld [vmem:[%s8579_s14 + $0x1a8] sm:$0xff] }
 0x5f3   : > { %3267 = vmatpush.msra.mxu3 %v3236_v6  ;;  %v3657_v6 = vld [vmem:[%s8579_s14 + $0x1b8] sm:$0xff] }
 0x5f4   : > { %5257 = vmatmul.msk.f32.gmra.mxu2 %vm3159_vm10, %v3144_v53  ;;  %5262 = vmatmul.msk.f32.vlgmr.msra.gmra.mxu3 %vm3159_vm10, %v5259_v11  ;;  %v3650_v53 = vld [vmem:[%s8579_s14 + $0x180] sm:$0xff]  ;;  %v3651_v11 = vld [vmem:[%s8579_s14 + $0x188] sm:$0xff] }
 0x5f5   : > { %5255 = vmatmul.msk.f32.gmra.mxu1 %vm3159_vm10, %v5252_v31  ;;  %v3652_v31 = vld [vmem:[%s8579_s14 + $0x190] sm:$0xff] }
 0x5f6   : > { %v3284_v4 = vpop.permute.xlu0 %3283  ;;  %v3379_v26 = vpop.permute.xlu2 %3378 }
 0x5f7   : > { %v3288_v35 = vmul.f32 %v7103_v48, %v3284_v4  ;;  %v3382_v52 = vmul.f32 %v7181_v24, %v3379_v26  ;;  %v3426_v18 = vpop.permute.xlu1 %3425  ;;  %v3653_v4 = vld [vmem:[%s8579_s14 + $0x198] sm:$0xff]  ;;  %v3646_v26 = vld [vmem:[%s8579_s14 + $0x160] sm:$0xff] }
 0x5f8   : > { %v3431_v19 = vmul.f32 %v7149_v57, %v3426_v18 }
 0x5f9   : > { %3317 = vmatpush.msrb.mxu0 %v3288_v35  ;;  %3409 = vmatpush.msrb.mxu2 %v3382_v52  ;;  %v3647_v35 = vld [vmem:[%s8579_s14 + $0x168] sm:$0xff]  ;;  %v3648_v52 = vld [vmem:[%s8579_s14 + $0x170] sm:$0xff] }
 0x5fb   : > { %3318 = vmatpush.msrb.mxu0 %v3287_v9  ;;  %v3649_v9 = vld [vmem:[%s8579_s14 + $0x178] sm:$0xff] }
 0x5fc   : > { %5258 = vmatmul.msk.f32.gmra.mxu2 %vm3159_vm10, %v3145_v60  ;;  %5263 = vmatmul.msk.f32.gmra.mxu3 %vm3159_vm10, %v5260_v5  ;;  %v3642_v60 = vld [vmem:[%s8579_s14 + $0x140] sm:$0xff]  ;;  %v3643_v5 = vld [vmem:[%s8579_s14 + $0x148] sm:$0xff] }
 0x5fd   : > { %5268 = vmatmul.msk.f32.vlgmr.msrb.gmra.mxu0 %vm3159_vm10, %v5265_v32  ;;  %5274 = vmatmul.msk.f32.vlgmr.msrb.gmra.mxu1 %vm3159_vm10, %v5271_v16  ;;  %v3644_v32 = vld [vmem:[%s8579_s14 + $0x150] sm:$0xff]  ;;  %v3645_v16 = vld [vmem:[%s8579_s14 + $0x158] sm:$0xff] }
 0x5fe   : > { %v3377_v48 = vpop.permute.xlu0 %3376  ;;  %v3481_v20 = vpop.permute.xlu2 %3480 }
 0x5ff   : > { %v3381_v39 = vmul.f32 %v7181_v24, %v3377_v48  ;;  %v3484_v29 = vmul.f32 %v7156_v43, %v3481_v20  ;;  %v3430_v30 = vpop.permute.xlu1 %3429  ;;  %v3638_v48 = vld [vmem:[%s8579_s14 + $0x120] sm:$0xff]  ;;  %v3639_v20 = vld [vmem:[%s8579_s14 + $0x128] sm:$0xff] }
 0x600   : > { %v3433_v55 = vmul.f32 %v7149_v57, %v3430_v30 }
 0x601   : > { %3410 = vmatpush.msrb.mxu2 %v3381_v39  ;;  %3511 = vmatpush.msra.mxu0 %v3484_v29  ;;  %v3640_v39 = vld [vmem:[%s8579_s14 + $0x130] sm:$0xff]  ;;  %v3641_v29 = vld [vmem:[%s8579_s14 + $0x138] sm:$0xff] }
 0x602   : > { %3460 = vmatpush.msrb.mxu3 %v3433_v55  ;;  %v3634_v55 = vld [vmem:[%s8579_s14 + $0x100] sm:$0xff] }
 0x603   : > { %3411 = vmatpush.msrb.mxu2 %v3380_v23  ;;  %v3635_v23 = vld [vmem:[%s8579_s14 + $0x108] sm:$0xff] }
 0x604   : > { %5264 = vmatmul.msk.f32.gmra.mxu3 %vm3159_vm10, %v5261_v58  ;;  %5280 = vmatmul.msk.f32.vlgmr.msrb.gmra.mxu2 %vm3159_vm10, %v5277_v46  ;;  %v3636_v58 = vld [vmem:[%s8579_s14 + $0x110] sm:$0xff]  ;;  %v3637_v46 = vld [vmem:[%s8579_s14 + $0x118] sm:$0xff] }
 0x605   : > { %5269 = vmatmul.msk.f32.gmra.mxu0 %vm3159_vm10, %v5266_v44  ;;  %5275 = vmatmul.msk.f32.gmra.mxu1 %vm3159_vm10, %v5272_v62  ;;  %v3630_v44 = vld [vmem:[%s8579_s14 + $0xe0] sm:$0xff]  ;;  %v3631_v62 = vld [vmem:[%s8579_s14 + $0xe8] sm:$0xff] }
 0x606   : > { %v3428_v24 = vpop.permute.xlu0 %3427  ;;  %3666 = vmatpush.msra.mxu2 %v3662_v61 }
 0x607   : > { %v3432_v1 = vmul.f32 %v7149_v57, %v3428_v24  ;;  %v3532_v2 = vpop.permute.xlu1 %3531  ;;  %v3477_v57 = vpop.permute.xlu2 %3476  ;;  %v3632_v24 = vld [vmem:[%s8579_s14 + $0xf0] sm:$0xff] }
 0x608   : > { %v3535_v17 = vmul.f32 %v7205_v12, %v3532_v2  ;;  %v3482_v41 = vmul.f32 %v7156_v43, %v3477_v57  ;;  %3667 = vmatpush.msra.mxu2 %v3658_v28  ;;  %v3624_v57 = vld [vmem:[%s8579_s14 + $0xb0] sm:$0xff]  ;;  %v3609_v28 = vld [vmem:[%s8579_s14 + $0x38] sm:$0xff] }
 0x609   : > { %3461 = vmatpush.msrb.mxu3 %v3432_v1  ;;  %v3633_v1 = vld [vmem:[%s8579_s14 + $0xf8] sm:$0xff] }
 0x60a   : > { %3562 = vmatpush.msra.mxu1 %v3535_v17  ;;  %3668 = vmatpush.msra.mxu2 %v3654_v56  ;;  %v3626_v17 = vld [vmem:[%s8579_s14 + $0xc0] sm:$0xff]  ;;  %v3604_v56 = vld [vmem:[%s8579_s14 + $0x10] sm:$0xff] }
 0x60b   : > { %3462 = vmatpush.msrb.mxu3 %v3431_v19  ;;  %v3627_v19 = vld [vmem:[%s8579_s14 + $0xc8] sm:$0xff] }
 0x60c   : > { %5281 = vmatmul.msk.f32.gmra.mxu2 %vm3159_vm10, %v5278_v40  ;;  %5286 = vmatmul.msk.f32.vlgmr.msrb.gmra.mxu3 %vm3159_vm10, %v5283_v36  ;;  %v3628_v40 = vld [vmem:[%s8579_s14 + $0xd0] sm:$0xff]  ;;  %v3629_v36 = vld [vmem:[%s8579_s14 + $0xd8] sm:$0xff] }
 0x60d   : > { %5270 = vmatmul.msk.f32.gmra.mxu0 %vm3159_vm10, %v5267_v42  ;;  %5276 = vmatmul.msk.f32.gmra.mxu1 %vm3159_vm10, %v5273_v13  ;;  %v3622_v42 = vld [vmem:[%s8579_s14 + $0xa0] sm:$0xff]  ;;  %v3623_v13 = vld [vmem:[%s8579_s14 + $0xa8] sm:$0xff] }
 0x60e   : > { %v3479_v59 = vpop.permute.xlu0 %3478  ;;  %3692 = vmatpush.msra.mxu3 %v3663_v50  ;;  %3669 = vmatpush.msra.mxu2 %v3650_v53  ;;  %v3606_v50 = vld [vmem:[%s8579_s14 + $0x20] sm:$0xff] }
 0x60f   : > { %v3483_v25 = vmul.f32 %v7156_v43, %v3479_v59  ;;  %v3528_v43 = vpop.permute.xlu1 %3527  ;;  %v3625_v59 = vld [vmem:[%s8579_s14 + $0xb8] sm:$0xff] }
 0x610   : > { %v3533_v3 = vmul.f32 %v7205_v12, %v3528_v43  ;;  %3693 = vmatpush.msra.mxu3 %v3659_v21  ;;  %3670 = vmatpush.msra.mxu2 %v3646_v26  ;;  %v3621_v43 = vld [vmem:[%s8579_s14 + $0x98] sm:$0xff] }
 0x611   : > { %3512 = vmatpush.msra.mxu0 %v3483_v25 }
 0x612   : > { %3694 = vmatpush.msra.mxu3 %v3655_v37  ;;  %3671 = vmatpush.msra.mxu2 %v3642_v60  ;;  %v3605_v37 = vld [vmem:[%s8579_s14 + $0x18] sm:$0xff] }
 0x613   : > { %3513 = vmatpush.msra.mxu0 %v3482_v41 }
 0x614   : > { %5282 = vmatmul.msk.f32.gmra.mxu2 %vm3159_vm10, %v5279_v49  ;;  %5287 = vmatmul.msk.f32.gmra.mxu3 %vm3159_vm10, %v5284_v47  ;;  %v3618_v49 = vld [vmem:[%s8579_s14 + $0x80] sm:$0xff]  ;;  %v3619_v47 = vld [vmem:[%s8579_s14 + $0x88] sm:$0xff] }
 0x615   : > { %5292 = vmatmul.msk.f32.vlgmr.msra.gmra.mxu0 %vm3159_vm10, %v5289_v27  ;;  %3695 = vmatpush.msra.mxu3 %v3651_v11  ;;  %v3620_v27 = vld [vmem:[%s8579_s14 + $0x90] sm:$0xff] }
 0x616   : > { %v3530_v63 = vpop.permute.xlu0 %3529  ;;  %3718 = vmatpush.msrb.mxu0 %v3664_v7  ;;  %3672 = vmatpush.msra.mxu2 %v3638_v48  ;;  %v3607_v7 = vld [vmem:[%s8579_s14 + $0x28] sm:$0xff] }
 0x617   : > { %v3534_v8 = vmul.f32 %v7205_v12, %v3530_v63  ;;  %v5296_v12 = vld [vmem:[%s8572_s7 + $0xc8] sm:$0xff]  ;;  %3696 = vmatpush.msra.mxu3 %v3647_v35  ;;  %v3614_v63 = vld [vmem:[%s8579_s14 + $0x60] sm:$0xff] }
 0x618   : > { %3719 = vmatpush.msrb.mxu0 %v3660_v15  ;;  %3673 = vmatpush.msra.mxu2 %v3634_v55  ;;  %v3602_v15 = vld [vmem:[%s8579_s14] sm:$0xff] }
 0x619   : > { %3563 = vmatpush.msra.mxu1 %v3534_v8  ;;  %3697 = vmatpush.msra.mxu3 %v3643_v5  ;;  %v3615_v8 = vld [vmem:[%s8579_s14 + $0x68] sm:$0xff] }
 0x61a   : > { %3720 = vmatpush.msrb.mxu0 %v3656_v45  ;;  %3674 = vmatpush.msra.mxu2 %v3630_v44 }
 0x61b   : > { %3564 = vmatpush.msra.mxu1 %v3533_v3  ;;  %3698 = vmatpush.msra.mxu3 %v3639_v20  ;;  %v3616_v3 = vld [vmem:[%s8579_s14 + $0x70] sm:$0xff] }
 0x61c   : > { %5288 = vmatmul.msk.f32.gmra.mxu3 %vm3159_vm10, %v5285_v22  ;;  %5298 = vmatmul.msk.f32.vlgmr.msra.gmra.mxu1 %vm3159_vm10, %v5295_v10  ;;  %v3617_v10 = vld [vmem:[%s8579_s14 + $0x78] sm:$0xff] }
 0x61d   : > { %5293 = vmatmul.msk.f32.gmra.mxu0 %vm3159_vm10, %v5290_v14  ;;  %3744 = vmatpush.msrb.mxu1 %v3665_v34  ;;  %v3610_v14 = vld [vmem:[%s8579_s14 + $0x40] sm:$0xff]  ;;  %v3608_v34 = vld [vmem:[%s8579_s14 + $0x30] sm:$0xff] }
 0x61e   : > { %3721 = vmatpush.msrb.mxu0 %v3652_v31  ;;  %3699 = vmatpush.msra.mxu3 %v3635_v23 }
 0x61f   : > { %3745 = vmatpush.msrb.mxu1 %v3661_v51  ;;  %3675 = vmatpush.msra.mxu2 %v3626_v17  ;;  %v3603_v51 = vld [vmem:[%s8579_s14 + $0x8] sm:$0xff] }
 0x620   : > { %3722 = vmatpush.msrb.mxu0 %v3648_v52  ;;  %3700 = vmatpush.msra.mxu3 %v3631_v62 }
 0x621   : > { %3746 = vmatpush.msrb.mxu1 %v3657_v6  ;;  %3676 = vmatpush.msra.mxu2 %v3622_v42 }
 0x622   : > { %3723 = vmatpush.msrb.mxu0 %v3644_v32  ;;  %3701 = vmatpush.msra.mxu3 %v3627_v19 }
 0x623   : > { %3747 = vmatpush.msrb.mxu1 %v3653_v4  ;;  %3677 = vmatpush.msra.mxu2 %v3618_v49  ;;  %v3589_v49 = vpop.permute.xlu0 %3588 }
 0x624   : > { %5299 = vmatmul.msk.f32.gmra.mxu1 %vm3159_vm10, %v5296_v12  ;;  %3724 = vmatpush.msrb.mxu0 %v3640_v39  ;;  %v3611_v12 = vld [vmem:[%s8579_s14 + $0x48] sm:$0xff] }
 0x625   : > { %5294 = vmatmul.msk.f32.gmra.mxu0 %vm3159_vm10, %v5291_v54  ;;  %3748 = vmatpush.msrb.mxu1 %v3649_v9  ;;  %v3612_v54 = vld [vmem:[%s8579_s14 + $0x50] sm:$0xff] }
 0x626   : > { %3725 = vmatpush.msrb.mxu0 %v3636_v58  ;;  %3702 = vmatpush.msra.mxu3 %v3623_v13 }
 0x627   : > { %3749 = vmatpush.msrb.mxu1 %v3645_v16  ;;  %3678 = vmatpush.msra.mxu2 %v3614_v63 }
 0x628   : > { %3726 = vmatpush.msrb.mxu0 %v3632_v24  ;;  %3703 = vmatpush.msra.mxu3 %v3619_v47 }
 0x629   : > { %3750 = vmatpush.msrb.mxu1 %v3641_v29  ;;  %3679 = vmatpush.msra.mxu2 %v3610_v14 }
 0x62a   : > { %3727 = vmatpush.msrb.mxu0 %v3628_v40  ;;  %3704 = vmatpush.msra.mxu3 %v3615_v8 }
 0x62b   : > { %3751 = vmatpush.msrb.mxu1 %v3637_v46  ;;  %3680 = vmatpush.msra.mxu2 %v3606_v50 }
 0x62c   : > { %5300 = vmatmul.msk.f32.gmra.mxu1 %vm3159_vm10, %v5297_v38  ;;  %3728 = vmatpush.msrb.mxu0 %v3624_v57  ;;  %v3613_v38 = vld [vmem:[%s8579_s14 + $0x58] sm:$0xff] }
 0x62d   : > { %3752 = vmatpush.msrb.mxu1 %v3633_v1  ;;  %3705 = vmatpush.msra.mxu3 %v3611_v12  ;;  %v3584_v1 = vpop.permute.xlu2 %3583 }
 0x62e   : > { %3729 = vmatpush.msrb.mxu0 %v3620_v27  ;;  %3681 = vmatpush.msra.mxu2 %v3602_v15 }
 0x62f   : > { %3753 = vmatpush.msrb.mxu1 %v3629_v36  ;;  %3706 = vmatpush.msra.mxu3 %v3607_v7 }
 0x630   : > { %3730 = vmatpush.msrb.mxu0 %v3616_v3 }
 0x631   : > { %3754 = vmatpush.msrb.mxu1 %v3625_v59  ;;  %3707 = vmatpush.msra.mxu3 %v3603_v51 }
 0x632   : > { %3731 = vmatpush.msrb.mxu0 %v3612_v54 }
 0x633   : > { %3755 = vmatpush.msrb.mxu1 %v3621_v43 }
 0x634   : > { %3732 = vmatpush.msrb.mxu0 %v3608_v34 }
 0x635   : > { %3756 = vmatpush.msrb.mxu1 %v3617_v10  ;;  %v3594_v10 = vpop.permute.xlu1 %3593 }
 0x636   : > { %3733 = vmatpush.msrb.mxu0 %v3604_v56 }
 0x637   : > { %3757 = vmatpush.msrb.mxu1 %v3613_v38 }
 0x639   : > { %3758 = vmatpush.msrb.mxu1 %v3609_v28 }
 0x63b   : > { %3759 = vmatpush.msrb.mxu1 %v3605_v37 }
 0x661   : > { %v7458_v33 = vpop.f32.mrf.mxu1 }
 0x669   : > { %v7508_v18 = vpop.f32.mrf.mxu1 }
 0x66f   : > { %v7537_v30 = vpop.f32.mrf.mxu2 }
 0x670   : > { %v3222_v53 = vadd.f32 %v7537_v30, %v7458_v33 }
 0x672   : > { %v7563_v2 = vpop.f32.mrf.mxu1 }
 0x677   : > { %v3224_v25 = vpop.f32.mrf.mxu2  ;;  %v3269_v41 = vpop.f32.mrf.mxu3 }
 0x678   : > { %v3278_v4 = vadd.f32 %v3269_v41, %v3222_v53  ;;  %v3225_v9 = vadd.f32 %v3224_v25, %v7508_v18 }
 0x67a   : > { %v3320_v22 = vpop.f32.mrf.mxu0  ;;  %v3362_v61 = vpop.f32.mrf.mxu1 }
 0x67b   : > { %v3329_v52 = vadd.f32 %v3320_v22, %v3278_v4 }
 0x67d   : > { %v3371_v5 = vadd.f32 %v3362_v61, %v3329_v52 }
 0x67f   : > { %v3272_v21 = vpop.f32.mrf.mxu3  ;;  %v3227_v45 = vpop.f32.mrf.mxu2 }
 0x680   : > { %v3279_v32 = vadd.f32 %v3272_v21, %v3225_v9  ;;  %v3228_v23 = vadd.f32 %v3227_v45, %v7563_v2 }
 0x682   : > { %v3323_v6 = vpop.f32.mrf.mxu0  ;;  %v3365_v11 = vpop.f32.mrf.mxu1 }
 0x683   : > { %v3330_v39 = vadd.f32 %v3323_v6, %v3279_v32 }
 0x685   : > { %v3372_v30 = vadd.f32 %v3365_v11, %v3330_v39 }
 0x687   : > { %v3275_v31 = vpop.f32.mrf.mxu3  ;;  %v3413_v35 = vpop.f32.mrf.mxu2 }
 0x688   : > { %v3422_v48 = vadd.f32 %v3413_v35, %v3371_v5  ;;  %v3280_v58 = vadd.f32 %v3275_v31, %v3228_v23 }
 0x68a   : > { %v3326_v26 = vpop.f32.mrf.mxu0  ;;  %v3368_v16 = vpop.f32.mrf.mxu1 }
 0x68b   : > { %v3331_v17 = vadd.f32 %v3326_v26, %v3280_v58 }
 0x68d   : > { %v3373_v13 = vadd.f32 %v3368_v16, %v3331_v17 }
 0x68f   : > { %v3464_v60 = vpop.f32.mrf.mxu3  ;;  %v3416_v55 = vpop.f32.mrf.mxu2 }
 0x690   : > { %v3473_v29 = vadd.f32 %v3464_v60, %v3422_v48  ;;  %v3423_v62 = vadd.f32 %v3416_v55, %v3372_v30 }
 0x692   : > { %v3515_v20 = vpop.f32.mrf.mxu0 }
 0x693   : > { %v3524_v46 = vadd.f32 %v3515_v20, %v3473_v29 }
 0x697   : > { %v3467_v33 = vpop.f32.mrf.mxu3  ;;  %v3419_v42 = vpop.f32.mrf.mxu2 }
 0x698   : > { %v3474_v19 = vadd.f32 %v3467_v33, %v3423_v62  ;;  %v3424_v25 = vadd.f32 %v3419_v42, %v3373_v13 }
 0x699   : > { %v3566_v44 = vpop.f32.mrf.mxu1 }
 0x69a   : > { %v3575_v24 = vadd.f32 %v3566_v44, %v3524_v46  ;;  %v3518_v18 = vpop.f32.mrf.mxu0 }
 0x69b   : > { %v3525_v57 = vadd.f32 %v3518_v18, %v3474_v19 }
 0x69c   : > { %v3596_v40 = vadd.f32 %v3584_v1, %v3575_v24 }
 0x69e   : > { %v3599_v36 = vmax.f32 %v3596_v40, 0.0 }
 0x69f   : > { %v3470_v59 = vpop.f32.mrf.mxu3 }
 0x6a0   : > { %3682 = vmatmul.f32.vlgmr.msra.gmra.mxu2 %v3599_v36  ;;  %3708 = vmatmul.f32.vlgmr.msra.gmra.mxu3 %v3599_v36  ;;  %v3475_v47 = vadd.f32 %v3470_v59, %v3424_v25 }
 0x6a1   : > { %3734 = vmatmul.f32.vlgmr.msrb.gmra.mxu0 %v3599_v36  ;;  %3760 = vmatmul.f32.vlgmr.msrb.gmra.mxu1 %v3599_v36  ;;  %v3569_v2 = vpop.f32.mrf.mxu1 }
 0x6a2   : > { %v3576_v41 = vadd.f32 %v3569_v2, %v3525_v57  ;;  %v3521_v43 = vpop.f32.mrf.mxu0 }
 0x6a3   : > { %v3526_v8 = vadd.f32 %v3521_v43, %v3475_v47 }
 0x6a4   : > { %v3597_v27 = vadd.f32 %v3589_v49, %v3576_v41 }
 0x6a6   : > { %v3600_v63 = vmax.f32 %v3597_v27, 0.0 }
 0x6a8   : > { %3685 = vmatmul.f32.gmra.mxu2 %v3600_v63  ;;  %3711 = vmatmul.f32.gmra.mxu3 %v3600_v63 }
 0x6a9   : > { %3737 = vmatmul.f32.gmra.mxu0 %v3600_v63  ;;  %3763 = vmatmul.f32.gmra.mxu1 %v3600_v63  ;;  %v3572_v3 = vpop.f32.mrf.mxu1 }
 0x6aa   : > { %v3577_v22 = vadd.f32 %v3572_v3, %v3526_v8 }
 0x6ac   : > { %v3598_v14 = vadd.f32 %v3594_v10, %v3577_v22 }
 0x6ae   : > { %v3601_v12 = vmax.f32 %v3598_v14, 0.0 }
 0x6b0   : > { %3688 = vmatmul.f32.gmra.mxu2 %v3601_v12  ;;  %3714 = vmatmul.f32.gmra.mxu3 %v3601_v12 }
 0x6b1   : > { %3740 = vmatmul.f32.gmra.mxu0 %v3601_v12  ;;  %3766 = vmatmul.f32.gmra.mxu1 %v3601_v12 }
 0x71e   : > { %v7653_v54 = vpop.f32.mrf.mxu0  ;;  %v7655_v38 = vpop.f32.mrf.mxu1 }
 0x71f   : > { %8820 = vst [vmem:[#allocation30_spill] sm:$0xff] %v7653_v54  ;;  %4047 = vrot.lane.b32.xlu0 %v7653_v54, %s8821_s25  ;;  %3782 = vrot.lane.b32.xlu2 %v7653_v54, %s8822_s27 }
 0x720   : > { %3837 = vrot.lane.b32.xlu1 %v7655_v38, %s8823_s18 }
 0x723   : > { %v7675_v61 = vpop.f32.mrf.mxu2  ;;  %v7691_v7 = vpop.f32.mrf.mxu3 }
 0x724   : > { %8826 = vst [vmem:[#allocation42_spill] sm:$0xff] %v7691_v7 }
 0x726   : > { %v7683_v50 = vpop.f32.mrf.mxu0  ;;  %v7693_v34 = vpop.f32.mrf.mxu1 }
 0x727   : > { %4410 = vrot.lane.b32.xlu0 %v7653_v54, %s8817_s29  ;;  %3788 = vrot.lane.b32.xlu2 %v7655_v38, %s8822_s27  ;;  %8825 = vst [vmem:[#allocation41_spill] sm:$0xff] %v7683_v50 }
 0x728   : > { %3831 = vrot.lane.b32.xlu1 %v7653_v54, %s8823_s18 }
 0x72b   : > { %v7713_v28 = vpop.f32.mrf.mxu2  ;;  %v7733_v21 = vpop.f32.mrf.mxu3 }
 0x72c   : > { %8827 = vst [vmem:[#allocation23_spill] sm:$0xff] %v7733_v21 }
 0x72e   : > { %v7751_v37 = vpop.f32.mrf.mxu0  ;;  %v7759_v6 = vpop.f32.mrf.mxu1 }
 0x72f   : > { %4416 = vrot.lane.b32.xlu0 %v7655_v38, %s8817_s29  ;;  %4053 = vrot.lane.b32.xlu2 %v7655_v38, %s8821_s25  ;;  %8828 = vst [vmem:[#allocation29_spill] sm:$0xff] %v7751_v37 }
 0x730   : > { %4184 = vrot.lane.b32.xlu1 %v7653_v54, %s8816_s30 }
 0x733   : > { %v7807_v55 = vpop.f32.mrf.mxu2  ;;  %v7829_v62 = vpop.f32.mrf.mxu3 }
 0x737   : > { %4547 = vrot.lane.b32.xlu0 %v7653_v54, %s8824_s19  ;;  %4190 = vrot.lane.b32.xlu2 %v7655_v38, %s8816_s30 }
 0x738   : > { %3819 = vrot.lane.b32.xlu1 %v7675_v61, %s8823_s18 }
 0x73f   : > { %3784 = vrot.lane.b32.xlu0 %v7683_v50, %s8822_s27  ;;  %3770 = vrot.lane.b32.xlu2 %v7675_v61, %s8822_s27 }
 0x740   : > { %4035 = vrot.lane.b32.xlu1 %v7675_v61, %s8821_s25 }
 0x747   : > { %3776 = vrot.lane.b32.xlu2 %v7691_v7, %s8822_s27  ;;  %3790 = vrot.lane.b32.xlu0 %v7693_v34, %s8822_s27 }
 0x748   : > { %4172 = vrot.lane.b32.xlu1 %v7675_v61, %s8816_s30 }
 0x74f   : > { %3825 = vrot.lane.b32.xlu2 %v7691_v7, %s8823_s18  ;;  %3839 = vrot.lane.b32.xlu0 %v7693_v34, %s8823_s18 }
 0x750   : > { %4398 = vrot.lane.b32.xlu1 %v7675_v61, %s8817_s29 }
 0x757   : > { %4041 = vrot.lane.b32.xlu2 %v7691_v7, %s8821_s25  ;;  %3833 = vrot.lane.b32.xlu0 %v7683_v50, %s8823_s18 }
 0x758   : > { %4535 = vrot.lane.b32.xlu1 %v7675_v61, %s8824_s19 }
 0x75f   : > { %4178 = vrot.lane.b32.xlu2 %v7691_v7, %s8816_s30  ;;  %4055 = vrot.lane.b32.xlu0 %v7693_v34, %s8821_s25 }
 0x760   : > { %3821 = vrot.lane.b32.xlu1 %v7713_v28, %s8823_s18 }
 0x767   : > { %4404 = vrot.lane.b32.xlu2 %v7691_v7, %s8817_s29  ;;  %4049 = vrot.lane.b32.xlu0 %v7683_v50, %s8821_s25 }
 0x768   : > { %4037 = vrot.lane.b32.xlu1 %v7713_v28, %s8821_s25 }
 0x76f   : > { %4541 = vrot.lane.b32.xlu2 %v7691_v7, %s8824_s19  ;;  %4192 = vrot.lane.b32.xlu0 %v7693_v34, %s8816_s30 }
 0x770   : > { %4174 = vrot.lane.b32.xlu1 %v7713_v28, %s8816_s30 }
 0x777   : > { %3827 = vrot.lane.b32.xlu2 %v7733_v21, %s8823_s18  ;;  %4186 = vrot.lane.b32.xlu0 %v7683_v50, %s8816_s30 }
 0x778   : > { %4400 = vrot.lane.b32.xlu1 %v7713_v28, %s8817_s29 }
 0x779   : > { %v3783_v15 = vpop.permute.xlu2 %3782 }
 0x77f   : > { %4043 = vrot.lane.b32.xlu2 %v7733_v21, %s8821_s25  ;;  %4412 = vrot.lane.b32.xlu0 %v7683_v50, %s8817_s29 }
 0x780   : > { %4537 = vrot.lane.b32.xlu1 %v7713_v28, %s8824_s19 }
 0x781   : > { %v3789_v51 = vpop.permute.xlu2 %3788 }
 0x782   : > { %v7749_v56 = vsel %vm512_vm2, %v3783_v15, %v3789_v51 }
 0x787   : > { %4180 = vrot.lane.b32.xlu2 %v7733_v21, %s8816_s30  ;;  %4418 = vrot.lane.b32.xlu0 %v7693_v34, %s8817_s29 }
 0x788   : > { %3786 = vrot.lane.b32.xlu1 %v7751_v37, %s8822_s27 }
 0x789   : > { %v4054_v45 = vpop.permute.xlu2 %4053 }
 0x78f   : > { %4406 = vrot.lane.b32.xlu2 %v7733_v21, %s8817_s29  ;;  %4549 = vrot.lane.b32.xlu0 %v7683_v50, %s8824_s19 }
 0x790   : > { %3792 = vrot.lane.b32.xlu1 %v7759_v6, %s8822_s27 }
 0x791   : > { %v4048_v53 = vpop.permute.xlu0 %4047  ;;  %v4191_v11 = vpop.permute.xlu2 %4190 }
 0x792   : > { %v7769_v31 = vsel %vm632_vm1, %v4048_v53, %v4054_v45  ;;  %v3838_v4 = vpop.permute.xlu1 %3837 }
 0x797   : > { %4543 = vrot.lane.b32.xlu2 %v7733_v21, %s8824_s19  ;;  %3772 = vrot.lane.b32.xlu0 %v7713_v28, %s8822_s27 }
 0x798   : > { %4051 = vrot.lane.b32.xlu1 %v7751_v37, %s8821_s25 }
 0x799   : > { %v4411_v26 = vpop.permute.xlu0 %4410  ;;  %v3771_v35 = vpop.permute.xlu2 %3770 }
 0x79a   : > { %v7779_v52 = vsel %vm512_vm2, %v3789_v51, %v3771_v35  ;;  %v3832_v9 = vpop.permute.xlu1 %3831 }
 0x79b   : > { %v7783_v60 = vsel %vm571_vm0, %v3832_v9, %v3838_v4 }
 0x79f   : > { %3778 = vrot.lane.b32.xlu0 %v7733_v21, %s8822_s27  ;;  %3835 = vrot.lane.b32.xlu2 %v7751_v37, %s8823_s18 }
 0x7a0   : > { %4188 = vrot.lane.b32.xlu1 %v7751_v37, %s8816_s30 }
 0x7a1   : > { %v4417_v5 = vpop.permute.xlu0 %4416  ;;  %v3777_v32 = vpop.permute.xlu2 %3776 }
 0x7a2   : > { %v7793_v16 = vsel %vm783_vm4, %v4411_v26, %v4417_v5  ;;  %v7797_v48 = vsel %vm512_vm2, %v3777_v32, %v3783_v15  ;;  %v7801_v20 = vsel %vm512_vm2, %v3771_v35, %v3777_v32  ;;  %v4185_v39 = vpop.permute.xlu1 %4184 }
 0x7a3   : > { %8829 = vst [vmem:[#allocation43_spill] sm:$0xff] %v7793_v16  ;;  %v7805_v29 = vsel %vm693_vm3, %v4185_v39, %v4191_v11 }
 0x7a7   : > { %3841 = vrot.lane.b32.xlu0 %v7759_v6, %s8823_s18  ;;  %4420 = vrot.lane.b32.xlu2 %v7759_v6, %s8817_s29 }
 0x7a8   : > { %3774 = vrot.lane.b32.xlu1 %v7807_v55, %s8822_s27 }
 0x7a9   : > { %v7815_v23 = vpop.permute.xlu0 %4547  ;;  %v3826_v33 = vpop.permute.xlu2 %3825 }
 0x7aa   : > { %8830 = vst [vmem:[#allocation44_spill] sm:$0xff] %v7815_v23  ;;  %v7819_v30 = vsel %vm571_vm0, %v3826_v33, %v3832_v9  ;;  %v3820_v58 = vpop.permute.xlu1 %3819  ;;  %v8840_v23 = vld [vmem:[#allocation9_spill] sm:$0xff] }
 0x7ab   : > { %v7823_v46 = vsel %vm571_vm0, %v3820_v58, %v3826_v33  ;;  %v7827_v44 = vsel %vm571_vm0, %v3838_v4, %v3820_v58 }
 0x7af   : > { %4057 = vrot.lane.b32.xlu0 %v7759_v6, %s8821_s25  ;;  %4551 = vrot.lane.b32.xlu2 %v7751_v37, %s8824_s19 }
 0x7b0   : > { %3780 = vrot.lane.b32.xlu1 %v7829_v62, %s8822_s27 }
 0x7b1   : > { %v7837_v24 = vpop.permute.xlu0 %3784  ;;  %v4042_v1 = vpop.permute.xlu2 %4041 }
 0x7b2   : > { %v7841_v18 = vsel %vm632_vm1, %v4042_v1, %v4048_v53  ;;  %v4036_v17 = vpop.permute.xlu1 %4035 }
 0x7b3   : > { %v7845_v19 = vsel %vm632_vm1, %v4036_v17, %v4042_v1  ;;  %v7849_v40 = vsel %vm632_vm1, %v4054_v45, %v4036_v17 }
 0x7b7   : > { %4194 = vrot.lane.b32.xlu0 %v7759_v6, %s8816_s30  ;;  %4557 = vrot.lane.b32.xlu2 %v7759_v6, %s8824_s19 }
 0x7b8   : > { %4674 = vrot.lane.b32.xlu1 %v7713_v28, %s8775_s10 }
 0x7b9   : > { %v4179_v36 = vpop.permute.xlu2 %4178  ;;  %v7857_v42 = vpop.permute.xlu0 %3790 }
 0x7ba   : > { %v7861_v13 = vsel %vm693_vm3, %v4179_v36, %v4185_v39  ;;  %v4173_v57 = vpop.permute.xlu1 %4172 }
 0x7bb   : > { %v7865_v59 = vsel %vm693_vm3, %v4173_v57, %v4179_v36  ;;  %v7869_v2 = vsel %vm693_vm3, %v4191_v11, %v4173_v57 }
 0x7bf   : > { %4414 = vrot.lane.b32.xlu0 %v7751_v37, %s8817_s29  ;;  %3823 = vrot.lane.b32.xlu2 %v7807_v55, %s8823_s18 }
 0x7c0   : > { %4672 = vrot.lane.b32.xlu1 %v7675_v61, %s8775_s10 }
 0x7c1   : > { %v4405_v25 = vpop.permute.xlu2 %4404  ;;  %v3840_v41 = vpop.permute.xlu0 %3839 }
 0x7c2   : > { %v7879_v49 = vsel %vm783_vm4, %v4405_v25, %v4411_v26  ;;  %v4399_v47 = vpop.permute.xlu1 %4398 }
 0x7c3   : > { %8831 = vst [vmem:[#allocation39_spill] sm:$0xff] %v7879_v49  ;;  %v7883_v27 = vsel %vm783_vm4, %v4399_v47, %v4405_v25  ;;  %v7887_v43 = vsel %vm783_vm4, %v4417_v5, %v4399_v47 }
 0x7c7   : > { %3829 = vrot.lane.b32.xlu0 %v7829_v62, %s8823_s18  ;;  %4688 = vrot.lane.b32.xlu2 %v7751_v37, %s8775_s10 }
 0x7c8   : > { %4176 = vrot.lane.b32.xlu1 %v7807_v55, %s8816_s30 }
 0x7c9   : > { %v7895_v63 = vpop.permute.xlu2 %4541  ;;  %v3834_v8 = vpop.permute.xlu0 %3833 }
 0x7ca   : > { %8832 = vst [vmem:[#allocation40_spill] sm:$0xff] %v7895_v63  ;;  %v7899_v3 = vsel %vm571_vm0, %v3834_v8, %v3840_v41  ;;  %v7901_v22 = vpop.permute.xlu1 %4535  ;;  %v4946_v63 = vld [vmem:[#allocation2] sm:$0x1] }
 0x7cb   : > { %8833 = vst [vmem:[#allocation45_spill] sm:$0xff] %v7901_v22 }
 0x7cf   : > { %4555 = vrot.lane.b32.xlu0 %v7693_v34, %s8824_s19  ;;  %4680 = vrot.lane.b32.xlu2 %v7733_v21, %s8775_s10 }
 0x7d0   : > { %4811 = vrot.lane.b32.xlu1 %v7713_v28, %s8778_s23 }
 0x7d1   : > { %v3828_v10 = vpop.permute.xlu2 %3827  ;;  %v4056_v14 = vpop.permute.xlu0 %4055 }
 0x7d2   : > { %v7911_v12 = vsel %vm571_vm0, %v3828_v10, %v3834_v8  ;;  %v3822_v15 = vpop.permute.xlu1 %3821 }
 0x7d3   : > { %v7915_v51 = vsel %vm571_vm0, %v3822_v15, %v3828_v10  ;;  %v7919_v45 = vsel %vm571_vm0, %v3840_v41, %v3822_v15 }
 0x7d7   : > { %4553 = vrot.lane.b32.xlu0 %v7655_v38, %s8824_s19  ;;  %4039 = vrot.lane.b32.xlu2 %v7807_v55, %s8821_s25 }
 0x7d8   : > { %4809 = vrot.lane.b32.xlu1 %v7675_v61, %s8778_s23 }
 0x7d9   : > { %v4044_v53 = vpop.permute.xlu2 %4043  ;;  %v4050_v11 = vpop.permute.xlu0 %4049 }
 0x7da   : > { %v7929_v4 = vsel %vm632_vm1, %v4050_v11, %v4056_v14  ;;  %v7933_v26 = vsel %vm632_vm1, %v4044_v53, %v4050_v11  ;;  %v4038_v35 = vpop.permute.xlu1 %4037 }
 0x7db   : > { %v7937_v9 = vsel %vm632_vm1, %v4038_v35, %v4044_v53  ;;  %v7941_v5 = vsel %vm632_vm1, %v4056_v14, %v4038_v35 }
 0x7df   : > { %4045 = vrot.lane.b32.xlu0 %v7829_v62, %s8821_s25  ;;  %4678 = vrot.lane.b32.xlu2 %v7691_v7, %s8775_s10 }
 0x7e0   : > { %4402 = vrot.lane.b32.xlu1 %v7807_v55, %s8817_s29 }
 0x7e1   : > { %v4181_v32 = vpop.permute.xlu2 %4180  ;;  %v4193_v39 = vpop.permute.xlu0 %4192 }
 0x7e2   : > { %v4175_v33 = vpop.permute.xlu1 %4174 }
 0x7e3   : > { %v7951_v58 = vsel %vm693_vm3, %v4175_v33, %v4181_v32  ;;  %v7955_v1 = vsel %vm693_vm3, %v4193_v39, %v4175_v33 }
 0x7e7   : > { %4686 = vrot.lane.b32.xlu0 %v7683_v50, %s8775_s10  ;;  %4182 = vrot.lane.b32.xlu2 %v7829_v62, %s8816_s30 }
 0x7e8   : > { %4545 = vrot.lane.b32.xlu1 %v7829_v62, %s8824_s19 }
 0x7e9   : > { %v4407_v17 = vpop.permute.xlu2 %4406  ;;  %v4187_v36 = vpop.permute.xlu0 %4186 }
 0x7ea   : > { %v7965_v57 = vsel %vm693_vm3, %v4187_v36, %v4193_v39  ;;  %v7969_v25 = vsel %vm693_vm3, %v4181_v32, %v4187_v36  ;;  %v4401_v41 = vpop.permute.xlu1 %4400 }
 0x7eb   : > { %v7973_v47 = vsel %vm783_vm4, %v4401_v41, %v4407_v17 }
 0x7ef   : > { %4684 = vrot.lane.b32.xlu0 %v7653_v54, %s8775_s10  ;;  %4694 = vrot.lane.b32.xlu2 %v7759_v6, %s8775_s10 }
 0x7f0   : > { %4539 = vrot.lane.b32.xlu1 %v7807_v55, %s8824_s19 }
 0x7f1   : > { %v7981_v8 = vpop.permute.xlu2 %4543  ;;  %v4413_v10 = vpop.permute.xlu0 %4412 }
 0x7f2   : > { %8834 = vst [vmem:[#allocation46_spill] sm:$0xff] %v7981_v8  ;;  %v7985_v14 = vsel %vm783_vm4, %v4407_v17, %v4413_v10  ;;  %v7987_v15 = vpop.permute.xlu1 %4537 }
 0x7f3   : > { %8835 = vst [vmem:[#allocation5_spill] sm:$0xff] %v7985_v14  ;;  %v8843_v14 = vld [vmem:[#allocation12_spill] sm:$0xff] }
 0x7f4   : > { %8836 = vst [vmem:[#allocation47_spill] sm:$0xff] %v7987_v15  ;;  %v8086_v15 = vld [vmem:[%s8574_s9 + $0x1] sm:$0x1] }
 0x7f7   : > { %4692 = vrot.lane.b32.xlu0 %v7693_v34, %s8775_s10  ;;  %4408 = vrot.lane.b32.xlu2 %v7829_v62, %s8817_s29 }
 0x7f8   : > { %4682 = vrot.lane.b32.xlu1 %v7829_v62, %s8775_s10 }
 0x7f9   : > { %v4419_v53 = vpop.permute.xlu0 %4418  ;;  %v7995_v11 = vpop.permute.xlu2 %3835 }
 0x7fa   : > { %v7999_v35 = vsel %vm783_vm4, %v4413_v10, %v4419_v53  ;;  %v8003_v32 = vsel %vm783_vm4, %v4419_v53, %v4401_v41  ;;  %v3787_v39 = vpop.permute.xlu1 %3786  ;;  %v3795_v10 = vsel %vm512_vm2, %v7837_v24, %v7857_v42 }
 0x7fb   : > { %8837 = vst [vmem:[#allocation48_spill] sm:$0xff] %v7999_v35  ;;  %v3813_v16 = vmul.f32 %v3795_v10, %v8840_v23 }
 0x7ff   : > { %4690 = vrot.lane.b32.xlu0 %v7655_v38, %s8775_s10  ;;  %4825 = vrot.lane.b32.xlu2 %v7751_v37, %s8778_s23 }
 0x800   : > { %4676 = vrot.lane.b32.xlu1 %v7807_v55, %s8775_s10 }
 0x801   : > { %v8011_v33 = vpop.permute.xlu0 %4549  ;;  %v8013_v17 = vpop.permute.xlu2 %4420 }
 0x802   : > { %8838 = vst [vmem:[#allocation49_spill] sm:$0xff] %v8011_v33  ;;  %v8019_v36 = vsel %vm844_vm5, %v7981_v8, %v8011_v33  ;;  %v8021_v41 = vpop.permute.xlu1 %3792 }
 0x803   : > { %8839 = vst [vmem:[#allocation50_spill] sm:$0xff] %v8019_v36  ;;  %v3796_v53 = vsel %vm512_vm2, %v3787_v39, %v8021_v41  ;;  %v3809_v36 = vmul.f32 %v7749_v56, %v8840_v23 }
 0x804   : > { %v3817_v49 = vmul.f32 %v3796_v53, %v8840_v23 }
 0x806   : > { %4028 = vmatpush.msra.mxu1 %v3817_v49  ;;  %v8049_v49 = vld [vmem:[%s8574_s9] sm:$0x1] }
 0x807   : > { %4823 = vrot.lane.b32.xlu0 %v7683_v50, %s8778_s23  ;;  %4817 = vrot.lane.b32.xlu2 %v7733_v21, %s8778_s23  ;;  %v3855_v50 = vmul.f32 %v7827_v44, %v8843_v14  ;;  %v8845_v44 = vld [vmem:[#allocation15_spill] sm:$0xff] }
 0x808   : > { %4819 = vrot.lane.b32.xlu1 %v7829_v62, %s8778_s23  ;;  %4029 = vmatpush.msra.mxu1 %v3813_v16  ;;  %v4074_v37 = vmul.f32 %v7769_v31, %v8845_v44 }
 0x809   : > { %v8040_v33 = vpop.permute.xlu0 %3772  ;;  %v8042_v35 = vpop.permute.xlu2 %4551 }
 0x80a   : > { %8841 = vst [vmem:[#allocation9_spill] sm:$0xff] %v8042_v35  ;;  %4030 = vmatpush.msra.mxu1 %v3809_v36  ;;  %v8044_v10 = vpop.permute.xlu1 %4051 }
 0x80b   : > { %5309 = vmatmul.msk.f32.vlgmr.msra.gmra.mxu1 %vm3159_vm10, %v8049_v49 }
 0x80f   : > { %4821 = vrot.lane.b32.xlu0 %v7653_v54, %s8778_s23  ;;  %4815 = vrot.lane.b32.xlu2 %v7691_v7, %s8778_s23  ;;  %v3859_v7 = vmul.f32 %v7919_v45, %v8843_v14 }
 0x810   : > { %4813 = vrot.lane.b32.xlu1 %v7807_v55, %s8778_s23 }
 0x811   : > { %v8059_v56 = vpop.permute.xlu0 %3778  ;;  %v8061_v16 = vpop.permute.xlu2 %4557 }
 0x812   : > { %8842 = vst [vmem:[#allocation51_spill] sm:$0xff] %v8061_v16  ;;  %v8063_v23 = vpop.permute.xlu1 %4188 }
 0x817   : > { %4829 = vrot.lane.b32.xlu0 %v7693_v34, %s8778_s23  ;;  %4831 = vrot.lane.b32.xlu2 %v7759_v6, %s8778_s23 }
 0x818   : > { %4827 = vrot.lane.b32.xlu1 %v7655_v38, %s8778_s23 }
 0x819   : > { %v8071_v36 = vpop.permute.xlu0 %3841  ;;  %v3824_v53 = vpop.permute.xlu2 %3823 }
 0x81a   : > { %v3854_v35 = vsel %vm571_vm0, %v8071_v36, %v3824_v53  ;;  %v8076_v54 = vpop.permute.xlu1 %3774 }
 0x81b   : > { %v3863_v22 = vmul.f32 %v3854_v35, %v8843_v14  ;;  %v8846_v14 = vld [vmem:[#allocation11_spill] sm:$0xff] }
 0x81d   : > { %3885 = vmatpush.msrb.mxu2 %v3863_v22 }
 0x81f   : > { %4949 = vperm.xlu2 %5371, %v4946_v63   ;;  %3886 = vmatpush.msrb.mxu2 %v3859_v7  ;;  %v3798_v7 = vsel %vm512_vm2, %v8059_v56, %v7837_v24  ;;  %v8117_v24 = vld [vmem:[%s8574_s9 + $0x2] sm:$0x1] }
 0x820   : > { %v3812_v16 = vmul.f32 %v3798_v7, %v8846_v14  ;;  %v8847_v7 = vld [vmem:[#allocation24_spill] sm:$0xff] }
 0x821   : > { %v8088_v8 = vpop.permute.xlu0 %4057  ;;  %v8090_v21 = vpop.permute.xlu2 %4688  ;;  %3887 = vmatpush.msrb.mxu2 %v3855_v50 }
 0x822   : > { %8844 = vst [vmem:[#allocation12_spill] sm:$0xff] %v8090_v21  ;;  %v4061_v22 = vsel %vm632_vm1, %v8044_v10, %v8088_v8  ;;  %v8096_v45 = vpop.permute.xlu1 %3780  ;;  %5302 = vmatmul.msk.f32.vlgmr.msrb.gmra.mxu2 %vm3159_vm10, %v8086_v15  ;;  %v4078_v21 = vmul.f32 %v7929_v4, %v8845_v44 }
 0x823   : > { %v4082_v63 = vmul.f32 %v4061_v22, %v8845_v44  ;;  %v3799_v50 = vsel %vm512_vm2, %v8096_v45, %v3787_v39  ;;  %v3808_v39 = vmul.f32 %v7797_v48, %v8846_v14 }
 0x824   : > { %v3816_v35 = vmul.f32 %v3799_v50, %v8846_v14 }
 0x825   : > { %4161 = vmatpush.msrb.mxu1 %v4082_v63  ;;  %v8149_v63 = vld [vmem:[%s8574_s9 + $0x3] sm:$0x1] }
 0x826   : > { %4008 = vmatpush.msra.mxu0 %v3816_v35 }
 0x827   : > { %4162 = vmatpush.msrb.mxu1 %v4078_v21 }
 0x828   : > { %4009 = vmatpush.msra.mxu0 %v3812_v16  ;;  %v4211_v16 = vmul.f32 %v7805_v29, %v8847_v7  ;;  %v8165_v29 = vld [vmem:[%s8574_s9 + $0x4] sm:$0x1] }
 0x829   : > { %v8121_v22 = vpop.permute.xlu0 %4194  ;;  %v8123_v4 = vpop.permute.xlu2 %4680  ;;  %4163 = vmatpush.msrb.mxu1 %v4074_v37  ;;  %v4215_v37 = vmul.f32 %v7965_v57, %v8847_v7 }
 0x82a   : > { %v4198_v31 = vsel %vm693_vm3, %v8063_v23, %v8121_v22  ;;  %4010 = vmatpush.msra.mxu0 %v3808_v39  ;;  %v8129_v21 = vpop.permute.xlu1 %4674  ;;  %5314 = vmatmul.msk.f32.vlgmr.msrb.gmra.mxu1 %vm3159_vm10, %v8117_v24 }
 0x82b   : > { %v4219_v44 = vmul.f32 %v4198_v31, %v8847_v7  ;;  %v8138_v48 = vsel %vm905_vm6, %v8129_v21, %v8123_v4  ;;  %5308 = vmatmul.msk.f32.vlgmr.msra.gmra.mxu0 %vm3159_vm10, %v8049_v49 }
 0x82c   : > { %8848 = vst [vmem:[#allocation15_spill] sm:$0xff] %v8138_v48 }
 0x82d   : > { %4298 = vmatpush.msra.mxu1 %v4219_v44 }
 0x82f   : > { %4299 = vmatpush.msra.mxu1 %v4215_v37 }
 0x831   : > { %v8151_v50 = vpop.permute.xlu0 %4414  ;;  %v8153_v14 = vpop.permute.xlu2 %4039  ;;  %4300 = vmatpush.msra.mxu1 %v4211_v16 }
 0x832   : > { %v8155_v35 = vpop.permute.xlu1 %4672  ;;  %5319 = vmatmul.msk.f32.vlgmr.msra.gmra.mxu1 %vm3159_vm10, %v8149_v63 }
 0x833   : > { %4387 = vmatpush.msrb.mxu1 %v7759_v6 }
 0x835   : > { %4388 = vmatpush.msrb.mxu1 %v7693_v34  ;;  %v8849_v34 = vld [vmem:[#allocation6_spill] sm:$0xff] }
 0x836   : > { %v3860_v48 = vmul.f32 %v7915_v51, %v8849_v34 }
 0x837   : > { %4389 = vmatpush.msrb.mxu1 %v7655_v38  ;;  %v8850_v38 = vld [vmem:[#allocation13_spill] sm:$0xff] }
 0x838   : > { %v3861_v16 = vmul.f32 %v7911_v12, %v8850_v38  ;;  %v3805_v12 = vsel %vm512_vm2, %v8021_v41, %v8076_v54 }
 0x839   : > { %v3830_v57 = vpop.permute.xlu0 %3829  ;;  %v8167_v39 = vpop.permute.xlu2 %4678 }
 0x83a   : > { %v3848_v31 = vsel %vm571_vm0, %v3830_v57, %v7995_v11  ;;  %v3851_v6 = vsel %vm571_vm0, %v3824_v53, %v3830_v57  ;;  %v8174_v7 = vpop.permute.xlu1 %4176  ;;  %5324 = vmatmul.msk.f32.vlgmr.msrb.gmra.mxu1 %vm3159_vm10, %v8165_v29  ;;  %v3857_v53 = vmul.f32 %v7819_v30, %v8850_v38  ;;  %v3856_v57 = vmul.f32 %v7823_v46, %v8849_v34 }
 0x83b   : > { %v3864_v44 = vmul.f32 %v3851_v6, %v8849_v34  ;;  %v3865_v37 = vmul.f32 %v3848_v31, %v8850_v38  ;;  %v3845_v31 = vsel %vm571_vm0, %v7995_v11, %v8071_v36  ;;  %v3804_v30 = vsel %vm512_vm2, %v7857_v42, %v8040_v33  ;;  %v8851_v6 = vld [vmem:[#allocation14_spill] sm:$0xff]  ;;  %v8852_v36 = vld [vmem:[#allocation8_spill] sm:$0xff] }
 0x83c   : > { %v3866_v11 = vmul.f32 %v3845_v31, %v8851_v6  ;;  %v3814_v34 = vmul.f32 %v3805_v12, %v8852_v36  ;;  %v3862_v41 = vmul.f32 %v7899_v3, %v8851_v6  ;;  %v3810_v42 = vmul.f32 %v3804_v30, %v8852_v36 }
 0x83d   : > { %3905 = vmatpush.msrb.mxu3 %v3864_v44  ;;  %3925 = vmatpush.msra.mxu2 %v3865_v37  ;;  %v4070_v38 = vsel %vm632_vm1, %v8088_v8, %v8153_v14  ;;  %v3806_v3 = vmul.f32 %v7779_v52, %v8852_v36  ;;  %v3858_v37 = vmul.f32 %v7783_v60, %v8851_v6 }
 0x83e   : > { %v4207_v60 = vsel %vm693_vm3, %v8121_v22, %v8174_v7  ;;  %v8855_v22 = vld [vmem:[#allocation22_spill] sm:$0xff] }
 0x83f   : > { %3906 = vmatpush.msrb.mxu3 %v3860_v48  ;;  %3926 = vmatpush.msra.mxu2 %v3861_v16  ;;  %v3802_v48 = vsel %vm512_vm2, %v8076_v54, %v8096_v45  ;;  %v3801_v16 = vsel %vm512_vm2, %v8040_v33, %v8059_v56  ;;  %v8853_v54 = vld [vmem:[#allocation10_spill] sm:$0xff]  ;;  %v4216_v30 = vmul.f32 %v4207_v60, %v8855_v22  ;;  %v8862_v60 = vld [vmem:[#allocation29_spill] sm:$0xff] }
 0x840   : > { %v3815_v45 = vmul.f32 %v3802_v48, %v8853_v54  ;;  %v3811_v52 = vmul.f32 %v3801_v16, %v8853_v54  ;;  %v4212_v6 = vmul.f32 %v7955_v1, %v8855_v22  ;;  %v8856_v1 = vld [vmem:[#allocation16_spill] sm:$0xff]  ;;  %v8860_v16 = vld [vmem:[#allocation18_spill] sm:$0xff] }
 0x841   : > { %v8200_v51 = vpop.permute.xlu0 %4555  ;;  %v8202_v46 = vpop.permute.xlu2 %4182  ;;  %3907 = vmatpush.msrb.mxu3 %v3856_v57  ;;  %3927 = vmatpush.msra.mxu2 %v3857_v53  ;;  %v8854_v53 = vld [vmem:[#allocation7_spill] sm:$0xff] }
 0x842   : > { %v8206_v44 = vpop.permute.xlu1 %4811  ;;  %5303 = vmatmul.msk.f32.vlgmr.msrb.gmra.mxu3 %vm3159_vm10, %v8086_v15  ;;  %5304 = vmatmul.msk.f32.vlgmr.msra.gmra.mxu2 %vm3159_vm10, %v8086_v15  ;;  %v4079_v57 = vmul.f32 %v4070_v38, %v8854_v53  ;;  %v4075_v8 = vmul.f32 %v7941_v5, %v8854_v53  ;;  %v3807_v5 = vmul.f32 %v7801_v20, %v8853_v54 }
 0x843   : > { %3945 = vmatpush.msra.mxu3 %v3866_v11  ;;  %3968 = vmatpush.msrb.mxu2 %v3814_v34  ;;  %v4071_v12 = vmul.f32 %v7849_v40, %v8854_v53 }
 0x845   : > { %3946 = vmatpush.msra.mxu3 %v3862_v41  ;;  %3969 = vmatpush.msrb.mxu2 %v3810_v42  ;;  %v8857_v42 = vld [vmem:[#allocation17_spill] sm:$0xff] }
 0x847   : > { %3947 = vmatpush.msra.mxu3 %v3858_v37  ;;  %3970 = vmatpush.msrb.mxu2 %v3806_v3  ;;  %v4073_v3 = vmul.f32 %v7841_v18, %v8857_v42 }
 0x849   : > { %3988 = vmatpush.msrb.mxu3 %v3815_v45  ;;  %4101 = vmatpush.msra.mxu2 %v4079_v57  ;;  %v8240_v33 = vpop.permute.xlu0 %4553  ;;  %v8242_v56 = vpop.permute.xlu2 %4694  ;;  %v4214_v57 = vmul.f32 %v7969_v25, %v8860_v16 }
 0x84a   : > { %v8244_v31 = vpop.permute.xlu1 %4809  ;;  %5305 = vmatmul.msk.f32.vlgmr.msra.gmra.mxu3 %vm3159_vm10, %v8086_v15  ;;  %5306 = vmatmul.msk.f32.vlgmr.msrb.gmra.mxu2 %vm3159_vm10, %v8049_v49  ;;  %v4208_v15 = vmul.f32 %v7869_v2, %v8855_v22 }
 0x84b   : > { %3989 = vmatpush.msrb.mxu3 %v3811_v52  ;;  %4102 = vmatpush.msra.mxu2 %v4075_v8 }
 0x84d   : > { %3990 = vmatpush.msrb.mxu3 %v3807_v5  ;;  %4103 = vmatpush.msra.mxu2 %v4071_v12  ;;  %v8863_v12 = vld [vmem:[#allocation51_spill] sm:$0xff] }
 0x84f   : > { %4238 = vmatpush.msrb.mxu2 %v4216_v30  ;;  %v8864_v30 = vld [vmem:[#allocation23_spill] sm:$0xff] }
 0x851   : > { %4239 = vmatpush.msrb.mxu2 %v4212_v6  ;;  %v4046_v20 = vpop.permute.xlu0 %4045  ;;  %v4409_v11 = vpop.permute.xlu2 %4408 }
 0x852   : > { %v4064_v40 = vsel %vm632_vm1, %v4046_v20, %v8044_v10  ;;  %v4067_v36 = vsel %vm632_vm1, %v8153_v14, %v4046_v20  ;;  %v4403_v34 = vpop.permute.xlu1 %4402  ;;  %5307 = vmatmul.msk.f32.vlgmr.msrb.gmra.mxu3 %vm3159_vm10, %v8049_v49  ;;  %5311 = vmatmul.msk.f32.vlgmr.msra.gmra.mxu2 %vm3159_vm10, %v8117_v24  ;;  %v8858_v10 = vld [vmem:[#allocation28_spill] sm:$0xff]  ;;  %v4077_v14 = vmul.f32 %v7933_v26, %v8857_v42  ;;  %v8868_v20 = vld [vmem:[#allocation26_spill] sm:$0xff] }
 0x853   : > { %4240 = vmatpush.msrb.mxu2 %v4208_v15  ;;  %v4080_v41 = vmul.f32 %v4067_v36, %v8856_v1  ;;  %v4081_v2 = vmul.f32 %v4064_v40, %v8857_v42  ;;  %v4433_v48 = vsel %vm783_vm4, %v8013_v17, %v4403_v34  ;;  %v4076_v49 = vmul.f32 %v7937_v9, %v8856_v1  ;;  %v8869_v40 = vld [vmem:[#allocation41_spill] sm:$0xff]  ;;  %v8870_v36 = vld [vmem:[#allocation34_spill] sm:$0xff] }
 0x854   : > { %v4445_v38 = vmul.f32 %v4433_v48, %v8858_v10  ;;  %v4441_v37 = vmul.f32 %v8003_v32, %v8858_v10  ;;  %v4201_v26 = vsel %vm693_vm3, %v8202_v46, %v8063_v23  ;;  %v4204_v9 = vsel %vm693_vm3, %v8174_v7, %v8202_v46  ;;  %v8859_v7 = vld [vmem:[#allocation20_spill] sm:$0xff] }
 0x855   : > { %4327 = vmatpush.msra.mxu2 %v7807_v55  ;;  %4121 = vmatpush.msra.mxu3 %v4080_v41  ;;  %v4072_v55 = vmul.f32 %v7845_v19, %v8856_v1  ;;  %v4437_v18 = vmul.f32 %v7887_v43, %v8858_v10  ;;  %v4217_v46 = vmul.f32 %v4204_v9, %v8859_v7  ;;  %v8861_v43 = vld [vmem:[#allocation25_spill] sm:$0xff]  ;;  %v8871_v1 = vld [vmem:[#allocation27_spill] sm:$0xff]  ;;  %v8873_v48 = vld [vmem:[#allocation40_spill] sm:$0xff] }
 0x856   : > { %4141 = vmatpush.msrb.mxu0 %v4081_v2  ;;  %4524 = vmatpush.msra.mxu1 %v4445_v38  ;;  %v4218_v54 = vmul.f32 %v4201_v26, %v8860_v16  ;;  %v4213_v53 = vmul.f32 %v7951_v58, %v8859_v7  ;;  %v4438_v8 = vmul.f32 %v7973_v47, %v8861_v43  ;;  %v8872_v2 = vld [vmem:[#allocation42_spill] sm:$0xff]  ;;  %v8874_v10 = vld [vmem:[#allocation45_spill] sm:$0xff]  ;;  %v8878_v9 = vld [vmem:[#allocation43_spill] sm:$0xff] }
 0x857   : > { %4328 = vmatpush.msra.mxu2 %v7713_v28  ;;  %4122 = vmatpush.msra.mxu3 %v4076_v49  ;;  %v4430_v28 = vsel %vm783_vm4, %v4403_v34, %v4409_v11  ;;  %v4209_v52 = vmul.f32 %v7865_v59, %v8859_v7  ;;  %v4434_v58 = vmul.f32 %v7883_v27, %v8861_v43  ;;  %v8876_v49 = vld [vmem:[#allocation30_spill] sm:$0xff] }
 0x858   : > { %4142 = vmatpush.msrb.mxu0 %v4077_v14  ;;  %4525 = vmatpush.msra.mxu1 %v4441_v37  ;;  %v4442_v45 = vmul.f32 %v4430_v28, %v8861_v43  ;;  %v4427_v47 = vsel %vm783_vm4, %v4409_v11, %v8151_v50  ;;  %v4424_v59 = vsel %vm783_vm4, %v8151_v50, %v8013_v17  ;;  %v8866_v17 = vld [vmem:[#allocation46_spill] sm:$0xff]  ;;  %v8867_v50 = vld [vmem:[#allocation47_spill] sm:$0xff]  ;;  %v8875_v14 = vld [vmem:[#allocation5_spill] sm:$0xff] }
 0x859   : > { %4329 = vmatpush.msra.mxu2 %v7675_v61  ;;  %v8300_v19 = vpop.permute.xlu0 %4686  ;;  %v8302_v32 = vpop.permute.xlu2 %4825  ;;  %4123 = vmatpush.msra.mxu3 %v4072_v55  ;;  %v8313_v61 = vld [vmem:[%s8574_s9 + $0x5] sm:$0x1]  ;;  %v4566_v15 = vsel %vm844_vm5, %v8867_v50, %v8866_v17  ;;  %v4443_v11 = vmul.f32 %v4427_v47, %v8868_v20  ;;  %v4444_v41 = vmul.f32 %v4424_v59, %v8871_v1  ;;  %v8877_v37 = vld [vmem:[#allocation48_spill] sm:$0xff]  ;;  %v8880_v43 = vld [vmem:[#allocation9_spill] sm:$0xff] }
 0x85a   : > { %4143 = vmatpush.msrb.mxu0 %v4073_v3  ;;  %v8304_v23 = vpop.permute.xlu1 %4545  ;;  %4526 = vmatpush.msra.mxu1 %v4437_v18  ;;  %v4569_v42 = vsel %vm844_vm5, %v8200_v51, %v8867_v50  ;;  %v4565_v38 = vsel %vm844_vm5, %v8874_v10, %v8873_v48  ;;  %v4440_v55 = vmul.f32 %v8877_v37, %v8871_v1  ;;  %v8879_v28 = vld [vmem:[#allocation39_spill] sm:$0xff] }
 0x85b   : > { %5312 = vmatmul.msk.f32.vlgmr.msra.gmra.mxu3 %vm3159_vm10, %v8117_v24  ;;  %5313 = vmatmul.msk.f32.vlgmr.msrb.gmra.mxu0 %vm3159_vm10, %v8117_v24  ;;  %v4210_v24 = vmul.f32 %v7861_v13, %v8860_v16  ;;  %v4568_v26 = vsel %vm844_vm5, %v8240_v33, %v8874_v10  ;;  %v4436_v18 = vmul.f32 %v8878_v9, %v8871_v1  ;;  %v8889_v10 = vld [vmem:[#allocation35_spill] sm:$0xff] }
 0x85c   : > { %5316 = vmatmul.msk.f32.vlgmr.msrb.gmra.mxu2 %vm3159_vm10, %v8149_v63  ;;  %4258 = vmatpush.msrb.mxu3 %v4217_v46  ;;  %v4435_v7 = vmul.f32 %v8879_v28, %v8868_v20  ;;  %v4578_v46 = vmul.f32 %v4569_v42, %v8870_v36 }
 0x85d   : > { %4278 = vmatpush.msra.mxu0 %v4218_v54  ;;  %4464 = vmatpush.msrb.mxu2 %v4442_v45  ;;  %v4561_v45 = vsel %vm844_vm5, %v8880_v43, %v8863_v12 }
 0x85e   : > { %5329 = vmatmul.msk.f32.vlgmr.msra.gmra.mxu1 %vm3159_vm10, %v8313_v61  ;;  %4259 = vmatpush.msrb.mxu3 %v4213_v53  ;;  %v4564_v53 = vsel %vm844_vm5, %v8304_v23, %v8880_v43  ;;  %v8892_v43 = vld [vmem:[#allocation19_spill] sm:$0xff] }
 0x85f   : > { %4279 = vmatpush.msra.mxu0 %v4214_v57  ;;  %4465 = vmatpush.msrb.mxu2 %v4438_v8  ;;  %v4574_v8 = vmul.f32 %v4568_v26, %v8870_v36  ;;  %v8891_v26 = vld [vmem:[#allocation15_spill] sm:$0xff] }
 0x860   : > { %4260 = vmatpush.msrb.mxu3 %v4209_v52 }
 0x861   : > { %4280 = vmatpush.msra.mxu0 %v4210_v24  ;;  %v8334_v25 = vpop.permute.xlu0 %4684  ;;  %4466 = vmatpush.msrb.mxu2 %v4434_v58  ;;  %v8345_v27 = vpop.permute.xlu2 %4817  ;;  %v8881_v24 = vld [vmem:[#allocation49_spill] sm:$0xff] }
 0x862   : > { %4347 = vmatpush.msra.mxu3 %v7829_v62  ;;  %v4540_v13 = vpop.permute.xlu1 %4539  ;;  %v8865_v62 = vld [vmem:[#allocation31_spill] sm:$0xff]  ;;  %v4560_v52 = vsel %vm844_vm5, %v8881_v24, %v8200_v51  ;;  %v8882_v58 = vld [vmem:[#allocation33_spill] sm:$0xff] }
 0x863   : > { %4367 = vmatpush.msrb.mxu0 %v8862_v60  ;;  %v4567_v5 = vsel %vm844_vm5, %v4540_v13, %v8304_v23  ;;  %v4570_v22 = vsel %vm844_vm5, %v8863_v12, %v4540_v13  ;;  %5317 = vmatmul.msk.f32.vlgmr.msrb.gmra.mxu3 %vm3159_vm10, %v8149_v63  ;;  %v4575_v3 = vmul.f32 %v4566_v15, %v8865_v62  ;;  %v8883_v13 = vld [vmem:[#allocation32_spill] sm:$0xff]  ;;  %v8416_v23 = vld [vmem:[%s8574_s9 + $0x6] sm:$0x1] }
 0x864   : > { %4348 = vmatpush.msra.mxu3 %v8864_v30  ;;  %v4579_v6 = vmul.f32 %v4567_v5, %v8865_v62  ;;  %5318 = vmatmul.msk.f32.vlgmr.msra.gmra.mxu0 %vm3159_vm10, %v8149_v63  ;;  %v4582_v34 = vmul.f32 %v4570_v22, %v8870_v36  ;;  %v4439_v63 = vmul.f32 %v8875_v14, %v8868_v20  ;;  %v8884_v5 = vld [vmem:[#allocation44_spill] sm:$0xff]  ;;  %v8885_v22 = vld [vmem:[#allocation50_spill] sm:$0xff] }
 0x865   : > { %4368 = vmatpush.msrb.mxu0 %v8869_v40  ;;  %5321 = vmatmul.msk.f32.vlgmr.msra.gmra.mxu2 %vm3159_vm10, %v8165_v29  ;;  %v4571_v54 = vmul.f32 %v4565_v38, %v8865_v62  ;;  %v4581_v47 = vmul.f32 %v4561_v45, %v8882_v58  ;;  %v4580_v59 = vmul.f32 %v4564_v53, %v8883_v13  ;;  %v8893_v53 = vld [vmem:[#allocation4_spill] sm:$0xff] }
 0x866   : > { %4349 = vmatpush.msra.mxu3 %v8872_v2  ;;  %4601 = vmatpush.msra.mxu2 %v4579_v6  ;;  %v4562_v51 = vsel %vm844_vm5, %v8873_v48, %v8884_v5  ;;  %v4559_v12 = vsel %vm844_vm5, %v8884_v5, %v8240_v33  ;;  %v4576_v30 = vmul.f32 %v8885_v22, %v8883_v13  ;;  %v8886_v6 = vld [vmem:[#allocation12_spill] sm:$0xff] }
 0x867   : > { %4369 = vmatpush.msrb.mxu0 %v8876_v49  ;;  %4661 = vmatpush.msrb.mxu1 %v4582_v34  ;;  %v4577_v62 = vmul.f32 %v4560_v52, %v8882_v58  ;;  %v4698_v17 = vsel %vm905_vm6, %v8886_v6, %v8242_v56  ;;  %v4573_v33 = vmul.f32 %v4559_v12, %v8882_v58  ;;  %v8888_v2 = vld [vmem:[#allocation36_spill] sm:$0xff] }
 0x868   : > { %4484 = vmatpush.msrb.mxu3 %v4443_v11  ;;  %4602 = vmatpush.msra.mxu2 %v4575_v3  ;;  %v8887_v11 = vld [vmem:[#allocation37_spill] sm:$0xff]  ;;  %v4700_v36 = vsel %vm905_vm6, %v8123_v4, %v8300_v19  ;;  %v4840_v58 = vsel %vm966_vm7, %v8206_v44, %v8345_v27 }
 0x869   : > { %4504 = vmatpush.msra.mxu0 %v4444_v41  ;;  %v4693_v16 = vpop.permute.xlu0 %4692  ;;  %4662 = vmatpush.msrb.mxu1 %v4578_v46  ;;  %v8409_v60 = vpop.permute.xlu2 %4815  ;;  %v4718_v40 = vmul.f32 %v4698_v17, %v8887_v11  ;;  %v5335_v46 = vld [vmem:[%s8574_s9 + $0x7] sm:$0x1] }
 0x86a   : > { %4485 = vmatpush.msrb.mxu3 %v4439_v63  ;;  %v4683_v57 = vpop.permute.xlu1 %4682  ;;  %4603 = vmatpush.msra.mxu2 %v4571_v54  ;;  %v4697_v34 = vsel %vm905_vm6, %v8300_v19, %v4693_v16  ;;  %v4706_v4 = vsel %vm905_vm6, %v4693_v16, %v8129_v21  ;;  %v8890_v19 = vld [vmem:[#allocation38_spill] sm:$0xff]  ;;  %v4702_v63 = vsel %vm905_vm6, %v8155_v35, %v8167_v39 }
 0x86b   : > { %4505 = vmatpush.msra.mxu0 %v4440_v55  ;;  %4663 = vmatpush.msrb.mxu1 %v4574_v8  ;;  %v4701_v15 = vsel %vm905_vm6, %v4683_v57, %v8886_v6  ;;  %v4699_v21 = vsel %vm905_vm6, %v8167_v39, %v8334_v25  ;;  %v4714_v49 = vmul.f32 %v4697_v34, %v8887_v11 }
 0x86c   : > { %4486 = vmatpush.msrb.mxu3 %v4435_v7  ;;  %5323 = vmatmul.msk.f32.vlgmr.msrb.gmra.mxu0 %vm3159_vm10, %v8165_v29  ;;  %v4717_v48 = vmul.f32 %v4701_v15, %v8888_v2  ;;  %v4712_v39 = vmul.f32 %v8891_v26, %v8889_v10  ;;  %v4839_v22 = vsel %vm966_vm7, %v8244_v31, %v8409_v60 }
 0x86d   : > { %4506 = vmatpush.msra.mxu0 %v4436_v18  ;;  %5322 = vmatmul.msk.f32.vlgmr.msra.gmra.mxu3 %vm3159_vm10, %v8165_v29  ;;  %v4572_v29 = vmul.f32 %v4562_v51, %v8883_v13  ;;  %v4708_v18 = vmul.f32 %v4702_v63, %v8889_v10  ;;  %v8895_v51 = vld [vmem:[#allocation21_spill] sm:$0xff] }
 0x86e   : > { %5326 = vmatmul.msk.f32.vlgmr.msrb.gmra.mxu2 %vm3159_vm10, %v8313_v61  ;;  %4621 = vmatpush.msra.mxu3 %v4580_v59 }
 0x86f   : > { %4641 = vmatpush.msrb.mxu0 %v4581_v47  ;;  %5334 = vmatmul.msk.f32.vlgmr.msrb.gmra.mxu1 %vm3159_vm10, %v8416_v23 }
 0x870   : > { %4622 = vmatpush.msra.mxu3 %v4576_v30 }
 0x871   : > { %4642 = vmatpush.msrb.mxu0 %v4577_v62  ;;  %v4691_v50 = vpop.permute.xlu0 %4690  ;;  %v4832_v55 = vpop.permute.xlu2 %4831  ;;  %v5340_v62 = vld [vmem:[%s8574_s9 + $0x8] sm:$0x1] }
 0x872   : > { %v4677_v20 = vpop.permute.xlu1 %4676  ;;  %4623 = vmatpush.msra.mxu3 %v4572_v29  ;;  %v4696_v1 = vsel %vm905_vm6, %v8334_v25, %v4691_v50  ;;  %v4705_v3 = vsel %vm905_vm6, %v4691_v50, %v8155_v35  ;;  %v4715_v25 = vmul.f32 %v4706_v4, %v8890_v19  ;;  %v4835_v28 = vsel %vm966_vm7, %v8302_v32, %v4832_v55 }
 0x873   : > { %4643 = vmatpush.msrb.mxu0 %v4573_v33  ;;  %v4704_v41 = vsel %vm905_vm6, %v4677_v20, %v4683_v57  ;;  %v4707_v42 = vsel %vm905_vm6, %v8242_v56, %v4677_v20  ;;  %v4713_v56 = vmul.f32 %v4700_v36, %v8888_v2  ;;  %v4710_v37 = vmul.f32 %v4696_v1, %v8887_v11 }
 0x874   : > { %v4716_v38 = vmul.f32 %v4704_v41, %v8889_v10  ;;  %v4719_v14 = vmul.f32 %v4707_v42, %v8890_v19  ;;  %5328 = vmatmul.msk.f32.vlgmr.msra.gmra.mxu0 %vm3159_vm10, %v8313_v61  ;;  %v4711_v35 = vmul.f32 %v4705_v3, %v8890_v19  ;;  %v4855_v57 = vmul.f32 %v4835_v28, %v8893_v53 }
 0x875   : > { %5327 = vmatmul.msk.f32.vlgmr.msrb.gmra.mxu3 %vm3159_vm10, %v8313_v61  ;;  %4778 = vmatpush.msra.mxu0 %v4718_v40  ;;  %v4709_v61 = vmul.f32 %v4699_v21, %v8888_v2 }
 0x876   : > { %5331 = vmatmul.msk.f32.vlgmr.msra.gmra.mxu2 %vm3159_vm10, %v8416_v23  ;;  %4758 = vmatpush.msrb.mxu3 %v4717_v48 }
 0x877   : > { %4738 = vmatpush.msrb.mxu2 %v4716_v38  ;;  %4798 = vmatpush.msra.mxu1 %v4719_v14 }
 0x878   : > { %4759 = vmatpush.msrb.mxu3 %v4713_v56  ;;  %4779 = vmatpush.msra.mxu0 %v4714_v49 }
 0x879   : > { %v4824_v9 = vpop.permute.xlu0 %4823  ;;  %4739 = vmatpush.msrb.mxu2 %v4712_v39  ;;  %4799 = vmatpush.msra.mxu1 %v4715_v25 }
 0x87a   : > { %v4820_v7 = vpop.permute.xlu1 %4819  ;;  %4760 = vmatpush.msrb.mxu3 %v4709_v61  ;;  %4780 = vmatpush.msra.mxu0 %v4710_v37  ;;  %v4837_v54 = vsel %vm966_vm7, %v8345_v27, %v4824_v9 }
 0x87b   : > { %v4838_v16 = vsel %vm966_vm7, %v4820_v7, %v8302_v32  ;;  %4740 = vmatpush.msrb.mxu2 %v4708_v18  ;;  %4800 = vmatpush.msra.mxu1 %v4711_v35  ;;  %v4850_v32 = vmul.f32 %v4837_v54, %v8892_v43 }
 0x87c   : > { %v4854_v45 = vmul.f32 %v4838_v16, %v8892_v43  ;;  %5339 = vmatmul.msk.f32.vlgmr.msra.gmra.mxu1 %vm3159_vm10, %v5335_v46  ;;  %5333 = vmatmul.msk.f32.vlgmr.msrb.gmra.mxu0 %vm3159_vm10, %v8416_v23 }
 0x87d   : > { %5332 = vmatmul.msk.f32.vlgmr.msra.gmra.mxu3 %vm3159_vm10, %v8416_v23  ;;  %4915 = vmatpush.msrb.mxu0 %v4855_v57  ;;  %v8894_v23 = vld [vmem:[#allocation3_spill] sm:$0xff] }
 0x87e   : > { %5336 = vmatmul.msk.f32.vlgmr.msrb.gmra.mxu2 %vm3159_vm10, %v5335_v46  ;;  %4895 = vmatpush.msra.mxu3 %v4854_v45  ;;  %v4849_v27 = vmul.f32 %v4840_v58, %v8894_v23  ;;  %v4845_v30 = vmul.f32 %v4839_v22, %v8894_v23 }
 0x880   : > { %4896 = vmatpush.msra.mxu3 %v4850_v32 }
 0x881   : > { %v4822_v8 = vpop.permute.xlu0 %4821 }
 0x882   : > { %v4836_v24 = vsel %vm966_vm7, %v8409_v60, %v4822_v8  ;;  %v4814_v52 = vpop.permute.xlu1 %4813 }
 0x883   : > { %v4846_v47 = vmul.f32 %v4836_v24, %v8892_v43  ;;  %v4841_v13 = vsel %vm966_vm7, %v4814_v52, %v4820_v7  ;;  %v4844_v59 = vsel %vm966_vm7, %v4832_v55, %v4814_v52 }
 0x884   : > { %v4853_v5 = vmul.f32 %v4841_v13, %v8894_v23  ;;  %v4856_v12 = vmul.f32 %v4844_v59, %v8895_v51  ;;  %5338 = vmatmul.msk.f32.vlgmr.msra.gmra.mxu0 %vm3159_vm10, %v5335_v46 }
 0x885   : > { %5337 = vmatmul.msk.f32.vlgmr.msrb.gmra.mxu3 %vm3159_vm10, %v5335_v46 }
 0x886   : > { %4875 = vmatpush.msra.mxu2 %v4853_v5  ;;  %4897 = vmatpush.msra.mxu3 %v4846_v47 }
 0x887   : > { %4935 = vmatpush.msrb.mxu1 %v4856_v12 }
 0x888   : > { %4876 = vmatpush.msra.mxu2 %v4849_v27  ;;  %v4032_v34 = vpop.f32.mrf.mxu1  ;;  %v4950_v27 = vpop.permute.xlu2 %4949 }
 0x889   : > { %v4830_v6 = vpop.permute.xlu0 %4829 }
 0x88a   : > { %v4834_v60 = vsel %vm966_vm7, %v4824_v9, %v4830_v6  ;;  %v4843_v17 = vsel %vm966_vm7, %v4830_v6, %v8206_v44  ;;  %4877 = vmatpush.msra.mxu2 %v4845_v30  ;;  %v4828_v29 = vpop.permute.xlu1 %4827 }
 0x88b   : > { %v4851_v33 = vmul.f32 %v4834_v60, %v8893_v53  ;;  %v4852_v50 = vmul.f32 %v4843_v17, %v8895_v51  ;;  %v4833_v15 = vsel %vm966_vm7, %v4822_v8, %v4828_v29  ;;  %v4842_v20 = vsel %vm966_vm7, %v4828_v29, %v8244_v31  ;;  %5341 = vmatmul.msk.f32.vlgmr.msra.gmra.mxu2 %vm3159_vm10, %v5340_v62 }
 0x88c   : > { %v4847_v11 = vmul.f32 %v4833_v15, %v8893_v53  ;;  %v4848_v44 = vmul.f32 %v4842_v20, %v8895_v51  ;;  %v4952_v15 = vperm.slane %v4950_v27, 0 }
 0x88d   : > { %5342 = vmatmul.msk.f32.vlgmr.msra.gmra.mxu3 %vm3159_vm10, %v5340_v62  ;;  %4916 = vmatpush.msrb.mxu0 %v4851_v33 }
 0x88e   : > { %4936 = vmatpush.msrb.mxu1 %v4852_v50 }
 0x88f   : > { %4917 = vmatpush.msrb.mxu0 %v4847_v11 }
 0x890   : > { %4937 = vmatpush.msrb.mxu1 %v4848_v44  ;;  %5343 = vmatmul.msk.f32.vlgmr.msrb.gmra.mxu0 %vm3159_vm10, %v5340_v62 }
 0x891   : > { %5344 = vmatmul.msk.f32.vlgmr.msrb.gmra.mxu1 %vm3159_vm10, %v5340_v62 }
 0x8a5   : > { %v3889_v40 = vpop.f32.mrf.mxu2 }
 0x8a7   : > { %v4165_v2 = vpop.f32.mrf.mxu1 }
 0x8a8   : > { %v4012_v41 = vpop.f32.mrf.mxu0 }
 0x8af   : > { %v4302_v14 = vpop.f32.mrf.mxu1 }
 0x8b7   : > { %v4391_v49 = vpop.f32.mrf.mxu1 }
 0x8c5   : > { %v3909_v36 = vpop.f32.mrf.mxu3  ;;  %v3929_v0 = vpop.f32.mrf.mxu2 }
 0x8c6   : > { %v4013_v28 = vadd.f32 %v4012_v41, %v3929_v0 }
 0x8cd   : > { %v3949_v31 = vpop.f32.mrf.mxu3  ;;  %v3972_v1 = vpop.f32.mrf.mxu2 }
 0x8ce   : > { %v4033_v25 = vadd.f32 %v4032_v34, %v3949_v31  ;;  %v3973_v16 = vadd.f32 %v3972_v1, %v3889_v40 }
 0x8d0   : > { %v4171_v35 = vadd.f32 %v4165_v2, %v4033_v25 }
 0x8d2   : > { %v4308_v54 = vadd.f32 %v4302_v14, %v4171_v35  ;;  %v8897_v14 = vlaneseq }
 0x8d4   : > { %v4397_v58 = vadd.f32 %v4391_v49, %v4308_v54  ;;  %vm4973_vm14 = vcmp.lt.s32.totalorder %v8897_v14, 512 }
 0x8d5   : > { %v3992_v42 = vpop.f32.mrf.mxu3  ;;  %v4105_v4 = vpop.f32.mrf.mxu2 }
 0x8d6   : > { %v3993_v43 = vadd.f32 %v3992_v42, %v3909_v36  ;;  %v4168_v53 = vadd.f32 %v4105_v4, %v3973_v16 }
 0x8d8   : > { %v4145_v48 = vpop.f32.mrf.mxu0 }
 0x8d9   : > { %v4170_v46 = vadd.f32 %v4145_v48, %v4013_v28 }
 0x8db   : > { %v4528_v26 = vpop.f32.mrf.mxu1 }
 0x8dc   : > { %v4534_v5 = vadd.f32 %v4528_v26, %v4397_v58 }
 0x8de   : > { %v4125_v10 = vpop.f32.mrf.mxu3 }
 0x8df   : > { %v4242_v38 = vpop.f32.mrf.mxu2  ;;  %v4169_v57 = vadd.f32 %v4125_v10, %v3993_v43 }
 0x8e0   : > { %v4305_v47 = vadd.f32 %v4242_v38, %v4168_v53 }
 0x8e1   : > { %v4282_v19 = vpop.f32.mrf.mxu0 }
 0x8e2   : > { %v4307_v45 = vadd.f32 %v4282_v19, %v4170_v46 }
 0x8e6   : > { %v4262_v63 = vpop.f32.mrf.mxu3 }
 0x8e7   : > { %v4306_v13 = vadd.f32 %v4262_v63, %v4169_v57 }
 0x8e8   : > { %v4331_v56 = vpop.f32.mrf.mxu2 }
 0x8e9   : > { %v4371_v21 = vpop.f32.mrf.mxu0  ;;  %v4394_v51 = vadd.f32 %v4331_v56, %v4305_v47 }
 0x8ea   : > { %v4396_v8 = vadd.f32 %v4371_v21, %v4307_v45 }
 0x8ec   : > { %v4665_v18 = vpop.f32.mrf.mxu1 }
 0x8ed   : > { %v4671_v30 = vadd.f32 %v4665_v18, %v4534_v5 }
 0x8f0   : > { %v4351_v3 = vpop.f32.mrf.mxu3 }
 0x8f1   : > { %v4468_v37 = vpop.f32.mrf.mxu2  ;;  %v4508_v55 = vpop.f32.mrf.mxu0  ;;  %v4395_v12 = vadd.f32 %v4351_v3, %v4306_v13 }
 0x8f2   : > { %v4533_v59 = vadd.f32 %v4508_v55, %v4396_v8  ;;  %v4531_v62 = vadd.f32 %v4468_v37, %v4394_v51 }
 0x8f8   : > { %v4488_v39 = vpop.f32.mrf.mxu3 }
 0x8f9   : > { %v4645_v61 = vpop.f32.mrf.mxu0  ;;  %v4605_v9 = vpop.f32.mrf.mxu2  ;;  %v4532_v6 = vadd.f32 %v4488_v39, %v4395_v12 }
 0x8fa   : > { %v4802_v24 = vpop.f32.mrf.mxu1  ;;  %v4670_v22 = vadd.f32 %v4645_v61, %v4533_v59  ;;  %v4668_v17 = vadd.f32 %v4605_v9, %v4531_v62 }
 0x8fb   : > { %v4808_v29 = vadd.f32 %v4802_v24, %v4671_v30 }
 0x900   : > { %v4625_v7 = vpop.f32.mrf.mxu3 }
 0x901   : > { %v4782_v32 = vpop.f32.mrf.mxu0  ;;  %v4742_v52 = vpop.f32.mrf.mxu2  ;;  %v4669_v33 = vadd.f32 %v4625_v7, %v4532_v6 }
 0x902   : > { %v4807_v60 = vadd.f32 %v4782_v32, %v4670_v22  ;;  %v4805_v40 = vadd.f32 %v4742_v52, %v4668_v17 }
 0x908   : > { %v4762_v23 = vpop.f32.mrf.mxu3 }
 0x909   : > { %v4806_v36 = vadd.f32 %v4762_v23, %v4669_v33 }
 0x90d   : > { %v4919_v50 = vpop.f32.mrf.mxu0 }
 0x90e   : > { %v4879_v20 = vpop.f32.mrf.mxu2  ;;  %v4944_v11 = vadd.f32 %v4919_v50, %v4807_v60  ;;  %v4939_v44 = vpop.f32.mrf.mxu1 }
 0x90f   : > { %v4945_v0 = vadd.f32 %v4939_v44, %v4808_v29  ;;  %v4942_v1 = vadd.f32 %v4879_v20, %v4805_v40 }
 0x910   : > { %v4899_v31 = vpop.f32.mrf.mxu3  ;;  %v4955_v34 = vadd.f32 %v4952_v15, %v4944_v11 }
 0x911   : > { %v4943_v41 = vadd.f32 %v4899_v31, %v4806_v36  ;;  %v4956_v42 = vadd.f32 %v4952_v15, %v4945_v0  ;;  %v4953_v10 = vadd.f32 %v4952_v15, %v4942_v1 }
 0x912   : > { %v4962_v4 = vrot.slane %v4955_v34, 6 }
 0x913   : > { %v4954_v2 = vadd.f32 %v4952_v15, %v4943_v41  ;;  %v4963_v48 = vrot.slane %v4956_v42, 5 }
 0x915   : > { %v4961_v38 = vrot.slane %v4954_v2, 7  ;;  %v4967_v19 = vsel %vm4966_vm11, %v4962_v4, %v4963_v48 }
 0x917   : > { %v4965_v63 = vsel %vm4964_vm12, %v4953_v10, %v4961_v38 }
 0x918   : > { %v4969_v56 = vsel %vm4968_vm13, %v4965_v63, %v4967_v19 }
 0x919   : > { %4975 = vst.msk [vmem:[%s491_s22] sm:$0xf] %vm4973_vm14, %v4969_v56 }
 0x91a PF: > { %s27_s20 = sadd.s32 1, %s5427_s20  }
 0x91b   : > { %p24_p4 = scmp.ge.s32.totalorder %s27_s20, 4  }
 0x91d   :  { %26 = sbr.rel (!%p24_p4) target bundleno = 3 (0x3), region = 164 }

</bundles_post_ra>
